<compile_context>
chip_gen: v7x
topology: tpu7x:2x2x1
jax: 0.10.0
libtpu: 0.0.40
codegen_flags: <defaults>
</compile_context>

<pallas_src>
import functools
import math

import jax
import jax.numpy as jnp
from jax import lax
from jax.experimental import pallas as pl
from jax.experimental.pallas import tpu as pltpu


def _neural_cde_kernel(coeffs_ref, tbig_ref, s_ref,
                       wi_ref, bi_ref, w1_ref, b1_ref,
                       w2_ref, b2_ref, wr_ref, br_ref,
                       out_ref, *, steps_per_interval):
    n_intervals, B, four_i = coeffs_ref.shape
    I = four_i // 4
    IH, H = s_ref.shape                     # IH = I * H

    # Values needed in every loop iteration: read once, keep resident.
    Tbig = tbig_ref[...]                    # (4I, 3*IH): [a|b|2c|3d] -> [bT|cT|dT]
    S = s_ref[...]                          # (IH, H): group-sum over each I-block
    w1 = w1_ref[...]; b1 = b1_ref[...]
    w2 = w2_ref[...]; b2 = b2_ref[...]

    # z0 = initial(X(t0)); X(t0) is the `a` coefficient of interval 0.
    # wi/bi are single-use: read at the use site (don't extend live ranges).
    x0 = coeffs_ref[0][:, 0:I]                                           # (B, I)
    z0 = jnp.dot(x0, wi_ref[...], preferred_element_type=jnp.float32) + bi_ref[...]

    dt = 1.0 / steps_per_interval

    def vector_field(zc, dx_tiled):
        # CDEFunc: linear1 -> relu -> linear2 -> tanh; kept flat (B, IH) in
        # torch's .view(B, H, I) ordering (input channel fastest per h block).
        h = jnp.maximum(jnp.dot(zc, w1, preferred_element_type=jnp.float32) + b1, 0.0)
        f = jnp.tanh(jnp.dot(h, w2, preferred_element_type=jnp.float32) + b2)   # (B, IH)
        # z'[b,h] = sum_i f[b, h*I+i] * dX[b,i]  ==  (f * dX_tiled) @ S
        return jnp.dot(f * dx_tiled, S, preferred_element_type=jnp.float32)     # (B, H)

    def interval_body(i, z):
        # dX/dt = b + (2c)*frac + (3d)*frac^2 on this unit interval.  Tile the
        # three coefficient blocks to (B, IH) once per interval with a single
        # small MXU matmul so the contraction stays lane-dense; the slices of
        # `bcd` below are vreg-aligned (multiples of IH = 128 lanes).
        bcd = jnp.dot(coeffs_ref[i], Tbig, preferred_element_type=jnp.float32)  # (B, 3*IH)
        bT = bcd[:, 0:IH]
        cT = bcd[:, IH:2 * IH]
        dT = bcd[:, 2 * IH:3 * IH]

        def rk4_step(step, z):
            frac = step.astype(jnp.float32) * dt
            # Only 3 distinct fractions per RK4 step (k2/k3 share the midpoint)
            # and dX does not depend on z -> hoist off the serial chain.
            fm = frac + 0.5 * dt
            fe = frac + dt
            dx0 = bT + cT * frac + dT * (frac * frac)
            dxm = bT + cT * fm + dT * (fm * fm)
            dxe = bT + cT * fe + dT * (fe * fe)

            k1 = vector_field(z, dx0)
            k2 = vector_field(z + 0.5 * dt * k1, dxm)
            k3 = vector_field(z + 0.5 * dt * k2, dxm)
            k4 = vector_field(z + dt * k3, dxe)
            return z + (dt / 6.0) * (k1 + 2.0 * (k2 + k3) + k4)

        # Fixed trip count: fully unroll so the LLO scheduler can hide the
        # VPU/dX arithmetic under the serial MXU matmul chain.
        return lax.fori_loop(0, steps_per_interval, rk4_step, z, unroll=True)

    z_T = lax.fori_loop(0, n_intervals, interval_body, z0)                # z at t = L-1

    # pred_y = readout(z_T); wr/br single-use, read at the use site.
    out_ref[...] = jnp.dot(z_T, wr_ref[...], preferred_element_type=jnp.float32) + br_ref[...]


def _make_contraction_matrices(I, H):
    """Constant 0/1 matrices that keep the f(z).dX/dt contraction lane-dense.

    torch's `.view(B, H, I)` flattening puts the input-channel index fastest
    within each hidden-channel block, i.e. flat index k = h*I + i.

    Tbig (4I, 3*IH): maps an interval's raw coefficient row [a|b|2c|3d] (len 4I)
        to [tile(b) | tile(2c) | tile(3d)] (len 3*IH), where tile(x)[h*I+i]=x[i].
    S (IH, H): sums each length-I block: S[h*I+i, h] = 1.
    """
    IH = I * H
    T = jnp.tile(jnp.eye(I, dtype=jnp.float32), (1, H))            # (I, IH)
    Z = jnp.zeros((I, IH), dtype=jnp.float32)
    Tbig = jnp.concatenate([
        jnp.concatenate([Z, Z, Z], axis=1),   # a rows: unused for dX/dt
        jnp.concatenate([T, Z, Z], axis=1),   # b rows
        jnp.concatenate([Z, T, Z], axis=1),   # 2c rows
        jnp.concatenate([Z, Z, T], axis=1),   # 3d rows
    ], axis=0)                                                      # (4I, 3*IH)
    S = jnp.repeat(jnp.eye(H, dtype=jnp.float32), I, axis=0)        # (IH, H)
    return Tbig, S


def neural_cde_forward(coeffs, params, *, steps_per_interval=8):
    """coeffs: (B, L-1, 4*input_channels) float32, torchcde natural-cubic layout."""
    B, n_intervals, four_i = coeffs.shape
    I = four_i // 4
    H = params["wi"].shape[1]
    O = params["wr"].shape[1]

    # Single time-major coefficient buffer (one VMEM allocation / one DMA);
    # the kernel indexes intervals on the leading axis.
    coeffs_t = jnp.transpose(coeffs, (1, 0, 2)).astype(jnp.float32)   # (L-1, B, 4I)
    Tbig, S = _make_contraction_matrices(I, H)

    kernel = functools.partial(_neural_cde_kernel,
                               steps_per_interval=steps_per_interval)
    vmem = pl.BlockSpec(memory_space=pltpu.MemorySpace.VMEM)

    return pl.pallas_call(
        kernel,
        out_shape=jax.ShapeDtypeStruct((B, O), jnp.float32),
        in_specs=[vmem] * 11,
        out_specs=vmem,
    )(coeffs_t, Tbig, S,
      params["wi"], params["bi"], params["w1"], params["b1"],
      params["w2"], params["b2"], params["wr"], params["br"])


def init_params(key, input_channels, hidden_channels, output_channels):
    """Deterministic synthetic parameters (PyTorch nn.Linear uniform-style init).

    Weights are stored as (fan_in, fan_out) so the kernel computes x @ W + b,
    equivalent to torch's x @ W.T + b with W of shape (fan_out, fan_in).
    Biases are kept as (1, fan_out) for clean 2-D broadcasting on TPU.
    """
    def linear(k, fan_in, fan_out):
        kw, kb = jax.random.split(k)
        bound = 1.0 / math.sqrt(fan_in)
        w = jax.random.uniform(kw, (fan_in, fan_out), jnp.float32, -bound, bound)
        bvec = jax.random.uniform(kb, (1, fan_out), jnp.float32, -bound, bound)
        return w, bvec

    k0, k1, k2, k3 = jax.random.split(key, 4)
    wi, bi = linear(k0, input_channels, hidden_channels)                 # initial
    w1, b1 = linear(k1, hidden_channels, 128)                            # func.linear1
    w2, b2 = linear(k2, 128, input_channels * hidden_channels)           # func.linear2
    wr, br = linear(k3, hidden_channels, output_channels)                # readout
    return dict(wi=wi, bi=bi, w1=w1, b1=b1, w2=w2, b2=b2, wr=wr, br=br)


if __name__ == "__main__":
    B = 8                 # batch
    I = 4                 # input_channels
    H = 32                # hidden_channels
    O = 4                 # output_channels
    L = 9                 # number of spline knots -> L-1 = 8 intervals

    key = jax.random.PRNGKey(0)
    k_coef, k_par = jax.random.split(key)

    # Synthetic natural-cubic-spline coefficients (torchcde layout).
    coeffs = 0.1 * jax.random.normal(k_coef, (B, L - 1, 4 * I), jnp.float32)
    params = init_params(k_par, I, H, O)

    fwd = jax.jit(functools.partial(neural_cde_forward, steps_per_interval=8))
    pred_y = fwd(coeffs, params)
    pred_y = jax.block_until_ready(pred_y)
    assert pred_y.shape == (B, O) and pred_y.dtype == jnp.float32
    assert bool(jnp.all(jnp.isfinite(pred_y)))
    print("KERNEL_OK")
</pallas_src>

<mosaic_0001>
module attributes {stable_mosaic.version = 11 : i64} {
  func.func @_neural_cde_kernel(%arg0: memref<8x8x16xf32, #tpu.memory_space<vmem>>, %arg1: memref<16x384xf32, #tpu.memory_space<vmem>>, %arg2: memref<128x32xf32, #tpu.memory_space<vmem>>, %arg3: memref<4x32xf32, #tpu.memory_space<vmem>>, %arg4: memref<1x32xf32, #tpu.memory_space<vmem>>, %arg5: memref<32x128xf32, #tpu.memory_space<vmem>>, %arg6: memref<1x128xf32, #tpu.memory_space<vmem>>, %arg7: memref<128x128xf32, #tpu.memory_space<vmem>>, %arg8: memref<1x128xf32, #tpu.memory_space<vmem>>, %arg9: memref<32x4xf32, #tpu.memory_space<vmem>>, %arg10: memref<1x4xf32, #tpu.memory_space<vmem>>, %arg11: memref<8x4xf32, #tpu.memory_space<vmem>>) attributes {dimension_semantics = [], scalar_prefetch = 0 : i64, scratch_operands = 0 : i64, tpu.core_type = #tpu.core_type<tc>} {
    %c0 = arith.constant 0 : index
    %c0_0 = arith.constant 0 : index
    %0 = vector.load %arg1[%c0, %c0_0] : memref<16x384xf32, #tpu.memory_space<vmem>>, vector<16x384xf32>
    %c0_1 = arith.constant 0 : index
    %c0_2 = arith.constant 0 : index
    %1 = vector.load %arg2[%c0_1, %c0_2] : memref<128x32xf32, #tpu.memory_space<vmem>>, vector<128x32xf32>
    %c0_3 = arith.constant 0 : index
    %c0_4 = arith.constant 0 : index
    %2 = vector.load %arg5[%c0_3, %c0_4] : memref<32x128xf32, #tpu.memory_space<vmem>>, vector<32x128xf32>
    %c0_5 = arith.constant 0 : index
    %c0_6 = arith.constant 0 : index
    %3 = vector.load %arg6[%c0_5, %c0_6] : memref<1x128xf32, #tpu.memory_space<vmem>>, vector<1x128xf32>
    %c0_7 = arith.constant 0 : index
    %c0_8 = arith.constant 0 : index
    %4 = vector.load %arg7[%c0_7, %c0_8] : memref<128x128xf32, #tpu.memory_space<vmem>>, vector<128x128xf32>
    %c0_9 = arith.constant 0 : index
    %c0_10 = arith.constant 0 : index
    %5 = vector.load %arg8[%c0_9, %c0_10] : memref<1x128xf32, #tpu.memory_space<vmem>>, vector<1x128xf32>
    %c0_11 = arith.constant 0 : index
    %c0_12 = arith.constant 0 : index
    %c0_13 = arith.constant 0 : index
    %6 = vector.load %arg0[%c0_11, %c0_12, %c0_13] : memref<8x8x16xf32, #tpu.memory_space<vmem>>, vector<1x8x16xf32>
    %7 = vector.shape_cast %6 : vector<1x8x16xf32> to vector<8x16xf32>
    %8 = vector.extract_strided_slice %7 {offsets = [0, 0], sizes = [8, 4], strides = [1, 1]} : vector<8x16xf32> to vector<8x4xf32>
    %c0_14 = arith.constant 0 : index
    %c0_15 = arith.constant 0 : index
    %9 = vector.load %arg3[%c0_14, %c0_15] : memref<4x32xf32, #tpu.memory_space<vmem>>, vector<4x32xf32>
    %cst = arith.constant dense<0.000000e+00> : vector<8x32xf32>
    %10 = tpu.matmul %8, %9, %cst {dimension_numbers = #tpu.dot_dimension_numbers<[1], [0], [0], [1], [0, 0, 1, 1], [], []>} : vector<8x4xf32>, vector<4x32xf32>, vector<8x32xf32> -> vector<8x32xf32>
    %c0_16 = arith.constant 0 : index
    %c0_17 = arith.constant 0 : index
    %11 = vector.load %arg4[%c0_16, %c0_17] : memref<1x32xf32, #tpu.memory_space<vmem>>, vector<1x32xf32>
    %12 = vector.broadcast %11 : vector<1x32xf32> to vector<8x32xf32>
    %13 = arith.addf %10, %12 : vector<8x32xf32>
    %c0_i32 = arith.constant 0 : i32
    %c8_i32 = arith.constant 8 : i32
    %14 = arith.addi %c0_i32, %c8_i32 : i32
    %c1_i32 = arith.constant 1 : i32
    %15 = scf.for %arg12 = %c0_i32 to %14 step %c1_i32 iter_args(%arg13 = %13) -> (vector<8x32xf32>)  : i32 {
      %22 = arith.index_cast %arg12 : i32 to index
      %c0_26 = arith.constant 0 : index
      %c0_27 = arith.constant 0 : index
      %23 = vector.load %arg0[%22, %c0_26, %c0_27] : memref<8x8x16xf32, #tpu.memory_space<vmem>>, vector<1x8x16xf32>
      %24 = vector.shape_cast %23 : vector<1x8x16xf32> to vector<8x16xf32>
      %cst_28 = arith.constant dense<0.000000e+00> : vector<8x384xf32>
      %25 = tpu.matmul %24, %0, %cst_28 {dimension_numbers = #tpu.dot_dimension_numbers<[1], [0], [0], [1], [0, 0, 1, 1], [], []>} : vector<8x16xf32>, vector<16x384xf32>, vector<8x384xf32> -> vector<8x384xf32>
      %26 = vector.extract_strided_slice %25 {offsets = [0, 0], sizes = [8, 128], strides = [1, 1]} : vector<8x384xf32> to vector<8x128xf32>
      %27 = vector.extract_strided_slice %25 {offsets = [0, 128], sizes = [8, 128], strides = [1, 1]} : vector<8x384xf32> to vector<8x128xf32>
      %28 = vector.extract_strided_slice %25 {offsets = [0, 256], sizes = [8, 128], strides = [1, 1]} : vector<8x384xf32> to vector<8x128xf32>
      %c0_i32_29 = arith.constant 0 : i32
      %29 = arith.sitofp %c0_i32_29 : i32 to f32
      %cst_30 = arith.constant 1.250000e-01 : f32
      %30 = arith.mulf %29, %cst_30 : f32
      %cst_31 = arith.constant 6.250000e-02 : f32
      %31 = arith.addf %30, %cst_31 : f32
      %cst_32 = arith.constant 1.250000e-01 : f32
      %32 = arith.addf %30, %cst_32 : f32
      %33 = vector.broadcast %30 : f32 to vector<8x128xf32>
      %34 = arith.mulf %27, %33 : vector<8x128xf32>
      %35 = arith.addf %26, %34 : vector<8x128xf32>
      %36 = arith.mulf %30, %30 : f32
      %37 = vector.broadcast %36 : f32 to vector<8x128xf32>
      %38 = arith.mulf %28, %37 : vector<8x128xf32>
      %39 = arith.addf %35, %38 : vector<8x128xf32>
      %40 = vector.broadcast %31 : f32 to vector<8x128xf32>
      %41 = arith.mulf %27, %40 : vector<8x128xf32>
      %42 = arith.addf %26, %41 : vector<8x128xf32>
      %43 = arith.mulf %31, %31 : f32
      %44 = vector.broadcast %43 : f32 to vector<8x128xf32>
      %45 = arith.mulf %28, %44 : vector<8x128xf32>
      %46 = arith.addf %42, %45 : vector<8x128xf32>
      %47 = vector.broadcast %32 : f32 to vector<8x128xf32>
      %48 = arith.mulf %27, %47 : vector<8x128xf32>
      %49 = arith.addf %26, %48 : vector<8x128xf32>
      %50 = arith.mulf %32, %32 : f32
      %51 = vector.broadcast %50 : f32 to vector<8x128xf32>
      %52 = arith.mulf %28, %51 : vector<8x128xf32>
      %53 = arith.addf %49, %52 : vector<8x128xf32>
      %cst_33 = arith.constant dense<0.000000e+00> : vector<8x128xf32>
      %54 = tpu.matmul %arg13, %2, %cst_33 {dimension_numbers = #tpu.dot_dimension_numbers<[1], [0], [0], [1], [0, 0, 1, 1], [], []>} : vector<8x32xf32>, vector<32x128xf32>, vector<8x128xf32> -> vector<8x128xf32>
      %55 = vector.broadcast %3 : vector<1x128xf32> to vector<8x128xf32>
      %56 = arith.addf %54, %55 : vector<8x128xf32>
      %cst_34 = arith.constant 0.000000e+00 : f32
      %57 = vector.broadcast %cst_34 : f32 to vector<8x128xf32>
      %58 = arith.maximumf %56, %57 : vector<8x128xf32>
      %cst_35 = arith.constant dense<0.000000e+00> : vector<8x128xf32>
      %59 = tpu.matmul %58, %4, %cst_35 {dimension_numbers = #tpu.dot_dimension_numbers<[1], [0], [0], [1], [0, 0, 1, 1], [], []>} : vector<8x128xf32>, vector<128x128xf32>, vector<8x128xf32> -> vector<8x128xf32>
      %60 = vector.broadcast %5 : vector<1x128xf32> to vector<8x128xf32>
      %61 = arith.addf %59, %60 : vector<8x128xf32>
      %62 = math.tanh %61 : vector<8x128xf32>
      %63 = arith.mulf %62, %39 : vector<8x128xf32>
      %cst_36 = arith.constant dense<0.000000e+00> : vector<8x32xf32>
      %64 = tpu.matmul %63, %1, %cst_36 {dimension_numbers = #tpu.dot_dimension_numbers<[1], [0], [0], [1], [0, 0, 1, 1], [], []>} : vector<8x128xf32>, vector<128x32xf32>, vector<8x32xf32> -> vector<8x32xf32>
      %cst_37 = arith.constant 6.250000e-02 : f32
      %65 = vector.broadcast %cst_37 : f32 to vector<8x32xf32>
      %66 = arith.mulf %65, %64 : vector<8x32xf32>
      %67 = arith.addf %arg13, %66 : vector<8x32xf32>
      %cst_38 = arith.constant dense<0.000000e+00> : vector<8x128xf32>
      %68 = tpu.matmul %67, %2, %cst_38 {dimension_numbers = #tpu.dot_dimension_numbers<[1], [0], [0], [1], [0, 0, 1, 1], [], []>} : vector<8x32xf32>, vector<32x128xf32>, vector<8x128xf32> -> vector<8x128xf32>
      %69 = vector.broadcast %3 : vector<1x128xf32> to vector<8x128xf32>
      %70 = arith.addf %68, %69 : vector<8x128xf32>
      %cst_39 = arith.constant 0.000000e+00 : f32
      %71 = vector.broadcast %cst_39 : f32 to vector<8x128xf32>
      %72 = arith.maximumf %70, %71 : vector<8x128xf32>
      %cst_40 = arith.constant dense<0.000000e+00> : vector<8x128xf32>
      %73 = tpu.matmul %72, %4, %cst_40 {dimension_numbers = #tpu.dot_dimension_numbers<[1], [0], [0], [1], [0, 0, 1, 1], [], []>} : vector<8x128xf32>, vector<128x128xf32>, vector<8x128xf32> -> vector<8x128xf32>
      %74 = vector.broadcast %5 : vector<1x128xf32> to vector<8x128xf32>
      %75 = arith.addf %73, %74 : vector<8x128xf32>
      %76 = math.tanh %75 : vector<8x128xf32>
      %77 = arith.mulf %76, %46 : vector<8x128xf32>
      %cst_41 = arith.constant dense<0.000000e+00> : vector<8x32xf32>
      %78 = tpu.matmul %77, %1, %cst_41 {dimension_numbers = #tpu.dot_dimension_numbers<[1], [0], [0], [1], [0, 0, 1, 1], [], []>} : vector<8x128xf32>, vector<128x32xf32>, vector<8x32xf32> -> vector<8x32xf32>
      %cst_42 = arith.constant 6.250000e-02 : f32
      %79 = vector.broadcast %cst_42 : f32 to vector<8x32xf32>
      %80 = arith.mulf %79, %78 : vector<8x32xf32>
      %81 = arith.addf %arg13, %80 : vector<8x32xf32>
      %cst_43 = arith.constant dense<0.000000e+00> : vector<8x128xf32>
      %82 = tpu.matmul %81, %2, %cst_43 {dimension_numbers = #tpu.dot_dimension_numbers<[1], [0], [0], [1], [0, 0, 1, 1], [], []>} : vector<8x32xf32>, vector<32x128xf32>, vector<8x128xf32> -> vector<8x128xf32>
      %83 = vector.broadcast %3 : vector<1x128xf32> to vector<8x128xf32>
      %84 = arith.addf %82, %83 : vector<8x128xf32>
      %cst_44 = arith.constant 0.000000e+00 : f32
      %85 = vector.broadcast %cst_44 : f32 to vector<8x128xf32>
      %86 = arith.maximumf %84, %85 : vector<8x128xf32>
      %cst_45 = arith.constant dense<0.000000e+00> : vector<8x128xf32>
      %87 = tpu.matmul %86, %4, %cst_45 {dimension_numbers = #tpu.dot_dimension_numbers<[1], [0], [0], [1], [0, 0, 1, 1], [], []>} : vector<8x128xf32>, vector<128x128xf32>, vector<8x128xf32> -> vector<8x128xf32>
      %88 = vector.broadcast %5 : vector<1x128xf32> to vector<8x128xf32>
      %89 = arith.addf %87, %88 : vector<8x128xf32>
      %90 = math.tanh %89 : vector<8x128xf32>
      %91 = arith.mulf %90, %46 : vector<8x128xf32>
      %cst_46 = arith.constant dense<0.000000e+00> : vector<8x32xf32>
      %92 = tpu.matmul %91, %1, %cst_46 {dimension_numbers = #tpu.dot_dimension_numbers<[1], [0], [0], [1], [0, 0, 1, 1], [], []>} : vector<8x128xf32>, vector<128x32xf32>, vector<8x32xf32> -> vector<8x32xf32>
      %cst_47 = arith.constant 1.250000e-01 : f32
      %93 = vector.broadcast %cst_47 : f32 to vector<8x32xf32>
      %94 = arith.mulf %93, %92 : vector<8x32xf32>
      %95 = arith.addf %arg13, %94 : vector<8x32xf32>
      %cst_48 = arith.constant dense<0.000000e+00> : vector<8x128xf32>
      %96 = tpu.matmul %95, %2, %cst_48 {dimension_numbers = #tpu.dot_dimension_numbers<[1], [0], [0], [1], [0, 0, 1, 1], [], []>} : vector<8x32xf32>, vector<32x128xf32>, vector<8x128xf32> -> vector<8x128xf32>
      %97 = vector.broadcast %3 : vector<1x128xf32> to vector<8x128xf32>
      %98 = arith.addf %96, %97 : vector<8x128xf32>
      %cst_49 = arith.constant 0.000000e+00 : f32
      %99 = vector.broadcast %cst_49 : f32 to vector<8x128xf32>
      %100 = arith.maximumf %98, %99 : vector<8x128xf32>
      %cst_50 = arith.constant dense<0.000000e+00> : vector<8x128xf32>
      %101 = tpu.matmul %100, %4, %cst_50 {dimension_numbers = #tpu.dot_dimension_numbers<[1], [0], [0], [1], [0, 0, 1, 1], [], []>} : vector<8x128xf32>, vector<128x128xf32>, vector<8x128xf32> -> vector<8x128xf32>
      %102 = vector.broadcast %5 : vector<1x128xf32> to vector<8x128xf32>
      %103 = arith.addf %101, %102 : vector<8x128xf32>
      %104 = math.tanh %103 : vector<8x128xf32>
      %105 = arith.mulf %104, %53 : vector<8x128xf32>
      %cst_51 = arith.constant dense<0.000000e+00> : vector<8x32xf32>
      %106 = tpu.matmul %105, %1, %cst_51 {dimension_numbers = #tpu.dot_dimension_numbers<[1], [0], [0], [1], [0, 0, 1, 1], [], []>} : vector<8x128xf32>, vector<128x32xf32>, vector<8x32xf32> -> vector<8x32xf32>
      %107 = arith.addf %78, %92 : vector<8x32xf32>
      %cst_52 = arith.constant 2.000000e+00 : f32
      %108 = vector.broadcast %cst_52 : f32 to vector<8x32xf32>
      %109 = arith.mulf %108, %107 : vector<8x32xf32>
      %110 = arith.addf %64, %109 : vector<8x32xf32>
      %111 = arith.addf %110, %106 : vector<8x32xf32>
      %cst_53 = arith.constant 0.020833334 : f32
      %112 = vector.broadcast %cst_53 : f32 to vector<8x32xf32>
      %113 = arith.mulf %112, %111 : vector<8x32xf32>
      %114 = arith.addf %arg13, %113 : vector<8x32xf32>
      %c1_i32_54 = arith.constant 1 : i32
      %115 = arith.sitofp %c1_i32_54 : i32 to f32
      %cst_55 = arith.constant 1.250000e-01 : f32
      %116 = arith.mulf %115, %cst_55 : f32
      %cst_56 = arith.constant 6.250000e-02 : f32
      %117 = arith.addf %116, %cst_56 : f32
      %cst_57 = arith.constant 1.250000e-01 : f32
      %118 = arith.addf %116, %cst_57 : f32
      %119 = vector.broadcast %116 : f32 to vector<8x128xf32>
      %120 = arith.mulf %27, %119 : vector<8x128xf32>
      %121 = arith.addf %26, %120 : vector<8x128xf32>
      %122 = arith.mulf %116, %116 : f32
      %123 = vector.broadcast %122 : f32 to vector<8x128xf32>
      %124 = arith.mulf %28, %123 : vector<8x128xf32>
      %125 = arith.addf %121, %124 : vector<8x128xf32>
      %126 = vector.broadcast %117 : f32 to vector<8x128xf32>
      %127 = arith.mulf %27, %126 : vector<8x128xf32>
      %128 = arith.addf %26, %127 : vector<8x128xf32>
      %129 = arith.mulf %117, %117 : f32
      %130 = vector.broadcast %129 : f32 to vector<8x128xf32>
      %131 = arith.mulf %28, %130 : vector<8x128xf32>
      %132 = arith.addf %128, %131 : vector<8x128xf32>
      %133 = vector.broadcast %118 : f32 to vector<8x128xf32>
      %134 = arith.mulf %27, %133 : vector<8x128xf32>
      %135 = arith.addf %26, %134 : vector<8x128xf32>
      %136 = arith.mulf %118, %118 : f32
      %137 = vector.broadcast %136 : f32 to vector<8x128xf32>
      %138 = arith.mulf %28, %137 : vector<8x128xf32>
      %139 = arith.addf %135, %138 : vector<8x128xf32>
      %cst_58 = arith.constant dense<0.000000e+00> : vector<8x128xf32>
      %140 = tpu.matmul %114, %2, %cst_58 {dimension_numbers = #tpu.dot_dimension_numbers<[1], [0], [0], [1], [0, 0, 1, 1], [], []>} : vector<8x32xf32>, vector<32x128xf32>, vector<8x128xf32> -> vector<8x128xf32>
      %141 = vector.broadcast %3 : vector<1x128xf32> to vector<8x128xf32>
      %142 = arith.addf %140, %141 : vector<8x128xf32>
      %cst_59 = arith.constant 0.000000e+00 : f32
      %143 = vector.broadcast %cst_59 : f32 to vector<8x128xf32>
      %144 = arith.maximumf %142, %143 : vector<8x128xf32>
      %cst_60 = arith.constant dense<0.000000e+00> : vector<8x128xf32>
      %145 = tpu.matmul %144, %4, %cst_60 {dimension_numbers = #tpu.dot_dimension_numbers<[1], [0], [0], [1], [0, 0, 1, 1], [], []>} : vector<8x128xf32>, vector<128x128xf32>, vector<8x128xf32> -> vector<8x128xf32>
      %146 = vector.broadcast %5 : vector<1x128xf32> to vector<8x128xf32>
      %147 = arith.addf %145, %146 : vector<8x128xf32>
      %148 = math.tanh %147 : vector<8x128xf32>
      %149 = arith.mulf %148, %125 : vector<8x128xf32>
      %cst_61 = arith.constant dense<0.000000e+00> : vector<8x32xf32>
      %150 = tpu.matmul %149, %1, %cst_61 {dimension_numbers = #tpu.dot_dimension_numbers<[1], [0], [0], [1], [0, 0, 1, 1], [], []>} : vector<8x128xf32>, vector<128x32xf32>, vector<8x32xf32> -> vector<8x32xf32>
      %cst_62 = arith.constant 6.250000e-02 : f32
      %151 = vector.broadcast %cst_62 : f32 to vector<8x32xf32>
      %152 = arith.mulf %151, %150 : vector<8x32xf32>
      %153 = arith.addf %114, %152 : vector<8x32xf32>
      %cst_63 = arith.constant dense<0.000000e+00> : vector<8x128xf32>
      %154 = tpu.matmul %153, %2, %cst_63 {dimension_numbers = #tpu.dot_dimension_numbers<[1], [0], [0], [1], [0, 0, 1, 1], [], []>} : vector<8x32xf32>, vector<32x128xf32>, vector<8x128xf32> -> vector<8x128xf32>
      %155 = vector.broadcast %3 : vector<1x128xf32> to vector<8x128xf32>
      %156 = arith.addf %154, %155 : vector<8x128xf32>
      %cst_64 = arith.constant 0.000000e+00 : f32
      %157 = vector.broadcast %cst_64 : f32 to vector<8x128xf32>
      %158 = arith.maximumf %156, %157 : vector<8x128xf32>
      %cst_65 = arith.constant dense<0.000000e+00> : vector<8x128xf32>
      %159 = tpu.matmul %158, %4, %cst_65 {dimension_numbers = #tpu.dot_dimension_numbers<[1], [0], [0], [1], [0, 0, 1, 1], [], []>} : vector<8x128xf32>, vector<128x128xf32>, vector<8x128xf32> -> vector<8x128xf32>
      %160 = vector.broadcast %5 : vector<1x128xf32> to vector<8x128xf32>
      %161 = arith.addf %159, %160 : vector<8x128xf32>
      %162 = math.tanh %161 : vector<8x128xf32>
      %163 = arith.mulf %162, %132 : vector<8x128xf32>
      %cst_66 = arith.constant dense<0.000000e+00> : vector<8x32xf32>
      %164 = tpu.matmul %163, %1, %cst_66 {dimension_numbers = #tpu.dot_dimension_numbers<[1], [0], [0], [1], [0, 0, 1, 1], [], []>} : vector<8x128xf32>, vector<128x32xf32>, vector<8x32xf32> -> vector<8x32xf32>
      %cst_67 = arith.constant 6.250000e-02 : f32
      %165 = vector.broadcast %cst_67 : f32 to vector<8x32xf32>
      %166 = arith.mulf %165, %164 : vector<8x32xf32>
      %167 = arith.addf %114, %166 : vector<8x32xf32>
      %cst_68 = arith.constant dense<0.000000e+00> : vector<8x128xf32>
      %168 = tpu.matmul %167, %2, %cst_68 {dimension_numbers = #tpu.dot_dimension_numbers<[1], [0], [0], [1], [0, 0, 1, 1], [], []>} : vector<8x32xf32>, vector<32x128xf32>, vector<8x128xf32> -> vector<8x128xf32>
      %169 = vector.broadcast %3 : vector<1x128xf32> to vector<8x128xf32>
      %170 = arith.addf %168, %169 : vector<8x128xf32>
      %cst_69 = arith.constant 0.000000e+00 : f32
      %171 = vector.broadcast %cst_69 : f32 to vector<8x128xf32>
      %172 = arith.maximumf %170, %171 : vector<8x128xf32>
      %cst_70 = arith.constant dense<0.000000e+00> : vector<8x128xf32>
      %173 = tpu.matmul %172, %4, %cst_70 {dimension_numbers = #tpu.dot_dimension_numbers<[1], [0], [0], [1], [0, 0, 1, 1], [], []>} : vector<8x128xf32>, vector<128x128xf32>, vector<8x128xf32> -> vector<8x128xf32>
      %174 = vector.broadcast %5 : vector<1x128xf32> to vector<8x128xf32>
      %175 = arith.addf %173, %174 : vector<8x128xf32>
      %176 = math.tanh %175 : vector<8x128xf32>
      %177 = arith.mulf %176, %132 : vector<8x128xf32>
      %cst_71 = arith.constant dense<0.000000e+00> : vector<8x32xf32>
      %178 = tpu.matmul %177, %1, %cst_71 {dimension_numbers = #tpu.dot_dimension_numbers<[1], [0], [0], [1], [0, 0, 1, 1], [], []>} : vector<8x128xf32>, vector<128x32xf32>, vector<8x32xf32> -> vector<8x32xf32>
      %cst_72 = arith.constant 1.250000e-01 : f32
      %179 = vector.broadcast %cst_72 : f32 to vector<8x32xf32>
      %180 = arith.mulf %179, %178 : vector<8x32xf32>
      %181 = arith.addf %114, %180 : vector<8x32xf32>
      %cst_73 = arith.constant dense<0.000000e+00> : vector<8x128xf32>
      %182 = tpu.matmul %181, %2, %cst_73 {dimension_numbers = #tpu.dot_dimension_numbers<[1], [0], [0], [1], [0, 0, 1, 1], [], []>} : vector<8x32xf32>, vector<32x128xf32>, vector<8x128xf32> -> vector<8x128xf32>
      %183 = vector.broadcast %3 : vector<1x128xf32> to vector<8x128xf32>
      %184 = arith.addf %182, %183 : vector<8x128xf32>
      %cst_74 = arith.constant 0.000000e+00 : f32
      %185 = vector.broadcast %cst_74 : f32 to vector<8x128xf32>
      %186 = arith.maximumf %184, %185 : vector<8x128xf32>
      %cst_75 = arith.constant dense<0.000000e+00> : vector<8x128xf32>
      %187 = tpu.matmul %186, %4, %cst_75 {dimension_numbers = #tpu.dot_dimension_numbers<[1], [0], [0], [1], [0, 0, 1, 1], [], []>} : vector<8x128xf32>, vector<128x128xf32>, vector<8x128xf32> -> vector<8x128xf32>
      %188 = vector.broadcast %5 : vector<1x128xf32> to vector<8x128xf32>
      %189 = arith.addf %187, %188 : vector<8x128xf32>
      %190 = math.tanh %189 : vector<8x128xf32>
      %191 = arith.mulf %190, %139 : vector<8x128xf32>
      %cst_76 = arith.constant dense<0.000000e+00> : vector<8x32xf32>
      %192 = tpu.matmul %191, %1, %cst_76 {dimension_numbers = #tpu.dot_dimension_numbers<[1], [0], [0], [1], [0, 0, 1, 1], [], []>} : vector<8x128xf32>, vector<128x32xf32>, vector<8x32xf32> -> vector<8x32xf32>
      %193 = arith.addf %164, %178 : vector<8x32xf32>
      %cst_77 = arith.constant 2.000000e+00 : f32
      %194 = vector.broadcast %cst_77 : f32 to vector<8x32xf32>
      %195 = arith.mulf %194, %193 : vector<8x32xf32>
      %196 = arith.addf %150, %195 : vector<8x32xf32>
      %197 = arith.addf %196, %192 : vector<8x32xf32>
      %cst_78 = arith.constant 0.020833334 : f32
      %198 = vector.broadcast %cst_78 : f32 to vector<8x32xf32>
      %199 = arith.mulf %198, %197 : vector<8x32xf32>
      %200 = arith.addf %114, %199 : vector<8x32xf32>
      %c2_i32 = arith.constant 2 : i32
      %201 = arith.sitofp %c2_i32 : i32 to f32
      %cst_79 = arith.constant 1.250000e-01 : f32
      %202 = arith.mulf %201, %cst_79 : f32
      %cst_80 = arith.constant 6.250000e-02 : f32
      %203 = arith.addf %202, %cst_80 : f32
      %cst_81 = arith.constant 1.250000e-01 : f32
      %204 = arith.addf %202, %cst_81 : f32
      %205 = vector.broadcast %202 : f32 to vector<8x128xf32>
      %206 = arith.mulf %27, %205 : vector<8x128xf32>
      %207 = arith.addf %26, %206 : vector<8x128xf32>
      %208 = arith.mulf %202, %202 : f32
      %209 = vector.broadcast %208 : f32 to vector<8x128xf32>
      %210 = arith.mulf %28, %209 : vector<8x128xf32>
      %211 = arith.addf %207, %210 : vector<8x128xf32>
      %212 = vector.broadcast %203 : f32 to vector<8x128xf32>
      %213 = arith.mulf %27, %212 : vector<8x128xf32>
      %214 = arith.addf %26, %213 : vector<8x128xf32>
      %215 = arith.mulf %203, %203 : f32
      %216 = vector.broadcast %215 : f32 to vector<8x128xf32>
      %217 = arith.mulf %28, %216 : vector<8x128xf32>
      %218 = arith.addf %214, %217 : vector<8x128xf32>
      %219 = vector.broadcast %204 : f32 to vector<8x128xf32>
      %220 = arith.mulf %27, %219 : vector<8x128xf32>
      %221 = arith.addf %26, %220 : vector<8x128xf32>
      %222 = arith.mulf %204, %204 : f32
      %223 = vector.broadcast %222 : f32 to vector<8x128xf32>
      %224 = arith.mulf %28, %223 : vector<8x128xf32>
      %225 = arith.addf %221, %224 : vector<8x128xf32>
      %cst_82 = arith.constant dense<0.000000e+00> : vector<8x128xf32>
      %226 = tpu.matmul %200, %2, %cst_82 {dimension_numbers = #tpu.dot_dimension_numbers<[1], [0], [0], [1], [0, 0, 1, 1], [], []>} : vector<8x32xf32>, vector<32x128xf32>, vector<8x128xf32> -> vector<8x128xf32>
      %227 = vector.broadcast %3 : vector<1x128xf32> to vector<8x128xf32>
      %228 = arith.addf %226, %227 : vector<8x128xf32>
      %cst_83 = arith.constant 0.000000e+00 : f32
      %229 = vector.broadcast %cst_83 : f32 to vector<8x128xf32>
      %230 = arith.maximumf %228, %229 : vector<8x128xf32>
      %cst_84 = arith.constant dense<0.000000e+00> : vector<8x128xf32>
      %231 = tpu.matmul %230, %4, %cst_84 {dimension_numbers = #tpu.dot_dimension_numbers<[1], [0], [0], [1], [0, 0, 1, 1], [], []>} : vector<8x128xf32>, vector<128x128xf32>, vector<8x128xf32> -> vector<8x128xf32>
      %232 = vector.broadcast %5 : vector<1x128xf32> to vector<8x128xf32>
      %233 = arith.addf %231, %232 : vector<8x128xf32>
      %234 = math.tanh %233 : vector<8x128xf32>
      %235 = arith.mulf %234, %211 : vector<8x128xf32>
      %cst_85 = arith.constant dense<0.000000e+00> : vector<8x32xf32>
      %236 = tpu.matmul %235, %1, %cst_85 {dimension_numbers = #tpu.dot_dimension_numbers<[1], [0], [0], [1], [0, 0, 1, 1], [], []>} : vector<8x128xf32>, vector<128x32xf32>, vector<8x32xf32> -> vector<8x32xf32>
      %cst_86 = arith.constant 6.250000e-02 : f32
      %237 = vector.broadcast %cst_86 : f32 to vector<8x32xf32>
      %238 = arith.mulf %237, %236 : vector<8x32xf32>
      %239 = arith.addf %200, %238 : vector<8x32xf32>
      %cst_87 = arith.constant dense<0.000000e+00> : vector<8x128xf32>
      %240 = tpu.matmul %239, %2, %cst_87 {dimension_numbers = #tpu.dot_dimension_numbers<[1], [0], [0], [1], [0, 0, 1, 1], [], []>} : vector<8x32xf32>, vector<32x128xf32>, vector<8x128xf32> -> vector<8x128xf32>
      %241 = vector.broadcast %3 : vector<1x128xf32> to vector<8x128xf32>
      %242 = arith.addf %240, %241 : vector<8x128xf32>
      %cst_88 = arith.constant 0.000000e+00 : f32
      %243 = vector.broadcast %cst_88 : f32 to vector<8x128xf32>
      %244 = arith.maximumf %242, %243 : vector<8x128xf32>
      %cst_89 = arith.constant dense<0.000000e+00> : vector<8x128xf32>
      %245 = tpu.matmul %244, %4, %cst_89 {dimension_numbers = #tpu.dot_dimension_numbers<[1], [0], [0], [1], [0, 0, 1, 1], [], []>} : vector<8x128xf32>, vector<128x128xf32>, vector<8x128xf32> -> vector<8x128xf32>
      %246 = vector.broadcast %5 : vector<1x128xf32> to vector<8x128xf32>
      %247 = arith.addf %245, %246 : vector<8x128xf32>
      %248 = math.tanh %247 : vector<8x128xf32>
      %249 = arith.mulf %248, %218 : vector<8x128xf32>
      %cst_90 = arith.constant dense<0.000000e+00> : vector<8x32xf32>
      %250 = tpu.matmul %249, %1, %cst_90 {dimension_numbers = #tpu.dot_dimension_numbers<[1], [0], [0], [1], [0, 0, 1, 1], [], []>} : vector<8x128xf32>, vector<128x32xf32>, vector<8x32xf32> -> vector<8x32xf32>
      %cst_91 = arith.constant 6.250000e-02 : f32
      %251 = vector.broadcast %cst_91 : f32 to vector<8x32xf32>
      %252 = arith.mulf %251, %250 : vector<8x32xf32>
      %253 = arith.addf %200, %252 : vector<8x32xf32>
      %cst_92 = arith.constant dense<0.000000e+00> : vector<8x128xf32>
      %254 = tpu.matmul %253, %2, %cst_92 {dimension_numbers = #tpu.dot_dimension_numbers<[1], [0], [0], [1], [0, 0, 1, 1], [], []>} : vector<8x32xf32>, vector<32x128xf32>, vector<8x128xf32> -> vector<8x128xf32>
      %255 = vector.broadcast %3 : vector<1x128xf32> to vector<8x128xf32>
      %256 = arith.addf %254, %255 : vector<8x128xf32>
      %cst_93 = arith.constant 0.000000e+00 : f32
      %257 = vector.broadcast %cst_93 : f32 to vector<8x128xf32>
      %258 = arith.maximumf %256, %257 : vector<8x128xf32>
      %cst_94 = arith.constant dense<0.000000e+00> : vector<8x128xf32>
      %259 = tpu.matmul %258, %4, %cst_94 {dimension_numbers = #tpu.dot_dimension_numbers<[1], [0], [0], [1], [0, 0, 1, 1], [], []>} : vector<8x128xf32>, vector<128x128xf32>, vector<8x128xf32> -> vector<8x128xf32>
      %260 = vector.broadcast %5 : vector<1x128xf32> to vector<8x128xf32>
      %261 = arith.addf %259, %260 : vector<8x128xf32>
      %262 = math.tanh %261 : vector<8x128xf32>
      %263 = arith.mulf %262, %218 : vector<8x128xf32>
      %cst_95 = arith.constant dense<0.000000e+00> : vector<8x32xf32>
      %264 = tpu.matmul %263, %1, %cst_95 {dimension_numbers = #tpu.dot_dimension_numbers<[1], [0], [0], [1], [0, 0, 1, 1], [], []>} : vector<8x128xf32>, vector<128x32xf32>, vector<8x32xf32> -> vector<8x32xf32>
      %cst_96 = arith.constant 1.250000e-01 : f32
      %265 = vector.broadcast %cst_96 : f32 to vector<8x32xf32>
      %266 = arith.mulf %265, %264 : vector<8x32xf32>
      %267 = arith.addf %200, %266 : vector<8x32xf32>
      %cst_97 = arith.constant dense<0.000000e+00> : vector<8x128xf32>
      %268 = tpu.matmul %267, %2, %cst_97 {dimension_numbers = #tpu.dot_dimension_numbers<[1], [0], [0], [1], [0, 0, 1, 1], [], []>} : vector<8x32xf32>, vector<32x128xf32>, vector<8x128xf32> -> vector<8x128xf32>
      %269 = vector.broadcast %3 : vector<1x128xf32> to vector<8x128xf32>
      %270 = arith.addf %268, %269 : vector<8x128xf32>
      %cst_98 = arith.constant 0.000000e+00 : f32
      %271 = vector.broadcast %cst_98 : f32 to vector<8x128xf32>
      %272 = arith.maximumf %270, %271 : vector<8x128xf32>
      %cst_99 = arith.constant dense<0.000000e+00> : vector<8x128xf32>
      %273 = tpu.matmul %272, %4, %cst_99 {dimension_numbers = #tpu.dot_dimension_numbers<[1], [0], [0], [1], [0, 0, 1, 1], [], []>} : vector<8x128xf32>, vector<128x128xf32>, vector<8x128xf32> -> vector<8x128xf32>
      %274 = vector.broadcast %5 : vector<1x128xf32> to vector<8x128xf32>
      %275 = arith.addf %273, %274 : vector<8x128xf32>
      %276 = math.tanh %275 : vector<8x128xf32>
      %277 = arith.mulf %276, %225 : vector<8x128xf32>
      %cst_100 = arith.constant dense<0.000000e+00> : vector<8x32xf32>
      %278 = tpu.matmul %277, %1, %cst_100 {dimension_numbers = #tpu.dot_dimension_numbers<[1], [0], [0], [1], [0, 0, 1, 1], [], []>} : vector<8x128xf32>, vector<128x32xf32>, vector<8x32xf32> -> vector<8x32xf32>
      %279 = arith.addf %250, %264 : vector<8x32xf32>
      %cst_101 = arith.constant 2.000000e+00 : f32
      %280 = vector.broadcast %cst_101 : f32 to vector<8x32xf32>
      %281 = arith.mulf %280, %279 : vector<8x32xf32>
      %282 = arith.addf %236, %281 : vector<8x32xf32>
      %283 = arith.addf %282, %278 : vector<8x32xf32>
      %cst_102 = arith.constant 0.020833334 : f32
      %284 = vector.broadcast %cst_102 : f32 to vector<8x32xf32>
      %285 = arith.mulf %284, %283 : vector<8x32xf32>
      %286 = arith.addf %200, %285 : vector<8x32xf32>
      %c3_i32 = arith.constant 3 : i32
      %287 = arith.sitofp %c3_i32 : i32 to f32
      %cst_103 = arith.constant 1.250000e-01 : f32
      %288 = arith.mulf %287, %cst_103 : f32
      %cst_104 = arith.constant 6.250000e-02 : f32
      %289 = arith.addf %288, %cst_104 : f32
      %cst_105 = arith.constant 1.250000e-01 : f32
      %290 = arith.addf %288, %cst_105 : f32
      %291 = vector.broadcast %288 : f32 to vector<8x128xf32>
      %292 = arith.mulf %27, %291 : vector<8x128xf32>
      %293 = arith.addf %26, %292 : vector<8x128xf32>
      %294 = arith.mulf %288, %288 : f32
      %295 = vector.broadcast %294 : f32 to vector<8x128xf32>
      %296 = arith.mulf %28, %295 : vector<8x128xf32>
      %297 = arith.addf %293, %296 : vector<8x128xf32>
      %298 = vector.broadcast %289 : f32 to vector<8x128xf32>
      %299 = arith.mulf %27, %298 : vector<8x128xf32>
      %300 = arith.addf %26, %299 : vector<8x128xf32>
      %301 = arith.mulf %289, %289 : f32
      %302 = vector.broadcast %301 : f32 to vector<8x128xf32>
      %303 = arith.mulf %28, %302 : vector<8x128xf32>
      %304 = arith.addf %300, %303 : vector<8x128xf32>
      %305 = vector.broadcast %290 : f32 to vector<8x128xf32>
      %306 = arith.mulf %27, %305 : vector<8x128xf32>
      %307 = arith.addf %26, %306 : vector<8x128xf32>
      %308 = arith.mulf %290, %290 : f32
      %309 = vector.broadcast %308 : f32 to vector<8x128xf32>
      %310 = arith.mulf %28, %309 : vector<8x128xf32>
      %311 = arith.addf %307, %310 : vector<8x128xf32>
      %cst_106 = arith.constant dense<0.000000e+00> : vector<8x128xf32>
      %312 = tpu.matmul %286, %2, %cst_106 {dimension_numbers = #tpu.dot_dimension_numbers<[1], [0], [0], [1], [0, 0, 1, 1], [], []>} : vector<8x32xf32>, vector<32x128xf32>, vector<8x128xf32> -> vector<8x128xf32>
      %313 = vector.broadcast %3 : vector<1x128xf32> to vector<8x128xf32>
      %314 = arith.addf %312, %313 : vector<8x128xf32>
      %cst_107 = arith.constant 0.000000e+00 : f32
      %315 = vector.broadcast %cst_107 : f32 to vector<8x128xf32>
      %316 = arith.maximumf %314, %315 : vector<8x128xf32>
      %cst_108 = arith.constant dense<0.000000e+00> : vector<8x128xf32>
      %317 = tpu.matmul %316, %4, %cst_108 {dimension_numbers = #tpu.dot_dimension_numbers<[1], [0], [0], [1], [0, 0, 1, 1], [], []>} : vector<8x128xf32>, vector<128x128xf32>, vector<8x128xf32> -> vector<8x128xf32>
      %318 = vector.broadcast %5 : vector<1x128xf32> to vector<8x128xf32>
      %319 = arith.addf %317, %318 : vector<8x128xf32>
      %320 = math.tanh %319 : vector<8x128xf32>
      %321 = arith.mulf %320, %297 : vector<8x128xf32>
      %cst_109 = arith.constant dense<0.000000e+00> : vector<8x32xf32>
      %322 = tpu.matmul %321, %1, %cst_109 {dimension_numbers = #tpu.dot_dimension_numbers<[1], [0], [0], [1], [0, 0, 1, 1], [], []>} : vector<8x128xf32>, vector<128x32xf32>, vector<8x32xf32> -> vector<8x32xf32>
      %cst_110 = arith.constant 6.250000e-02 : f32
      %323 = vector.broadcast %cst_110 : f32 to vector<8x32xf32>
      %324 = arith.mulf %323, %322 : vector<8x32xf32>
      %325 = arith.addf %286, %324 : vector<8x32xf32>
      %cst_111 = arith.constant dense<0.000000e+00> : vector<8x128xf32>
      %326 = tpu.matmul %325, %2, %cst_111 {dimension_numbers = #tpu.dot_dimension_numbers<[1], [0], [0], [1], [0, 0, 1, 1], [], []>} : vector<8x32xf32>, vector<32x128xf32>, vector<8x128xf32> -> vector<8x128xf32>
      %327 = vector.broadcast %3 : vector<1x128xf32> to vector<8x128xf32>
      %328 = arith.addf %326, %327 : vector<8x128xf32>
      %cst_112 = arith.constant 0.000000e+00 : f32
      %329 = vector.broadcast %cst_112 : f32 to vector<8x128xf32>
      %330 = arith.maximumf %328, %329 : vector<8x128xf32>
      %cst_113 = arith.constant dense<0.000000e+00> : vector<8x128xf32>
      %331 = tpu.matmul %330, %4, %cst_113 {dimension_numbers = #tpu.dot_dimension_numbers<[1], [0], [0], [1], [0, 0, 1, 1], [], []>} : vector<8x128xf32>, vector<128x128xf32>, vector<8x128xf32> -> vector<8x128xf32>
      %332 = vector.broadcast %5 : vector<1x128xf32> to vector<8x128xf32>
      %333 = arith.addf %331, %332 : vector<8x128xf32>
      %334 = math.tanh %333 : vector<8x128xf32>
      %335 = arith.mulf %334, %304 : vector<8x128xf32>
      %cst_114 = arith.constant dense<0.000000e+00> : vector<8x32xf32>
      %336 = tpu.matmul %335, %1, %cst_114 {dimension_numbers = #tpu.dot_dimension_numbers<[1], [0], [0], [1], [0, 0, 1, 1], [], []>} : vector<8x128xf32>, vector<128x32xf32>, vector<8x32xf32> -> vector<8x32xf32>
      %cst_115 = arith.constant 6.250000e-02 : f32
      %337 = vector.broadcast %cst_115 : f32 to vector<8x32xf32>
      %338 = arith.mulf %337, %336 : vector<8x32xf32>
      %339 = arith.addf %286, %338 : vector<8x32xf32>
      %cst_116 = arith.constant dense<0.000000e+00> : vector<8x128xf32>
      %340 = tpu.matmul %339, %2, %cst_116 {dimension_numbers = #tpu.dot_dimension_numbers<[1], [0], [0], [1], [0, 0, 1, 1], [], []>} : vector<8x32xf32>, vector<32x128xf32>, vector<8x128xf32> -> vector<8x128xf32>
      %341 = vector.broadcast %3 : vector<1x128xf32> to vector<8x128xf32>
      %342 = arith.addf %340, %341 : vector<8x128xf32>
      %cst_117 = arith.constant 0.000000e+00 : f32
      %343 = vector.broadcast %cst_117 : f32 to vector<8x128xf32>
      %344 = arith.maximumf %342, %343 : vector<8x128xf32>
      %cst_118 = arith.constant dense<0.000000e+00> : vector<8x128xf32>
      %345 = tpu.matmul %344, %4, %cst_118 {dimension_numbers = #tpu.dot_dimension_numbers<[1], [0], [0], [1], [0, 0, 1, 1], [], []>} : vector<8x128xf32>, vector<128x128xf32>, vector<8x128xf32> -> vector<8x128xf32>
      %346 = vector.broadcast %5 : vector<1x128xf32> to vector<8x128xf32>
      %347 = arith.addf %345, %346 : vector<8x128xf32>
      %348 = math.tanh %347 : vector<8x128xf32>
      %349 = arith.mulf %348, %304 : vector<8x128xf32>
      %cst_119 = arith.constant dense<0.000000e+00> : vector<8x32xf32>
      %350 = tpu.matmul %349, %1, %cst_119 {dimension_numbers = #tpu.dot_dimension_numbers<[1], [0], [0], [1], [0, 0, 1, 1], [], []>} : vector<8x128xf32>, vector<128x32xf32>, vector<8x32xf32> -> vector<8x32xf32>
      %cst_120 = arith.constant 1.250000e-01 : f32
      %351 = vector.broadcast %cst_120 : f32 to vector<8x32xf32>
      %352 = arith.mulf %351, %350 : vector<8x32xf32>
      %353 = arith.addf %286, %352 : vector<8x32xf32>
      %cst_121 = arith.constant dense<0.000000e+00> : vector<8x128xf32>
      %354 = tpu.matmul %353, %2, %cst_121 {dimension_numbers = #tpu.dot_dimension_numbers<[1], [0], [0], [1], [0, 0, 1, 1], [], []>} : vector<8x32xf32>, vector<32x128xf32>, vector<8x128xf32> -> vector<8x128xf32>
      %355 = vector.broadcast %3 : vector<1x128xf32> to vector<8x128xf32>
      %356 = arith.addf %354, %355 : vector<8x128xf32>
      %cst_122 = arith.constant 0.000000e+00 : f32
      %357 = vector.broadcast %cst_122 : f32 to vector<8x128xf32>
      %358 = arith.maximumf %356, %357 : vector<8x128xf32>
      %cst_123 = arith.constant dense<0.000000e+00> : vector<8x128xf32>
      %359 = tpu.matmul %358, %4, %cst_123 {dimension_numbers = #tpu.dot_dimension_numbers<[1], [0], [0], [1], [0, 0, 1, 1], [], []>} : vector<8x128xf32>, vector<128x128xf32>, vector<8x128xf32> -> vector<8x128xf32>
      %360 = vector.broadcast %5 : vector<1x128xf32> to vector<8x128xf32>
      %361 = arith.addf %359, %360 : vector<8x128xf32>
      %362 = math.tanh %361 : vector<8x128xf32>
      %363 = arith.mulf %362, %311 : vector<8x128xf32>
      %cst_124 = arith.constant dense<0.000000e+00> : vector<8x32xf32>
      %364 = tpu.matmul %363, %1, %cst_124 {dimension_numbers = #tpu.dot_dimension_numbers<[1], [0], [0], [1], [0, 0, 1, 1], [], []>} : vector<8x128xf32>, vector<128x32xf32>, vector<8x32xf32> -> vector<8x32xf32>
      %365 = arith.addf %336, %350 : vector<8x32xf32>
      %cst_125 = arith.constant 2.000000e+00 : f32
      %366 = vector.broadcast %cst_125 : f32 to vector<8x32xf32>
      %367 = arith.mulf %366, %365 : vector<8x32xf32>
      %368 = arith.addf %322, %367 : vector<8x32xf32>
      %369 = arith.addf %368, %364 : vector<8x32xf32>
      %cst_126 = arith.constant 0.020833334 : f32
      %370 = vector.broadcast %cst_126 : f32 to vector<8x32xf32>
      %371 = arith.mulf %370, %369 : vector<8x32xf32>
      %372 = arith.addf %286, %371 : vector<8x32xf32>
      %c4_i32 = arith.constant 4 : i32
      %373 = arith.sitofp %c4_i32 : i32 to f32
      %cst_127 = arith.constant 1.250000e-01 : f32
      %374 = arith.mulf %373, %cst_127 : f32
      %cst_128 = arith.constant 6.250000e-02 : f32
      %375 = arith.addf %374, %cst_128 : f32
      %cst_129 = arith.constant 1.250000e-01 : f32
      %376 = arith.addf %374, %cst_129 : f32
      %377 = vector.broadcast %374 : f32 to vector<8x128xf32>
      %378 = arith.mulf %27, %377 : vector<8x128xf32>
      %379 = arith.addf %26, %378 : vector<8x128xf32>
      %380 = arith.mulf %374, %374 : f32
      %381 = vector.broadcast %380 : f32 to vector<8x128xf32>
      %382 = arith.mulf %28, %381 : vector<8x128xf32>
      %383 = arith.addf %379, %382 : vector<8x128xf32>
      %384 = vector.broadcast %375 : f32 to vector<8x128xf32>
      %385 = arith.mulf %27, %384 : vector<8x128xf32>
      %386 = arith.addf %26, %385 : vector<8x128xf32>
      %387 = arith.mulf %375, %375 : f32
      %388 = vector.broadcast %387 : f32 to vector<8x128xf32>
      %389 = arith.mulf %28, %388 : vector<8x128xf32>
      %390 = arith.addf %386, %389 : vector<8x128xf32>
      %391 = vector.broadcast %376 : f32 to vector<8x128xf32>
      %392 = arith.mulf %27, %391 : vector<8x128xf32>
      %393 = arith.addf %26, %392 : vector<8x128xf32>
      %394 = arith.mulf %376, %376 : f32
      %395 = vector.broadcast %394 : f32 to vector<8x128xf32>
      %396 = arith.mulf %28, %395 : vector<8x128xf32>
      %397 = arith.addf %393, %396 : vector<8x128xf32>
      %cst_130 = arith.constant dense<0.000000e+00> : vector<8x128xf32>
      %398 = tpu.matmul %372, %2, %cst_130 {dimension_numbers = #tpu.dot_dimension_numbers<[1], [0], [0], [1], [0, 0, 1, 1], [], []>} : vector<8x32xf32>, vector<32x128xf32>, vector<8x128xf32> -> vector<8x128xf32>
      %399 = vector.broadcast %3 : vector<1x128xf32> to vector<8x128xf32>
      %400 = arith.addf %398, %399 : vector<8x128xf32>
      %cst_131 = arith.constant 0.000000e+00 : f32
      %401 = vector.broadcast %cst_131 : f32 to vector<8x128xf32>
      %402 = arith.maximumf %400, %401 : vector<8x128xf32>
      %cst_132 = arith.constant dense<0.000000e+00> : vector<8x128xf32>
      %403 = tpu.matmul %402, %4, %cst_132 {dimension_numbers = #tpu.dot_dimension_numbers<[1], [0], [0], [1], [0, 0, 1, 1], [], []>} : vector<8x128xf32>, vector<128x128xf32>, vector<8x128xf32> -> vector<8x128xf32>
      %404 = vector.broadcast %5 : vector<1x128xf32> to vector<8x128xf32>
      %405 = arith.addf %403, %404 : vector<8x128xf32>
      %406 = math.tanh %405 : vector<8x128xf32>
      %407 = arith.mulf %406, %383 : vector<8x128xf32>
      %cst_133 = arith.constant dense<0.000000e+00> : vector<8x32xf32>
      %408 = tpu.matmul %407, %1, %cst_133 {dimension_numbers = #tpu.dot_dimension_numbers<[1], [0], [0], [1], [0, 0, 1, 1], [], []>} : vector<8x128xf32>, vector<128x32xf32>, vector<8x32xf32> -> vector<8x32xf32>
      %cst_134 = arith.constant 6.250000e-02 : f32
      %409 = vector.broadcast %cst_134 : f32 to vector<8x32xf32>
      %410 = arith.mulf %409, %408 : vector<8x32xf32>
      %411 = arith.addf %372, %410 : vector<8x32xf32>
      %cst_135 = arith.constant dense<0.000000e+00> : vector<8x128xf32>
      %412 = tpu.matmul %411, %2, %cst_135 {dimension_numbers = #tpu.dot_dimension_numbers<[1], [0], [0], [1], [0, 0, 1, 1], [], []>} : vector<8x32xf32>, vector<32x128xf32>, vector<8x128xf32> -> vector<8x128xf32>
      %413 = vector.broadcast %3 : vector<1x128xf32> to vector<8x128xf32>
      %414 = arith.addf %412, %413 : vector<8x128xf32>
      %cst_136 = arith.constant 0.000000e+00 : f32
      %415 = vector.broadcast %cst_136 : f32 to vector<8x128xf32>
      %416 = arith.maximumf %414, %415 : vector<8x128xf32>
      %cst_137 = arith.constant dense<0.000000e+00> : vector<8x128xf32>
      %417 = tpu.matmul %416, %4, %cst_137 {dimension_numbers = #tpu.dot_dimension_numbers<[1], [0], [0], [1], [0, 0, 1, 1], [], []>} : vector<8x128xf32>, vector<128x128xf32>, vector<8x128xf32> -> vector<8x128xf32>
      %418 = vector.broadcast %5 : vector<1x128xf32> to vector<8x128xf32>
      %419 = arith.addf %417, %418 : vector<8x128xf32>
      %420 = math.tanh %419 : vector<8x128xf32>
      %421 = arith.mulf %420, %390 : vector<8x128xf32>
      %cst_138 = arith.constant dense<0.000000e+00> : vector<8x32xf32>
      %422 = tpu.matmul %421, %1, %cst_138 {dimension_numbers = #tpu.dot_dimension_numbers<[1], [0], [0], [1], [0, 0, 1, 1], [], []>} : vector<8x128xf32>, vector<128x32xf32>, vector<8x32xf32> -> vector<8x32xf32>
      %cst_139 = arith.constant 6.250000e-02 : f32
      %423 = vector.broadcast %cst_139 : f32 to vector<8x32xf32>
      %424 = arith.mulf %423, %422 : vector<8x32xf32>
      %425 = arith.addf %372, %424 : vector<8x32xf32>
      %cst_140 = arith.constant dense<0.000000e+00> : vector<8x128xf32>
      %426 = tpu.matmul %425, %2, %cst_140 {dimension_numbers = #tpu.dot_dimension_numbers<[1], [0], [0], [1], [0, 0, 1, 1], [], []>} : vector<8x32xf32>, vector<32x128xf32>, vector<8x128xf32> -> vector<8x128xf32>
      %427 = vector.broadcast %3 : vector<1x128xf32> to vector<8x128xf32>
      %428 = arith.addf %426, %427 : vector<8x128xf32>
      %cst_141 = arith.constant 0.000000e+00 : f32
      %429 = vector.broadcast %cst_141 : f32 to vector<8x128xf32>
      %430 = arith.maximumf %428, %429 : vector<8x128xf32>
      %cst_142 = arith.constant dense<0.000000e+00> : vector<8x128xf32>
      %431 = tpu.matmul %430, %4, %cst_142 {dimension_numbers = #tpu.dot_dimension_numbers<[1], [0], [0], [1], [0, 0, 1, 1], [], []>} : vector<8x128xf32>, vector<128x128xf32>, vector<8x128xf32> -> vector<8x128xf32>
      %432 = vector.broadcast %5 : vector<1x128xf32> to vector<8x128xf32>
      %433 = arith.addf %431, %432 : vector<8x128xf32>
      %434 = math.tanh %433 : vector<8x128xf32>
      %435 = arith.mulf %434, %390 : vector<8x128xf32>
      %cst_143 = arith.constant dense<0.000000e+00> : vector<8x32xf32>
      %436 = tpu.matmul %435, %1, %cst_143 {dimension_numbers = #tpu.dot_dimension_numbers<[1], [0], [0], [1], [0, 0, 1, 1], [], []>} : vector<8x128xf32>, vector<128x32xf32>, vector<8x32xf32> -> vector<8x32xf32>
      %cst_144 = arith.constant 1.250000e-01 : f32
      %437 = vector.broadcast %cst_144 : f32 to vector<8x32xf32>
      %438 = arith.mulf %437, %436 : vector<8x32xf32>
      %439 = arith.addf %372, %438 : vector<8x32xf32>
      %cst_145 = arith.constant dense<0.000000e+00> : vector<8x128xf32>
      %440 = tpu.matmul %439, %2, %cst_145 {dimension_numbers = #tpu.dot_dimension_numbers<[1], [0], [0], [1], [0, 0, 1, 1], [], []>} : vector<8x32xf32>, vector<32x128xf32>, vector<8x128xf32> -> vector<8x128xf32>
      %441 = vector.broadcast %3 : vector<1x128xf32> to vector<8x128xf32>
      %442 = arith.addf %440, %441 : vector<8x128xf32>
      %cst_146 = arith.constant 0.000000e+00 : f32
      %443 = vector.broadcast %cst_146 : f32 to vector<8x128xf32>
      %444 = arith.maximumf %442, %443 : vector<8x128xf32>
      %cst_147 = arith.constant dense<0.000000e+00> : vector<8x128xf32>
      %445 = tpu.matmul %444, %4, %cst_147 {dimension_numbers = #tpu.dot_dimension_numbers<[1], [0], [0], [1], [0, 0, 1, 1], [], []>} : vector<8x128xf32>, vector<128x128xf32>, vector<8x128xf32> -> vector<8x128xf32>
      %446 = vector.broadcast %5 : vector<1x128xf32> to vector<8x128xf32>
      %447 = arith.addf %445, %446 : vector<8x128xf32>
      %448 = math.tanh %447 : vector<8x128xf32>
      %449 = arith.mulf %448, %397 : vector<8x128xf32>
      %cst_148 = arith.constant dense<0.000000e+00> : vector<8x32xf32>
      %450 = tpu.matmul %449, %1, %cst_148 {dimension_numbers = #tpu.dot_dimension_numbers<[1], [0], [0], [1], [0, 0, 1, 1], [], []>} : vector<8x128xf32>, vector<128x32xf32>, vector<8x32xf32> -> vector<8x32xf32>
      %451 = arith.addf %422, %436 : vector<8x32xf32>
      %cst_149 = arith.constant 2.000000e+00 : f32
      %452 = vector.broadcast %cst_149 : f32 to vector<8x32xf32>
      %453 = arith.mulf %452, %451 : vector<8x32xf32>
      %454 = arith.addf %408, %453 : vector<8x32xf32>
      %455 = arith.addf %454, %450 : vector<8x32xf32>
      %cst_150 = arith.constant 0.020833334 : f32
      %456 = vector.broadcast %cst_150 : f32 to vector<8x32xf32>
      %457 = arith.mulf %456, %455 : vector<8x32xf32>
      %458 = arith.addf %372, %457 : vector<8x32xf32>
      %c5_i32 = arith.constant 5 : i32
      %459 = arith.sitofp %c5_i32 : i32 to f32
      %cst_151 = arith.constant 1.250000e-01 : f32
      %460 = arith.mulf %459, %cst_151 : f32
      %cst_152 = arith.constant 6.250000e-02 : f32
      %461 = arith.addf %460, %cst_152 : f32
      %cst_153 = arith.constant 1.250000e-01 : f32
      %462 = arith.addf %460, %cst_153 : f32
      %463 = vector.broadcast %460 : f32 to vector<8x128xf32>
      %464 = arith.mulf %27, %463 : vector<8x128xf32>
      %465 = arith.addf %26, %464 : vector<8x128xf32>
      %466 = arith.mulf %460, %460 : f32
      %467 = vector.broadcast %466 : f32 to vector<8x128xf32>
      %468 = arith.mulf %28, %467 : vector<8x128xf32>
      %469 = arith.addf %465, %468 : vector<8x128xf32>
      %470 = vector.broadcast %461 : f32 to vector<8x128xf32>
      %471 = arith.mulf %27, %470 : vector<8x128xf32>
      %472 = arith.addf %26, %471 : vector<8x128xf32>
      %473 = arith.mulf %461, %461 : f32
      %474 = vector.broadcast %473 : f32 to vector<8x128xf32>
      %475 = arith.mulf %28, %474 : vector<8x128xf32>
      %476 = arith.addf %472, %475 : vector<8x128xf32>
      %477 = vector.broadcast %462 : f32 to vector<8x128xf32>
      %478 = arith.mulf %27, %477 : vector<8x128xf32>
      %479 = arith.addf %26, %478 : vector<8x128xf32>
      %480 = arith.mulf %462, %462 : f32
      %481 = vector.broadcast %480 : f32 to vector<8x128xf32>
      %482 = arith.mulf %28, %481 : vector<8x128xf32>
      %483 = arith.addf %479, %482 : vector<8x128xf32>
      %cst_154 = arith.constant dense<0.000000e+00> : vector<8x128xf32>
      %484 = tpu.matmul %458, %2, %cst_154 {dimension_numbers = #tpu.dot_dimension_numbers<[1], [0], [0], [1], [0, 0, 1, 1], [], []>} : vector<8x32xf32>, vector<32x128xf32>, vector<8x128xf32> -> vector<8x128xf32>
      %485 = vector.broadcast %3 : vector<1x128xf32> to vector<8x128xf32>
      %486 = arith.addf %484, %485 : vector<8x128xf32>
      %cst_155 = arith.constant 0.000000e+00 : f32
      %487 = vector.broadcast %cst_155 : f32 to vector<8x128xf32>
      %488 = arith.maximumf %486, %487 : vector<8x128xf32>
      %cst_156 = arith.constant dense<0.000000e+00> : vector<8x128xf32>
      %489 = tpu.matmul %488, %4, %cst_156 {dimension_numbers = #tpu.dot_dimension_numbers<[1], [0], [0], [1], [0, 0, 1, 1], [], []>} : vector<8x128xf32>, vector<128x128xf32>, vector<8x128xf32> -> vector<8x128xf32>
      %490 = vector.broadcast %5 : vector<1x128xf32> to vector<8x128xf32>
      %491 = arith.addf %489, %490 : vector<8x128xf32>
      %492 = math.tanh %491 : vector<8x128xf32>
      %493 = arith.mulf %492, %469 : vector<8x128xf32>
      %cst_157 = arith.constant dense<0.000000e+00> : vector<8x32xf32>
      %494 = tpu.matmul %493, %1, %cst_157 {dimension_numbers = #tpu.dot_dimension_numbers<[1], [0], [0], [1], [0, 0, 1, 1], [], []>} : vector<8x128xf32>, vector<128x32xf32>, vector<8x32xf32> -> vector<8x32xf32>
      %cst_158 = arith.constant 6.250000e-02 : f32
      %495 = vector.broadcast %cst_158 : f32 to vector<8x32xf32>
      %496 = arith.mulf %495, %494 : vector<8x32xf32>
      %497 = arith.addf %458, %496 : vector<8x32xf32>
      %cst_159 = arith.constant dense<0.000000e+00> : vector<8x128xf32>
      %498 = tpu.matmul %497, %2, %cst_159 {dimension_numbers = #tpu.dot_dimension_numbers<[1], [0], [0], [1], [0, 0, 1, 1], [], []>} : vector<8x32xf32>, vector<32x128xf32>, vector<8x128xf32> -> vector<8x128xf32>
      %499 = vector.broadcast %3 : vector<1x128xf32> to vector<8x128xf32>
      %500 = arith.addf %498, %499 : vector<8x128xf32>
      %cst_160 = arith.constant 0.000000e+00 : f32
      %501 = vector.broadcast %cst_160 : f32 to vector<8x128xf32>
      %502 = arith.maximumf %500, %501 : vector<8x128xf32>
      %cst_161 = arith.constant dense<0.000000e+00> : vector<8x128xf32>
      %503 = tpu.matmul %502, %4, %cst_161 {dimension_numbers = #tpu.dot_dimension_numbers<[1], [0], [0], [1], [0, 0, 1, 1], [], []>} : vector<8x128xf32>, vector<128x128xf32>, vector<8x128xf32> -> vector<8x128xf32>
      %504 = vector.broadcast %5 : vector<1x128xf32> to vector<8x128xf32>
      %505 = arith.addf %503, %504 : vector<8x128xf32>
      %506 = math.tanh %505 : vector<8x128xf32>
      %507 = arith.mulf %506, %476 : vector<8x128xf32>
      %cst_162 = arith.constant dense<0.000000e+00> : vector<8x32xf32>
      %508 = tpu.matmul %507, %1, %cst_162 {dimension_numbers = #tpu.dot_dimension_numbers<[1], [0], [0], [1], [0, 0, 1, 1], [], []>} : vector<8x128xf32>, vector<128x32xf32>, vector<8x32xf32> -> vector<8x32xf32>
      %cst_163 = arith.constant 6.250000e-02 : f32
      %509 = vector.broadcast %cst_163 : f32 to vector<8x32xf32>
      %510 = arith.mulf %509, %508 : vector<8x32xf32>
      %511 = arith.addf %458, %510 : vector<8x32xf32>
      %cst_164 = arith.constant dense<0.000000e+00> : vector<8x128xf32>
      %512 = tpu.matmul %511, %2, %cst_164 {dimension_numbers = #tpu.dot_dimension_numbers<[1], [0], [0], [1], [0, 0, 1, 1], [], []>} : vector<8x32xf32>, vector<32x128xf32>, vector<8x128xf32> -> vector<8x128xf32>
      %513 = vector.broadcast %3 : vector<1x128xf32> to vector<8x128xf32>
      %514 = arith.addf %512, %513 : vector<8x128xf32>
      %cst_165 = arith.constant 0.000000e+00 : f32
      %515 = vector.broadcast %cst_165 : f32 to vector<8x128xf32>
      %516 = arith.maximumf %514, %515 : vector<8x128xf32>
      %cst_166 = arith.constant dense<0.000000e+00> : vector<8x128xf32>
      %517 = tpu.matmul %516, %4, %cst_166 {dimension_numbers = #tpu.dot_dimension_numbers<[1], [0], [0], [1], [0, 0, 1, 1], [], []>} : vector<8x128xf32>, vector<128x128xf32>, vector<8x128xf32> -> vector<8x128xf32>
      %518 = vector.broadcast %5 : vector<1x128xf32> to vector<8x128xf32>
      %519 = arith.addf %517, %518 : vector<8x128xf32>
      %520 = math.tanh %519 : vector<8x128xf32>
      %521 = arith.mulf %520, %476 : vector<8x128xf32>
      %cst_167 = arith.constant dense<0.000000e+00> : vector<8x32xf32>
      %522 = tpu.matmul %521, %1, %cst_167 {dimension_numbers = #tpu.dot_dimension_numbers<[1], [0], [0], [1], [0, 0, 1, 1], [], []>} : vector<8x128xf32>, vector<128x32xf32>, vector<8x32xf32> -> vector<8x32xf32>
      %cst_168 = arith.constant 1.250000e-01 : f32
      %523 = vector.broadcast %cst_168 : f32 to vector<8x32xf32>
      %524 = arith.mulf %523, %522 : vector<8x32xf32>
      %525 = arith.addf %458, %524 : vector<8x32xf32>
      %cst_169 = arith.constant dense<0.000000e+00> : vector<8x128xf32>
      %526 = tpu.matmul %525, %2, %cst_169 {dimension_numbers = #tpu.dot_dimension_numbers<[1], [0], [0], [1], [0, 0, 1, 1], [], []>} : vector<8x32xf32>, vector<32x128xf32>, vector<8x128xf32> -> vector<8x128xf32>
      %527 = vector.broadcast %3 : vector<1x128xf32> to vector<8x128xf32>
      %528 = arith.addf %526, %527 : vector<8x128xf32>
      %cst_170 = arith.constant 0.000000e+00 : f32
      %529 = vector.broadcast %cst_170 : f32 to vector<8x128xf32>
      %530 = arith.maximumf %528, %529 : vector<8x128xf32>
      %cst_171 = arith.constant dense<0.000000e+00> : vector<8x128xf32>
      %531 = tpu.matmul %530, %4, %cst_171 {dimension_numbers = #tpu.dot_dimension_numbers<[1], [0], [0], [1], [0, 0, 1, 1], [], []>} : vector<8x128xf32>, vector<128x128xf32>, vector<8x128xf32> -> vector<8x128xf32>
      %532 = vector.broadcast %5 : vector<1x128xf32> to vector<8x128xf32>
      %533 = arith.addf %531, %532 : vector<8x128xf32>
      %534 = math.tanh %533 : vector<8x128xf32>
      %535 = arith.mulf %534, %483 : vector<8x128xf32>
      %cst_172 = arith.constant dense<0.000000e+00> : vector<8x32xf32>
      %536 = tpu.matmul %535, %1, %cst_172 {dimension_numbers = #tpu.dot_dimension_numbers<[1], [0], [0], [1], [0, 0, 1, 1], [], []>} : vector<8x128xf32>, vector<128x32xf32>, vector<8x32xf32> -> vector<8x32xf32>
      %537 = arith.addf %508, %522 : vector<8x32xf32>
      %cst_173 = arith.constant 2.000000e+00 : f32
      %538 = vector.broadcast %cst_173 : f32 to vector<8x32xf32>
      %539 = arith.mulf %538, %537 : vector<8x32xf32>
      %540 = arith.addf %494, %539 : vector<8x32xf32>
      %541 = arith.addf %540, %536 : vector<8x32xf32>
      %cst_174 = arith.constant 0.020833334 : f32
      %542 = vector.broadcast %cst_174 : f32 to vector<8x32xf32>
      %543 = arith.mulf %542, %541 : vector<8x32xf32>
      %544 = arith.addf %458, %543 : vector<8x32xf32>
      %c6_i32 = arith.constant 6 : i32
      %545 = arith.sitofp %c6_i32 : i32 to f32
      %cst_175 = arith.constant 1.250000e-01 : f32
      %546 = arith.mulf %545, %cst_175 : f32
      %cst_176 = arith.constant 6.250000e-02 : f32
      %547 = arith.addf %546, %cst_176 : f32
      %cst_177 = arith.constant 1.250000e-01 : f32
      %548 = arith.addf %546, %cst_177 : f32
      %549 = vector.broadcast %546 : f32 to vector<8x128xf32>
      %550 = arith.mulf %27, %549 : vector<8x128xf32>
      %551 = arith.addf %26, %550 : vector<8x128xf32>
      %552 = arith.mulf %546, %546 : f32
      %553 = vector.broadcast %552 : f32 to vector<8x128xf32>
      %554 = arith.mulf %28, %553 : vector<8x128xf32>
      %555 = arith.addf %551, %554 : vector<8x128xf32>
      %556 = vector.broadcast %547 : f32 to vector<8x128xf32>
      %557 = arith.mulf %27, %556 : vector<8x128xf32>
      %558 = arith.addf %26, %557 : vector<8x128xf32>
      %559 = arith.mulf %547, %547 : f32
      %560 = vector.broadcast %559 : f32 to vector<8x128xf32>
      %561 = arith.mulf %28, %560 : vector<8x128xf32>
      %562 = arith.addf %558, %561 : vector<8x128xf32>
      %563 = vector.broadcast %548 : f32 to vector<8x128xf32>
      %564 = arith.mulf %27, %563 : vector<8x128xf32>
      %565 = arith.addf %26, %564 : vector<8x128xf32>
      %566 = arith.mulf %548, %548 : f32
      %567 = vector.broadcast %566 : f32 to vector<8x128xf32>
      %568 = arith.mulf %28, %567 : vector<8x128xf32>
      %569 = arith.addf %565, %568 : vector<8x128xf32>
      %cst_178 = arith.constant dense<0.000000e+00> : vector<8x128xf32>
      %570 = tpu.matmul %544, %2, %cst_178 {dimension_numbers = #tpu.dot_dimension_numbers<[1], [0], [0], [1], [0, 0, 1, 1], [], []>} : vector<8x32xf32>, vector<32x128xf32>, vector<8x128xf32> -> vector<8x128xf32>
      %571 = vector.broadcast %3 : vector<1x128xf32> to vector<8x128xf32>
      %572 = arith.addf %570, %571 : vector<8x128xf32>
      %cst_179 = arith.constant 0.000000e+00 : f32
      %573 = vector.broadcast %cst_179 : f32 to vector<8x128xf32>
      %574 = arith.maximumf %572, %573 : vector<8x128xf32>
      %cst_180 = arith.constant dense<0.000000e+00> : vector<8x128xf32>
      %575 = tpu.matmul %574, %4, %cst_180 {dimension_numbers = #tpu.dot_dimension_numbers<[1], [0], [0], [1], [0, 0, 1, 1], [], []>} : vector<8x128xf32>, vector<128x128xf32>, vector<8x128xf32> -> vector<8x128xf32>
      %576 = vector.broadcast %5 : vector<1x128xf32> to vector<8x128xf32>
      %577 = arith.addf %575, %576 : vector<8x128xf32>
      %578 = math.tanh %577 : vector<8x128xf32>
      %579 = arith.mulf %578, %555 : vector<8x128xf32>
      %cst_181 = arith.constant dense<0.000000e+00> : vector<8x32xf32>
      %580 = tpu.matmul %579, %1, %cst_181 {dimension_numbers = #tpu.dot_dimension_numbers<[1], [0], [0], [1], [0, 0, 1, 1], [], []>} : vector<8x128xf32>, vector<128x32xf32>, vector<8x32xf32> -> vector<8x32xf32>
      %cst_182 = arith.constant 6.250000e-02 : f32
      %581 = vector.broadcast %cst_182 : f32 to vector<8x32xf32>
      %582 = arith.mulf %581, %580 : vector<8x32xf32>
      %583 = arith.addf %544, %582 : vector<8x32xf32>
      %cst_183 = arith.constant dense<0.000000e+00> : vector<8x128xf32>
      %584 = tpu.matmul %583, %2, %cst_183 {dimension_numbers = #tpu.dot_dimension_numbers<[1], [0], [0], [1], [0, 0, 1, 1], [], []>} : vector<8x32xf32>, vector<32x128xf32>, vector<8x128xf32> -> vector<8x128xf32>
      %585 = vector.broadcast %3 : vector<1x128xf32> to vector<8x128xf32>
      %586 = arith.addf %584, %585 : vector<8x128xf32>
      %cst_184 = arith.constant 0.000000e+00 : f32
      %587 = vector.broadcast %cst_184 : f32 to vector<8x128xf32>
      %588 = arith.maximumf %586, %587 : vector<8x128xf32>
      %cst_185 = arith.constant dense<0.000000e+00> : vector<8x128xf32>
      %589 = tpu.matmul %588, %4, %cst_185 {dimension_numbers = #tpu.dot_dimension_numbers<[1], [0], [0], [1], [0, 0, 1, 1], [], []>} : vector<8x128xf32>, vector<128x128xf32>, vector<8x128xf32> -> vector<8x128xf32>
      %590 = vector.broadcast %5 : vector<1x128xf32> to vector<8x128xf32>
      %591 = arith.addf %589, %590 : vector<8x128xf32>
      %592 = math.tanh %591 : vector<8x128xf32>
      %593 = arith.mulf %592, %562 : vector<8x128xf32>
      %cst_186 = arith.constant dense<0.000000e+00> : vector<8x32xf32>
      %594 = tpu.matmul %593, %1, %cst_186 {dimension_numbers = #tpu.dot_dimension_numbers<[1], [0], [0], [1], [0, 0, 1, 1], [], []>} : vector<8x128xf32>, vector<128x32xf32>, vector<8x32xf32> -> vector<8x32xf32>
      %cst_187 = arith.constant 6.250000e-02 : f32
      %595 = vector.broadcast %cst_187 : f32 to vector<8x32xf32>
      %596 = arith.mulf %595, %594 : vector<8x32xf32>
      %597 = arith.addf %544, %596 : vector<8x32xf32>
      %cst_188 = arith.constant dense<0.000000e+00> : vector<8x128xf32>
      %598 = tpu.matmul %597, %2, %cst_188 {dimension_numbers = #tpu.dot_dimension_numbers<[1], [0], [0], [1], [0, 0, 1, 1], [], []>} : vector<8x32xf32>, vector<32x128xf32>, vector<8x128xf32> -> vector<8x128xf32>
      %599 = vector.broadcast %3 : vector<1x128xf32> to vector<8x128xf32>
      %600 = arith.addf %598, %599 : vector<8x128xf32>
      %cst_189 = arith.constant 0.000000e+00 : f32
      %601 = vector.broadcast %cst_189 : f32 to vector<8x128xf32>
      %602 = arith.maximumf %600, %601 : vector<8x128xf32>
      %cst_190 = arith.constant dense<0.000000e+00> : vector<8x128xf32>
      %603 = tpu.matmul %602, %4, %cst_190 {dimension_numbers = #tpu.dot_dimension_numbers<[1], [0], [0], [1], [0, 0, 1, 1], [], []>} : vector<8x128xf32>, vector<128x128xf32>, vector<8x128xf32> -> vector<8x128xf32>
      %604 = vector.broadcast %5 : vector<1x128xf32> to vector<8x128xf32>
      %605 = arith.addf %603, %604 : vector<8x128xf32>
      %606 = math.tanh %605 : vector<8x128xf32>
      %607 = arith.mulf %606, %562 : vector<8x128xf32>
      %cst_191 = arith.constant dense<0.000000e+00> : vector<8x32xf32>
      %608 = tpu.matmul %607, %1, %cst_191 {dimension_numbers = #tpu.dot_dimension_numbers<[1], [0], [0], [1], [0, 0, 1, 1], [], []>} : vector<8x128xf32>, vector<128x32xf32>, vector<8x32xf32> -> vector<8x32xf32>
      %cst_192 = arith.constant 1.250000e-01 : f32
      %609 = vector.broadcast %cst_192 : f32 to vector<8x32xf32>
      %610 = arith.mulf %609, %608 : vector<8x32xf32>
      %611 = arith.addf %544, %610 : vector<8x32xf32>
      %cst_193 = arith.constant dense<0.000000e+00> : vector<8x128xf32>
      %612 = tpu.matmul %611, %2, %cst_193 {dimension_numbers = #tpu.dot_dimension_numbers<[1], [0], [0], [1], [0, 0, 1, 1], [], []>} : vector<8x32xf32>, vector<32x128xf32>, vector<8x128xf32> -> vector<8x128xf32>
      %613 = vector.broadcast %3 : vector<1x128xf32> to vector<8x128xf32>
      %614 = arith.addf %612, %613 : vector<8x128xf32>
      %cst_194 = arith.constant 0.000000e+00 : f32
      %615 = vector.broadcast %cst_194 : f32 to vector<8x128xf32>
      %616 = arith.maximumf %614, %615 : vector<8x128xf32>
      %cst_195 = arith.constant dense<0.000000e+00> : vector<8x128xf32>
      %617 = tpu.matmul %616, %4, %cst_195 {dimension_numbers = #tpu.dot_dimension_numbers<[1], [0], [0], [1], [0, 0, 1, 1], [], []>} : vector<8x128xf32>, vector<128x128xf32>, vector<8x128xf32> -> vector<8x128xf32>
      %618 = vector.broadcast %5 : vector<1x128xf32> to vector<8x128xf32>
      %619 = arith.addf %617, %618 : vector<8x128xf32>
      %620 = math.tanh %619 : vector<8x128xf32>
      %621 = arith.mulf %620, %569 : vector<8x128xf32>
      %cst_196 = arith.constant dense<0.000000e+00> : vector<8x32xf32>
      %622 = tpu.matmul %621, %1, %cst_196 {dimension_numbers = #tpu.dot_dimension_numbers<[1], [0], [0], [1], [0, 0, 1, 1], [], []>} : vector<8x128xf32>, vector<128x32xf32>, vector<8x32xf32> -> vector<8x32xf32>
      %623 = arith.addf %594, %608 : vector<8x32xf32>
      %cst_197 = arith.constant 2.000000e+00 : f32
      %624 = vector.broadcast %cst_197 : f32 to vector<8x32xf32>
      %625 = arith.mulf %624, %623 : vector<8x32xf32>
      %626 = arith.addf %580, %625 : vector<8x32xf32>
      %627 = arith.addf %626, %622 : vector<8x32xf32>
      %cst_198 = arith.constant 0.020833334 : f32
      %628 = vector.broadcast %cst_198 : f32 to vector<8x32xf32>
      %629 = arith.mulf %628, %627 : vector<8x32xf32>
      %630 = arith.addf %544, %629 : vector<8x32xf32>
      %c7_i32 = arith.constant 7 : i32
      %631 = arith.sitofp %c7_i32 : i32 to f32
      %cst_199 = arith.constant 1.250000e-01 : f32
      %632 = arith.mulf %631, %cst_199 : f32
      %cst_200 = arith.constant 6.250000e-02 : f32
      %633 = arith.addf %632, %cst_200 : f32
      %cst_201 = arith.constant 1.250000e-01 : f32
      %634 = arith.addf %632, %cst_201 : f32
      %635 = vector.broadcast %632 : f32 to vector<8x128xf32>
      %636 = arith.mulf %27, %635 : vector<8x128xf32>
      %637 = arith.addf %26, %636 : vector<8x128xf32>
      %638 = arith.mulf %632, %632 : f32
      %639 = vector.broadcast %638 : f32 to vector<8x128xf32>
      %640 = arith.mulf %28, %639 : vector<8x128xf32>
      %641 = arith.addf %637, %640 : vector<8x128xf32>
      %642 = vector.broadcast %633 : f32 to vector<8x128xf32>
      %643 = arith.mulf %27, %642 : vector<8x128xf32>
      %644 = arith.addf %26, %643 : vector<8x128xf32>
      %645 = arith.mulf %633, %633 : f32
      %646 = vector.broadcast %645 : f32 to vector<8x128xf32>
      %647 = arith.mulf %28, %646 : vector<8x128xf32>
      %648 = arith.addf %644, %647 : vector<8x128xf32>
      %649 = vector.broadcast %634 : f32 to vector<8x128xf32>
      %650 = arith.mulf %27, %649 : vector<8x128xf32>
      %651 = arith.addf %26, %650 : vector<8x128xf32>
      %652 = arith.mulf %634, %634 : f32
      %653 = vector.broadcast %652 : f32 to vector<8x128xf32>
      %654 = arith.mulf %28, %653 : vector<8x128xf32>
      %655 = arith.addf %651, %654 : vector<8x128xf32>
      %cst_202 = arith.constant dense<0.000000e+00> : vector<8x128xf32>
      %656 = tpu.matmul %630, %2, %cst_202 {dimension_numbers = #tpu.dot_dimension_numbers<[1], [0], [0], [1], [0, 0, 1, 1], [], []>} : vector<8x32xf32>, vector<32x128xf32>, vector<8x128xf32> -> vector<8x128xf32>
      %657 = vector.broadcast %3 : vector<1x128xf32> to vector<8x128xf32>
      %658 = arith.addf %656, %657 : vector<8x128xf32>
      %cst_203 = arith.constant 0.000000e+00 : f32
      %659 = vector.broadcast %cst_203 : f32 to vector<8x128xf32>
      %660 = arith.maximumf %658, %659 : vector<8x128xf32>
      %cst_204 = arith.constant dense<0.000000e+00> : vector<8x128xf32>
      %661 = tpu.matmul %660, %4, %cst_204 {dimension_numbers = #tpu.dot_dimension_numbers<[1], [0], [0], [1], [0, 0, 1, 1], [], []>} : vector<8x128xf32>, vector<128x128xf32>, vector<8x128xf32> -> vector<8x128xf32>
      %662 = vector.broadcast %5 : vector<1x128xf32> to vector<8x128xf32>
      %663 = arith.addf %661, %662 : vector<8x128xf32>
      %664 = math.tanh %663 : vector<8x128xf32>
      %665 = arith.mulf %664, %641 : vector<8x128xf32>
      %cst_205 = arith.constant dense<0.000000e+00> : vector<8x32xf32>
      %666 = tpu.matmul %665, %1, %cst_205 {dimension_numbers = #tpu.dot_dimension_numbers<[1], [0], [0], [1], [0, 0, 1, 1], [], []>} : vector<8x128xf32>, vector<128x32xf32>, vector<8x32xf32> -> vector<8x32xf32>
      %cst_206 = arith.constant 6.250000e-02 : f32
      %667 = vector.broadcast %cst_206 : f32 to vector<8x32xf32>
      %668 = arith.mulf %667, %666 : vector<8x32xf32>
      %669 = arith.addf %630, %668 : vector<8x32xf32>
      %cst_207 = arith.constant dense<0.000000e+00> : vector<8x128xf32>
      %670 = tpu.matmul %669, %2, %cst_207 {dimension_numbers = #tpu.dot_dimension_numbers<[1], [0], [0], [1], [0, 0, 1, 1], [], []>} : vector<8x32xf32>, vector<32x128xf32>, vector<8x128xf32> -> vector<8x128xf32>
      %671 = vector.broadcast %3 : vector<1x128xf32> to vector<8x128xf32>
      %672 = arith.addf %670, %671 : vector<8x128xf32>
      %cst_208 = arith.constant 0.000000e+00 : f32
      %673 = vector.broadcast %cst_208 : f32 to vector<8x128xf32>
      %674 = arith.maximumf %672, %673 : vector<8x128xf32>
      %cst_209 = arith.constant dense<0.000000e+00> : vector<8x128xf32>
      %675 = tpu.matmul %674, %4, %cst_209 {dimension_numbers = #tpu.dot_dimension_numbers<[1], [0], [0], [1], [0, 0, 1, 1], [], []>} : vector<8x128xf32>, vector<128x128xf32>, vector<8x128xf32> -> vector<8x128xf32>
      %676 = vector.broadcast %5 : vector<1x128xf32> to vector<8x128xf32>
      %677 = arith.addf %675, %676 : vector<8x128xf32>
      %678 = math.tanh %677 : vector<8x128xf32>
      %679 = arith.mulf %678, %648 : vector<8x128xf32>
      %cst_210 = arith.constant dense<0.000000e+00> : vector<8x32xf32>
      %680 = tpu.matmul %679, %1, %cst_210 {dimension_numbers = #tpu.dot_dimension_numbers<[1], [0], [0], [1], [0, 0, 1, 1], [], []>} : vector<8x128xf32>, vector<128x32xf32>, vector<8x32xf32> -> vector<8x32xf32>
      %cst_211 = arith.constant 6.250000e-02 : f32
      %681 = vector.broadcast %cst_211 : f32 to vector<8x32xf32>
      %682 = arith.mulf %681, %680 : vector<8x32xf32>
      %683 = arith.addf %630, %682 : vector<8x32xf32>
      %cst_212 = arith.constant dense<0.000000e+00> : vector<8x128xf32>
      %684 = tpu.matmul %683, %2, %cst_212 {dimension_numbers = #tpu.dot_dimension_numbers<[1], [0], [0], [1], [0, 0, 1, 1], [], []>} : vector<8x32xf32>, vector<32x128xf32>, vector<8x128xf32> -> vector<8x128xf32>
      %685 = vector.broadcast %3 : vector<1x128xf32> to vector<8x128xf32>
      %686 = arith.addf %684, %685 : vector<8x128xf32>
      %cst_213 = arith.constant 0.000000e+00 : f32
      %687 = vector.broadcast %cst_213 : f32 to vector<8x128xf32>
      %688 = arith.maximumf %686, %687 : vector<8x128xf32>
      %cst_214 = arith.constant dense<0.000000e+00> : vector<8x128xf32>
      %689 = tpu.matmul %688, %4, %cst_214 {dimension_numbers = #tpu.dot_dimension_numbers<[1], [0], [0], [1], [0, 0, 1, 1], [], []>} : vector<8x128xf32>, vector<128x128xf32>, vector<8x128xf32> -> vector<8x128xf32>
      %690 = vector.broadcast %5 : vector<1x128xf32> to vector<8x128xf32>
      %691 = arith.addf %689, %690 : vector<8x128xf32>
      %692 = math.tanh %691 : vector<8x128xf32>
      %693 = arith.mulf %692, %648 : vector<8x128xf32>
      %cst_215 = arith.constant dense<0.000000e+00> : vector<8x32xf32>
      %694 = tpu.matmul %693, %1, %cst_215 {dimension_numbers = #tpu.dot_dimension_numbers<[1], [0], [0], [1], [0, 0, 1, 1], [], []>} : vector<8x128xf32>, vector<128x32xf32>, vector<8x32xf32> -> vector<8x32xf32>
      %cst_216 = arith.constant 1.250000e-01 : f32
      %695 = vector.broadcast %cst_216 : f32 to vector<8x32xf32>
      %696 = arith.mulf %695, %694 : vector<8x32xf32>
      %697 = arith.addf %630, %696 : vector<8x32xf32>
      %cst_217 = arith.constant dense<0.000000e+00> : vector<8x128xf32>
      %698 = tpu.matmul %697, %2, %cst_217 {dimension_numbers = #tpu.dot_dimension_numbers<[1], [0], [0], [1], [0, 0, 1, 1], [], []>} : vector<8x32xf32>, vector<32x128xf32>, vector<8x128xf32> -> vector<8x128xf32>
      %699 = vector.broadcast %3 : vector<1x128xf32> to vector<8x128xf32>
      %700 = arith.addf %698, %699 : vector<8x128xf32>
      %cst_218 = arith.constant 0.000000e+00 : f32
      %701 = vector.broadcast %cst_218 : f32 to vector<8x128xf32>
      %702 = arith.maximumf %700, %701 : vector<8x128xf32>
      %cst_219 = arith.constant dense<0.000000e+00> : vector<8x128xf32>
      %703 = tpu.matmul %702, %4, %cst_219 {dimension_numbers = #tpu.dot_dimension_numbers<[1], [0], [0], [1], [0, 0, 1, 1], [], []>} : vector<8x128xf32>, vector<128x128xf32>, vector<8x128xf32> -> vector<8x128xf32>
      %704 = vector.broadcast %5 : vector<1x128xf32> to vector<8x128xf32>
      %705 = arith.addf %703, %704 : vector<8x128xf32>
      %706 = math.tanh %705 : vector<8x128xf32>
      %707 = arith.mulf %706, %655 : vector<8x128xf32>
      %cst_220 = arith.constant dense<0.000000e+00> : vector<8x32xf32>
      %708 = tpu.matmul %707, %1, %cst_220 {dimension_numbers = #tpu.dot_dimension_numbers<[1], [0], [0], [1], [0, 0, 1, 1], [], []>} : vector<8x128xf32>, vector<128x32xf32>, vector<8x32xf32> -> vector<8x32xf32>
      %709 = arith.addf %680, %694 : vector<8x32xf32>
      %cst_221 = arith.constant 2.000000e+00 : f32
      %710 = vector.broadcast %cst_221 : f32 to vector<8x32xf32>
      %711 = arith.mulf %710, %709 : vector<8x32xf32>
      %712 = arith.addf %666, %711 : vector<8x32xf32>
      %713 = arith.addf %712, %708 : vector<8x32xf32>
      %cst_222 = arith.constant 0.020833334 : f32
      %714 = vector.broadcast %cst_222 : f32 to vector<8x32xf32>
      %715 = arith.mulf %714, %713 : vector<8x32xf32>
      %716 = arith.addf %630, %715 : vector<8x32xf32>
      %c8_i32_223 = arith.constant 8 : i32
      scf.yield %716 : vector<8x32xf32>
    }
    %c8_i32_18 = arith.constant 8 : i32
    %c0_19 = arith.constant 0 : index
    %c0_20 = arith.constant 0 : index
    %16 = vector.load %arg9[%c0_19, %c0_20] : memref<32x4xf32, #tpu.memory_space<vmem>>, vector<32x4xf32>
    %cst_21 = arith.constant dense<0.000000e+00> : vector<8x4xf32>
    %17 = tpu.matmul %15, %16, %cst_21 {dimension_numbers = #tpu.dot_dimension_numbers<[1], [0], [0], [1], [0, 0, 1, 1], [], []>} : vector<8x32xf32>, vector<32x4xf32>, vector<8x4xf32> -> vector<8x4xf32>
    %c0_22 = arith.constant 0 : index
    %c0_23 = arith.constant 0 : index
    %18 = vector.load %arg10[%c0_22, %c0_23] : memref<1x4xf32, #tpu.memory_space<vmem>>, vector<1x4xf32>
    %19 = vector.broadcast %18 : vector<1x4xf32> to vector<8x4xf32>
    %20 = arith.addf %17, %19 : vector<8x4xf32>
    %c0_24 = arith.constant 0 : index
    %c0_25 = arith.constant 0 : index
    %21 = vector.load %arg11[%c0_24, %c0_25] : memref<8x4xf32, #tpu.memory_space<vmem>>, vector<8x4xf32>
    tpu.vector_store %arg11[%c0_24, %c0_25], %20 {strides = array<i32>} : memref<8x4xf32, #tpu.memory_space<vmem>>, vector<8x4xf32>,
    return
  }
}

</mosaic_0001>

<bundles_post_ra>
// kernel: tile.9
= control target key start
LH: loop header
LB: loop body
LE: loop exit
PB: predicated region body
PF: predicated region fallthrough
CT: control target
= control target key end

     0   :  { %vm5_vm0 = vcmask 1041409   ;;  %vm9_vm1 = vcmask 1042434   ;;  %vm13_vm2 = vcmask 1043459   ;;  %s739_s30 = smov 124   ;;  %s740_s8 = smov 116   ;;  %vm15_vm3 = vcmask 31744   ;;  %s1264_s0 = inlined_call_operand.vmem [shape: f32[4,32,4], index: 0, kind: input, shape index: {}]   ;;  %s1265_s1 = inlined_call_operand.vmem [shape: f32[4,128], index: 1, kind: output, shape index: {}]  }
   0x1   :  { %v584_v0 = vld [vmem:[%s1264_s0 + $0x1f] sm:$0x1]   ;;  %v592_v5 = vld [vmem:[%s1264_s0 + $0x1d] sm:$0x1]   ;;  %v588_v11 = vld [vmem:[%s1264_s0 + $0x1e] sm:$0x1]  }
   0x2   :  { %v585_v1 = vld [vmem:[%s1264_s0 + $0x3e] sm:$0x2]   ;;  %v593_v6 = vld [vmem:[%s1264_s0 + $0x3c] sm:$0x2]   ;;  %v589_v14 = vld [vmem:[%s1264_s0 + $0x3d] sm:$0x2]  }
   0x3   :  { %v586_v2 = vld [vmem:[%s1264_s0 + $0x5d] sm:$0x4]   ;;  %v22_v4 = vsel %vm5_vm0, %v585_v1, %v584_v0  ;;  %v594_v7 = vld [vmem:[%s1264_s0 + $0x5b] sm:$0x4]   ;;  %v58_v9 = vsel %vm5_vm0, %v593_v6, %v592_v5  ;;  %v590_v15 = vld [vmem:[%s1264_s0 + $0x5c] sm:$0x4]   ;;  %v40_v18 = vsel %vm5_vm0, %v589_v14, %v588_v11 }
   0x4   :  { %v587_v3 = vld [vmem:[%s1264_s0 + $0x7c] sm:$0x8]   ;;  %v26_v8 = vsel %vm9_vm1, %v586_v2, %v22_v4  ;;  %v595_v10 = vld [vmem:[%s1264_s0 + $0x7a] sm:$0x8]   ;;  %v62_v13 = vsel %vm9_vm1, %v594_v7, %v58_v9  ;;  %v591_v16 = vld [vmem:[%s1264_s0 + $0x7b] sm:$0x8]   ;;  %v44_v22 = vsel %vm9_vm1, %v590_v15, %v40_v18 }
   0x5   :  { %v30_v12 = vsel %vm13_vm2, %v587_v3, %v26_v8  ;;  %v66_v17 = vsel %vm13_vm2, %v595_v10, %v62_v13  ;;  %v596_v19 = vld [vmem:[%s1264_s0 + $0x1c] sm:$0x1]   ;;  %v600_v25 = vld [vmem:[%s1264_s0 + $0x1b] sm:$0x1]   ;;  %v48_v26 = vsel %vm13_vm2, %v591_v16, %v44_v22  ;;  %v604_v33 = vld [vmem:[%s1264_s0 + $0x1a] sm:$0x1]  }
   0x6   :  { %31 = vrot.lane.b32.xlu0 %v30_v12, %s739_s30  ;;  %v597_v20 = vld [vmem:[%s1264_s0 + $0x3b] sm:$0x2]   ;;  %67 = vrot.lane.b32.xlu1 %v66_v17, %s740_s8  ;;  %v601_v28 = vld [vmem:[%s1264_s0 + $0x3a] sm:$0x2]   ;;  %s741_s25 = smov 120   ;;  %s742_s30 = smov 112  }
   0x7   :  { %v598_v21 = vld [vmem:[%s1264_s0 + $0x5a] sm:$0x4]   ;;  %v76_v23 = vsel %vm5_vm0, %v597_v20, %v596_v19  ;;  %v602_v29 = vld [vmem:[%s1264_s0 + $0x59] sm:$0x4]   ;;  %v94_v32 = vsel %vm5_vm0, %v601_v28, %v600_v25  ;;  %v605_v34 = vld [vmem:[%s1264_s0 + $0x39] sm:$0x2]  }
   0x8   :  { %v599_v24 = vld [vmem:[%s1264_s0 + $0x79] sm:$0x8]   ;;  %v80_v27 = vsel %vm9_vm1, %v598_v21, %v76_v23  ;;  %v603_v30 = vld [vmem:[%s1264_s0 + $0x78] sm:$0x8]   ;;  %v606_v35 = vld [vmem:[%s1264_s0 + $0x58] sm:$0x4]   ;;  %v98_v36 = vsel %vm9_vm1, %v602_v29, %v94_v32  ;;  %v112_v37 = vsel %vm5_vm0, %v605_v34, %v604_v33 }
   0x9   :  { %v84_v31 = vsel %vm13_vm2, %v599_v24, %v80_v27  ;;  %v607_v38 = vld [vmem:[%s1264_s0 + $0x77] sm:$0x8]   ;;  %v608_v39 = vld [vmem:[%s1264_s0 + $0x19] sm:$0x1]   ;;  %v102_v40 = vsel %vm13_vm2, %v603_v30, %v98_v36  ;;  %v116_v41 = vsel %vm9_vm1, %v606_v35, %v112_v37  ;;  %v612_v47 = vld [vmem:[%s1264_s0 + $0x18] sm:$0x1]  }
   0xa   :  { %49 = vrot.lane.b32.xlu0 %v48_v26, %s741_s25  ;;  %85 = vrot.lane.b32.xlu1 %v84_v31, %s742_s30  ;;  %v609_v42 = vld [vmem:[%s1264_s0 + $0x38] sm:$0x2]   ;;  %v120_v45 = vsel %vm13_vm2, %v607_v38, %v116_v41  ;;  %v613_v48 = vld [vmem:[%s1264_s0 + $0x37] sm:$0x2]   ;;  %s743_s18 = smov 108   ;;  %s744_s23 = smov 104  }
   0xb   :  { %v610_v43 = vld [vmem:[%s1264_s0 + $0x57] sm:$0x4]   ;;  %v130_v46 = vsel %vm5_vm0, %v609_v42, %v608_v39  ;;  %v614_v49 = vld [vmem:[%s1264_s0 + $0x56] sm:$0x4]   ;;  %v148_v51 = vsel %vm5_vm0, %v613_v48, %v612_v47  ;;  %v616_v53 = vld [vmem:[%s1264_s0 + $0x17] sm:$0x1]  }
   0xc   :  { %v611_v44 = vld [vmem:[%s1264_s0 + $0x76] sm:$0x8]   ;;  %v134_v50 = vsel %vm9_vm1, %v610_v43, %v130_v46  ;;  %v615_v52 = vld [vmem:[%s1264_s0 + $0x75] sm:$0x8]   ;;  %v152_v54 = vsel %vm9_vm1, %v614_v49, %v148_v51  ;;  %v617_v55 = vld [vmem:[%s1264_s0 + $0x36] sm:$0x2]  }
   0xd   :  { %v618_v56 = vld [vmem:[%s1264_s0 + $0x55] sm:$0x4]   ;;  %v138_v57 = vsel %vm13_vm2, %v611_v44, %v134_v50  ;;  %v166_v58 = vsel %vm5_vm0, %v617_v55, %v616_v53  ;;  %v620_v59 = vld [vmem:[%s1264_s0 + $0x16] sm:$0x1]   ;;  %v156_v62 = vsel %vm13_vm2, %v615_v52, %v152_v54  ;;  %v624_v2 = vld [vmem:[%s1264_s0 + $0x15] sm:$0x1]  }
   0xe   :  { %103 = vrot.lane.b32.xlu0 %v102_v40, %s743_s18  ;;  %121 = vrot.lane.b32.xlu1 %v120_v45, %s744_s23  ;;  %v621_v60 = vld [vmem:[%s1264_s0 + $0x35] sm:$0x2]   ;;  %v170_v63 = vsel %vm9_vm1, %v618_v56, %v166_v58  ;;  %v619_v0 = vld [vmem:[%s1264_s0 + $0x74] sm:$0x8]   ;;  %s745_s11 = smov 100   ;;  %s746_s18 = smov 96  }
   0xf   :  { %v622_v61 = vld [vmem:[%s1264_s0 + $0x54] sm:$0x4]   ;;  %v184_v1 = vsel %vm5_vm0, %v621_v60, %v620_v59  ;;  %v625_v5 = vld [vmem:[%s1264_s0 + $0x34] sm:$0x2]   ;;  %v628_v8 = vld [vmem:[%s1264_s0 + $0x14] sm:$0x1]   ;;  %v174_v11 = vsel %vm13_vm2, %v619_v0, %v170_v63 }
  0x10   :  { %v188_v3 = vsel %vm9_vm1, %v622_v61, %v184_v1  ;;  %v623_v4 = vld [vmem:[%s1264_s0 + $0x73] sm:$0x8]   ;;  %v626_v6 = vld [vmem:[%s1264_s0 + $0x53] sm:$0x4]   ;;  %v202_v7 = vsel %vm5_vm0, %v625_v5, %v624_v2  ;;  %v629_v9 = vld [vmem:[%s1264_s0 + $0x33] sm:$0x2]  }
  0x11   :  { %v630_v10 = vld [vmem:[%s1264_s0 + $0x52] sm:$0x4]   ;;  %v220_v12 = vsel %vm5_vm0, %v629_v9, %v628_v8  ;;  %v632_v13 = vld [vmem:[%s1264_s0 + $0x13] sm:$0x1]   ;;  %v192_v14 = vsel %vm13_vm2, %v623_v4, %v188_v3  ;;  %v206_v15 = vsel %vm9_vm1, %v626_v6, %v202_v7  ;;  %v627_v16 = vld [vmem:[%s1264_s0 + $0x72] sm:$0x8]  }
  0x12   :  { %139 = vrot.lane.b32.xlu0 %v138_v57, %s745_s11  ;;  %157 = vrot.lane.b32.xlu1 %v156_v62, %s746_s18  ;;  %v631_v17 = vld [vmem:[%s1264_s0 + $0x71] sm:$0x8]   ;;  %v633_v18 = vld [vmem:[%s1264_s0 + $0x32] sm:$0x2]   ;;  %v224_v19 = vsel %vm9_vm1, %v630_v10, %v220_v12  ;;  %s747_s4 = smov 92   ;;  %s748_s9 = smov 88   ;;  %v210_v27 = vsel %vm13_vm2, %v627_v16, %v206_v15 }
  0x13   :  { %v238_v20 = vsel %vm5_vm0, %v633_v18, %v632_v13  ;;  %v634_v21 = vld [vmem:[%s1264_s0 + $0x51] sm:$0x4]   ;;  %v636_v22 = vld [vmem:[%s1264_s0 + $0x12] sm:$0x1]   ;;  %v640_v26 = vld [vmem:[%s1264_s0 + $0x11] sm:$0x1]   ;;  %v228_v29 = vsel %vm13_vm2, %v631_v17, %v224_v19 }
  0x14   :  { %v637_v23 = vld [vmem:[%s1264_s0 + $0x31] sm:$0x2]   ;;  %v641_v28 = vld [vmem:[%s1264_s0 + $0x30] sm:$0x2]   ;;  %v242_v30 = vsel %vm9_vm1, %v634_v21, %v238_v20  ;;  %v635_v31 = vld [vmem:[%s1264_s0 + $0x70] sm:$0x8]  }
  0x15   :  { %v256_v24 = vsel %vm5_vm0, %v637_v23, %v636_v22  ;;  %v638_v25 = vld [vmem:[%s1264_s0 + $0x50] sm:$0x4]   ;;  %v644_v32 = vld [vmem:[%s1264_s0 + $0x10] sm:$0x1]   ;;  %v274_v36 = vsel %vm5_vm0, %v641_v28, %v640_v26  ;;  %v642_v37 = vld [vmem:[%s1264_s0 + $0x4f] sm:$0x4]   ;;  %v246_v42 = vsel %vm13_vm2, %v635_v31, %v242_v30 }
  0x16   :  { %175 = vrot.lane.b32.xlu0 %v174_v11, %s747_s4  ;;  %193 = vrot.lane.b32.xlu1 %v192_v14, %s748_s9  ;;  %v645_v33 = vld [vmem:[%s1264_s0 + $0x2f] sm:$0x2]   ;;  %v260_v34 = vsel %vm9_vm1, %v638_v25, %v256_v24  ;;  %v639_v35 = vld [vmem:[%s1264_s0 + $0x6f] sm:$0x8]   ;;  %s749_s22 = smov 84   ;;  %s750_s29 = smov 80   ;;  %v278_v46 = vsel %vm9_vm1, %v642_v37, %v274_v36 }
  0x17   :  { %v292_v38 = vsel %vm5_vm0, %v645_v33, %v644_v32  ;;  %v646_v39 = vld [vmem:[%s1264_s0 + $0x4e] sm:$0x4]   ;;  %v648_v40 = vld [vmem:[%s1264_s0 + $0xf] sm:$0x1]   ;;  %v652_v43 = vld [vmem:[%s1264_s0 + $0xe] sm:$0x1]   ;;  %v264_v45 = vsel %vm13_vm2, %v639_v35, %v260_v34 }
  0x18   :  { %v649_v41 = vld [vmem:[%s1264_s0 + $0x2e] sm:$0x2]   ;;  %v653_v44 = vld [vmem:[%s1264_s0 + $0x2d] sm:$0x2]   ;;  %v643_v47 = vld [vmem:[%s1264_s0 + $0x6e] sm:$0x8]   ;;  %v296_v48 = vsel %vm9_vm1, %v646_v39, %v292_v38 }
  0x19   :  { %v647_v49 = vld [vmem:[%s1264_s0 + $0x6d] sm:$0x8]   ;;  %v310_v50 = vsel %vm5_vm0, %v649_v41, %v648_v40  ;;  %v650_v51 = vld [vmem:[%s1264_s0 + $0x4d] sm:$0x4]   ;;  %s751_s11 = smov 76   ;;  %v328_v52 = vsel %vm5_vm0, %v653_v44, %v652_v43  ;;  %s752_s18 = smov 72   ;;  %v282_v56 = vsel %vm13_vm2, %v643_v47, %v278_v46 }
  0x1a   :  { %211 = vrot.lane.b32.xlu0 %v210_v27, %s749_s22  ;;  %229 = vrot.lane.b32.xlu1 %v228_v29, %s750_s29  ;;  %v654_v53 = vld [vmem:[%s1264_s0 + $0x4c] sm:$0x4]   ;;  %v656_v54 = vld [vmem:[%s1264_s0 + $0xd] sm:$0x1]   ;;  %v300_v59 = vsel %vm13_vm2, %v647_v49, %v296_v48  ;;  %v314_v60 = vsel %vm9_vm1, %v650_v51, %v310_v50  ;;  %s753_s29 = smov 68   ;;  %s754_s7 = smov 64  }
  0x1b   :  { %v657_v55 = vld [vmem:[%s1264_s0 + $0x2c] sm:$0x2]   ;;  %v660_v57 = vld [vmem:[%s1264_s0 + $0xc] sm:$0x1]   ;;  %v651_v61 = vld [vmem:[%s1264_s0 + $0x6c] sm:$0x8]   ;;  %v332_v62 = vsel %vm9_vm1, %v654_v53, %v328_v52 }
  0x1c   :  { %v661_v58 = vld [vmem:[%s1264_s0 + $0x2b] sm:$0x2]   ;;  %v655_v63 = vld [vmem:[%s1264_s0 + $0x6b] sm:$0x8]   ;;  %v346_v0 = vsel %vm5_vm0, %v657_v55, %v656_v54  ;;  %v658_v1 = vld [vmem:[%s1264_s0 + $0x4b] sm:$0x4]   ;;  %v318_v6 = vsel %vm13_vm2, %v651_v61, %v314_v60 }
  0x1d   :  { %v364_v2 = vsel %vm5_vm0, %v661_v58, %v660_v57  ;;  %v662_v3 = vld [vmem:[%s1264_s0 + $0x4a] sm:$0x4]   ;;  %v664_v4 = vld [vmem:[%s1264_s0 + $0xb] sm:$0x1]   ;;  %v668_v7 = vld [vmem:[%s1264_s0 + $0xa] sm:$0x1]   ;;  %v336_v9 = vsel %vm13_vm2, %v655_v63, %v332_v62  ;;  %v350_v10 = vsel %vm9_vm1, %v658_v1, %v346_v0 }
  0x1e   :  { %247 = vrot.lane.b32.xlu0 %v246_v42, %s751_s11  ;;  %265 = vrot.lane.b32.xlu1 %v264_v45, %s752_s18  ;;  %v665_v5 = vld [vmem:[%s1264_s0 + $0x2a] sm:$0x2]   ;;  %v669_v8 = vld [vmem:[%s1264_s0 + $0x29] sm:$0x2]   ;;  %v368_v12 = vsel %vm9_vm1, %v662_v3, %v364_v2  ;;  %s755_s18 = smov 60   ;;  %s756_s25 = smov 56  }
  0x1f   :  { %v659_v11 = vld [vmem:[%s1264_s0 + $0x6a] sm:$0x8]   ;;  %v663_v13 = vld [vmem:[%s1264_s0 + $0x69] sm:$0x8]   ;;  %v382_v14 = vsel %vm5_vm0, %v665_v5, %v664_v4  ;;  %v666_v15 = vld [vmem:[%s1264_s0 + $0x49] sm:$0x4]   ;;  %v400_v16 = vsel %vm5_vm0, %v669_v8, %v668_v7 }
  0x20   :  { %v670_v17 = vld [vmem:[%s1264_s0 + $0x48] sm:$0x4]   ;;  %v672_v18 = vld [vmem:[%s1264_s0 + $0x9] sm:$0x1]   ;;  %v354_v20 = vsel %vm13_vm2, %v659_v11, %v350_v10  ;;  %v676_v21 = vld [vmem:[%s1264_s0 + $0x8] sm:$0x1]   ;;  %v372_v23 = vsel %vm13_vm2, %v663_v13, %v368_v12  ;;  %v386_v24 = vsel %vm9_vm1, %v666_v15, %v382_v14 }
  0x21   :  { %v673_v19 = vld [vmem:[%s1264_s0 + $0x28] sm:$0x2]   ;;  %v677_v22 = vld [vmem:[%s1264_s0 + $0x27] sm:$0x2]   ;;  %v667_v25 = vld [vmem:[%s1264_s0 + $0x68] sm:$0x8]   ;;  %v404_v26 = vsel %vm9_vm1, %v670_v17, %v400_v16 }
  0x22   :  { %283 = vrot.lane.b32.xlu0 %v282_v56, %s753_s29  ;;  %301 = vrot.lane.b32.xlu1 %v300_v59, %s754_s7  ;;  %v671_v27 = vld [vmem:[%s1264_s0 + $0x67] sm:$0x8]   ;;  %v418_v28 = vsel %vm5_vm0, %v673_v19, %v672_v18  ;;  %v674_v29 = vld [vmem:[%s1264_s0 + $0x47] sm:$0x4]   ;;  %s757_s7 = smov 52   ;;  %v436_v30 = vsel %vm5_vm0, %v677_v22, %v676_v21  ;;  %s758_s14 = smov 48   ;;  %v390_v34 = vsel %vm13_vm2, %v667_v25, %v386_v24 }
  0x23   :  { %v678_v31 = vld [vmem:[%s1264_s0 + $0x46] sm:$0x4]   ;;  %v680_v32 = vld [vmem:[%s1264_s0 + $0x7] sm:$0x1]   ;;  %v684_v35 = vld [vmem:[%s1264_s0 + $0x6] sm:$0x1]   ;;  %v408_v37 = vsel %vm13_vm2, %v671_v27, %v404_v26  ;;  %v422_v38 = vsel %vm9_vm1, %v674_v29, %v418_v28 }
  0x24   :  { %v681_v33 = vld [vmem:[%s1264_s0 + $0x26] sm:$0x2]   ;;  %v685_v36 = vld [vmem:[%s1264_s0 + $0x25] sm:$0x2]   ;;  %v675_v39 = vld [vmem:[%s1264_s0 + $0x66] sm:$0x8]   ;;  %v440_v40 = vsel %vm9_vm1, %v678_v31, %v436_v30 }
  0x25   :  { %v679_v41 = vld [vmem:[%s1264_s0 + $0x65] sm:$0x8]   ;;  %v454_v42 = vsel %vm5_vm0, %v681_v33, %v680_v32  ;;  %v682_v43 = vld [vmem:[%s1264_s0 + $0x45] sm:$0x4]   ;;  %v472_v45 = vsel %vm5_vm0, %v685_v36, %v684_v35  ;;  %v686_v46 = vld [vmem:[%s1264_s0 + $0x44] sm:$0x4]   ;;  %v426_v49 = vsel %vm13_vm2, %v675_v39, %v422_v38 }
  0x26   :  { %319 = vrot.lane.b32.xlu0 %v318_v6, %s755_s18  ;;  %337 = vrot.lane.b32.xlu1 %v336_v9, %s756_s25  ;;  %s759_s25 = smov 44   ;;  %v683_v44 = vld [vmem:[%s1264_s0 + $0x64] sm:$0x8]   ;;  %v688_v47 = vld [vmem:[%s1264_s0 + $0x5] sm:$0x1]   ;;  %s760_s5 = smov 40   ;;  %v444_v53 = vsel %vm13_vm2, %v679_v41, %v440_v40  ;;  %v458_v54 = vsel %vm9_vm1, %v682_v43, %v454_v42  ;;  %v476_v58 = vsel %vm9_vm1, %v686_v46, %v472_v45 }
  0x27   :  { %v689_v48 = vld [vmem:[%s1264_s0 + $0x24] sm:$0x2]   ;;  %v687_v50 = vld [vmem:[%s1264_s0 + $0x63] sm:$0x8]   ;;  %v692_v51 = vld [vmem:[%s1264_s0 + $0x4] sm:$0x1]   ;;  %v462_v3 = vsel %vm13_vm2, %v683_v44, %v458_v54 }
  0x28   :  { %v693_v52 = vld [vmem:[%s1264_s0 + $0x23] sm:$0x2]   ;;  %v690_v55 = vld [vmem:[%s1264_s0 + $0x43] sm:$0x4]   ;;  %v582_v57 = vld [vmem:[%s1264_s0 + $0x3e] sm:$0x4]   ;;  %v490_v59 = vsel %vm5_vm0, %v689_v48, %v688_v47  ;;  %v480_v7 = vsel %vm13_vm2, %v687_v50, %v476_v58 }
  0x29   :  { %v694_v56 = vld [vmem:[%s1264_s0 + $0x42] sm:$0x4]   ;;  %v583_v60 = vld [vmem:[%s1264_s0 + $0x5d] sm:$0x8]   ;;  %s761_s24 = smov 36   ;;  %v508_v63 = vsel %vm5_vm0, %v693_v52, %v692_v51  ;;  %s762_s29 = smov 32   ;;  %v494_v8 = vsel %vm9_vm1, %v690_v55, %v490_v59 }
  0x2a   :  { %355 = vrot.lane.b32.xlu0 %v354_v20, %s757_s7  ;;  %373 = vrot.lane.b32.xlu1 %v372_v23, %s758_s14  ;;  %v2_v61 = vld [vmem:[%s1264_s0] sm:$0x1]   ;;  %v696_v0 = vld [vmem:[%s1264_s0 + $0x3] sm:$0x1]   ;;  %v512_v11 = vsel %vm9_vm1, %v694_v56, %v508_v63  ;;  %s763_s11 = smov 28   ;;  %s764_s18 = smov 24  }
  0x2b   :  { %v581_v62 = vld [vmem:[%s1264_s0 + $0x1f] sm:$0x2]   ;;  %v697_v1 = vld [vmem:[%s1264_s0 + $0x22] sm:$0x2]   ;;  %v700_v4 = vld [vmem:[%s1264_s0 + $0x2] sm:$0x1]  }
  0x2c   :  { %v6_v2 = vsel %vm5_vm0, %v581_v62, %v2_v61  ;;  %v701_v5 = vld [vmem:[%s1264_s0 + $0x21] sm:$0x2]   ;;  %v691_v9 = vld [vmem:[%s1264_s0 + $0x62] sm:$0x8]   ;;  %v695_v12 = vld [vmem:[%s1264_s0 + $0x61] sm:$0x8]   ;;  %v526_v13 = vsel %vm5_vm0, %v697_v1, %v696_v0 }
  0x2d   :  { %v10_v6 = vsel %vm9_vm1, %v582_v57, %v6_v2  ;;  %v698_v14 = vld [vmem:[%s1264_s0 + $0x41] sm:$0x4]   ;;  %v544_v15 = vsel %vm5_vm0, %v701_v5, %v700_v4  ;;  %v702_v16 = vld [vmem:[%s1264_s0 + $0x40] sm:$0x4]   ;;  %v704_v17 = vld [vmem:[%s1264_s0 + $0x1] sm:$0x1]   ;;  %v498_v19 = vsel %vm13_vm2, %v691_v9, %v494_v8  ;;  %v516_v20 = vsel %vm13_vm2, %v695_v12, %v512_v11 }
  0x2e   :  { %391 = vrot.lane.b32.xlu0 %v390_v34, %s759_s25  ;;  %409 = vrot.lane.b32.xlu1 %v408_v37, %s760_s5  ;;  %v14_v10 = vsel %vm13_vm2, %v583_v60, %v10_v6  ;;  %v705_v18 = vld [vmem:[%s1264_s0 + $0x20] sm:$0x2]   ;;  %v530_v21 = vsel %vm9_vm1, %v698_v14, %v526_v13  ;;  %v699_v22 = vld [vmem:[%s1264_s0 + $0x60] sm:$0x8]   ;;  %v548_v23 = vsel %vm9_vm1, %v702_v16, %v544_v15  ;;  %s765_s25 = smov 20   ;;  %s766_s26 = smov 16  }
  0x2f   :  { %16 = vst.msk [vmem:[#allocation0] sm:$0xf] %vm15_vm3, %v14_v10   ;;  %v703_v24 = vld [vmem:[%s1264_s0 + $0x5f] sm:$0x8]   ;;  %v562_v25 = vsel %vm5_vm0, %v705_v18, %v704_v17  ;;  %v706_v26 = vld [vmem:[%s1264_s0 + $0x3f] sm:$0x4]   ;;  %v534_v27 = vsel %vm13_vm2, %v699_v22, %v530_v21 }
  0x30   :  { %v552_v28 = vsel %vm13_vm2, %v703_v24, %v548_v23  ;;  %v566_v29 = vsel %vm9_vm1, %v706_v26, %v562_v25  ;;  %v707_v30 = vld [vmem:[%s1264_s0 + $0x5e] sm:$0x8]   ;;  %s767_s0 = smov 12   ;;  %s769_s30 = smov 4   ;;  %vm33_vm4 = vcmask 1048544   ;;  %vm51_vm5 = vcmask 1015744  }
  0x31   :  { %v570_v31 = vsel %vm13_vm2, %v707_v30, %v566_v29  ;;  %vm69_vm6 = vcmask 982944   ;;  %vm87_vm7 = vcmask 950144   ;;  %vm105_vm8 = vcmask 917344  }
  0x32   :  { %427 = vrot.lane.b32.xlu0 %v426_v49, %s761_s24  ;;  %445 = vrot.lane.b32.xlu1 %v444_v53, %s762_s29  ;;  %s768_s29 = smov 8   ;;  %vm123_vm9 = vcmask 884544   ;;  %vm141_vm10 = vcmask 851744   ;;  %vm159_vm11 = vcmask 818944   ;;  %vm177_vm12 = vcmask 786144  }
  0x33   :  { %vm195_vm13 = vcmask 753344   ;;  %vm213_vm14 = vcmask 720544   ;;  %vm231_vm15 = vcmask 687744   ;;  %vm249_vm0 = vcmask 654944  }
  0x34   :  { %vm267_vm1 = vcmask 622144   ;;  %vm285_vm2 = vcmask 589344   ;;  %vm303_vm3 = vcmask 556544  }
  0x36   :  { %463 = vrot.lane.b32.xlu0 %v462_v3, %s763_s11  ;;  %481 = vrot.lane.b32.xlu1 %v480_v7, %s764_s18 }
  0x3a   :  { %499 = vrot.lane.b32.xlu0 %v498_v19, %s765_s25  ;;  %517 = vrot.lane.b32.xlu1 %v516_v20, %s766_s26 }
  0x3e   :  { %535 = vrot.lane.b32.xlu0 %v534_v27, %s767_s0  ;;  %553 = vrot.lane.b32.xlu1 %v552_v28, %s768_s29 }
  0x42   :  { %571 = vrot.lane.b32.xlu0 %v570_v31, %s769_s30 }
  0x78   :  { %v32_v32 = vpop.permute.xlu0 %31   ;;  %v68_v33 = vpop.permute.xlu1 %67  }
  0x79   :  { %34 = vst.msk [vmem:[#allocation0] sm:$0xf] %vm33_vm4, %v32_v32   ;;  %vm321_vm4 = vcmask 523744  }
  0x7c   :  { %v50_v34 = vpop.permute.xlu0 %49   ;;  %v86_v35 = vpop.permute.xlu1 %85  }
  0x7d   :  { %52 = vst.msk [vmem:[#allocation0] sm:$0xf] %vm51_vm5, %v50_v34   ;;  %vm339_vm5 = vcmask 490944  }
  0x7e   :  { %70 = vst.msk [vmem:[#allocation0] sm:$0xf] %vm69_vm6, %v68_v33   ;;  %vm357_vm6 = vcmask 458144  }
  0x7f   :  { %88 = vst.msk [vmem:[#allocation0] sm:$0xf] %vm87_vm7, %v86_v35   ;;  %vm375_vm7 = vcmask 425344  }
  0x80   :  { %v104_v36 = vpop.permute.xlu0 %103   ;;  %v122_v37 = vpop.permute.xlu1 %121  }
  0x81   :  { %106 = vst.msk [vmem:[#allocation0] sm:$0xf] %vm105_vm8, %v104_v36   ;;  %vm393_vm8 = vcmask 392544  }
  0x82   :  { %124 = vst.msk [vmem:[#allocation0] sm:$0xf] %vm123_vm9, %v122_v37   ;;  %vm411_vm9 = vcmask 359744  }
  0x84   :  { %v140_v38 = vpop.permute.xlu0 %139   ;;  %v158_v39 = vpop.permute.xlu1 %157  }
  0x85   :  { %142 = vst.msk [vmem:[#allocation0] sm:$0xf] %vm141_vm10, %v140_v38   ;;  %vm429_vm10 = vcmask 326944  }
  0x86   :  { %160 = vst.msk [vmem:[#allocation0] sm:$0xf] %vm159_vm11, %v158_v39   ;;  %vm447_vm11 = vcmask 294144  }
  0x88   :  { %v176_v40 = vpop.permute.xlu0 %175   ;;  %v194_v41 = vpop.permute.xlu1 %193  }
  0x89   :  { %178 = vst.msk [vmem:[#allocation0] sm:$0xf] %vm177_vm12, %v176_v40   ;;  %vm465_vm12 = vcmask 261344  }
  0x8a   :  { %196 = vst.msk [vmem:[#allocation0] sm:$0xf] %vm195_vm13, %v194_v41   ;;  %vm483_vm13 = vcmask 228544  }
  0x8c   :  { %v212_v42 = vpop.permute.xlu0 %211   ;;  %v230_v43 = vpop.permute.xlu1 %229  }
  0x8d   :  { %214 = vst.msk [vmem:[#allocation0] sm:$0xf] %vm213_vm14, %v212_v42   ;;  %vm501_vm14 = vcmask 195744  }
  0x8e   :  { %232 = vst.msk [vmem:[#allocation0] sm:$0xf] %vm231_vm15, %v230_v43   ;;  %vm519_vm15 = vcmask 162944  }
  0x90   :  { %v248_v44 = vpop.permute.xlu0 %247   ;;  %v266_v45 = vpop.permute.xlu1 %265  }
  0x91   :  { %250 = vst.msk [vmem:[#allocation0] sm:$0xf] %vm249_vm0, %v248_v44   ;;  %vm537_vm0 = vcmask 130144  }
  0x92   :  { %268 = vst.msk [vmem:[#allocation0] sm:$0xf] %vm267_vm1, %v266_v45   ;;  %vm555_vm1 = vcmask 97344  }
  0x94   :  { %v284_v46 = vpop.permute.xlu0 %283   ;;  %v302_v47 = vpop.permute.xlu1 %301  }
  0x95   :  { %286 = vst.msk [vmem:[#allocation0] sm:$0xf] %vm285_vm2, %v284_v46   ;;  %vm573_vm2 = vcmask 64544  }
  0x96   :  { %304 = vst.msk [vmem:[#allocation0] sm:$0xf] %vm303_vm3, %v302_v47  }
  0x98   :  { %v320_v48 = vpop.permute.xlu0 %319   ;;  %v338_v49 = vpop.permute.xlu1 %337  }
  0x99   :  { %322 = vst.msk [vmem:[#allocation0] sm:$0xf] %vm321_vm4, %v320_v48  }
  0x9a   :  { %340 = vst.msk [vmem:[#allocation0] sm:$0xf] %vm339_vm5, %v338_v49  }
  0x9c   :  { %v356_v50 = vpop.permute.xlu0 %355   ;;  %v374_v51 = vpop.permute.xlu1 %373  }
  0x9d   :  { %358 = vst.msk [vmem:[#allocation0] sm:$0xf] %vm357_vm6, %v356_v50  }
  0x9e   :  { %376 = vst.msk [vmem:[#allocation0] sm:$0xf] %vm375_vm7, %v374_v51  }
  0xa0   :  { %v392_v52 = vpop.permute.xlu0 %391   ;;  %v410_v53 = vpop.permute.xlu1 %409  }
  0xa1   :  { %394 = vst.msk [vmem:[#allocation0] sm:$0xf] %vm393_vm8, %v392_v52  }
  0xa2   :  { %412 = vst.msk [vmem:[#allocation0] sm:$0xf] %vm411_vm9, %v410_v53  }
  0xa4   :  { %v428_v54 = vpop.permute.xlu0 %427   ;;  %v446_v55 = vpop.permute.xlu1 %445  }
  0xa5   :  { %430 = vst.msk [vmem:[#allocation0] sm:$0xf] %vm429_vm10, %v428_v54  }
  0xa6   :  { %448 = vst.msk [vmem:[#allocation0] sm:$0xf] %vm447_vm11, %v446_v55  }
  0xa8   :  { %v464_v56 = vpop.permute.xlu0 %463   ;;  %v482_v57 = vpop.permute.xlu1 %481  }
  0xa9   :  { %466 = vst.msk [vmem:[#allocation0] sm:$0xf] %vm465_vm12, %v464_v56  }
  0xaa   :  { %484 = vst.msk [vmem:[#allocation0] sm:$0xf] %vm483_vm13, %v482_v57  }
  0xac   :  { %v500_v58 = vpop.permute.xlu0 %499   ;;  %v518_v59 = vpop.permute.xlu1 %517  }
  0xad   :  { %502 = vst.msk [vmem:[#allocation0] sm:$0xf] %vm501_vm14, %v500_v58  }
  0xae   :  { %520 = vst.msk [vmem:[#allocation0] sm:$0xf] %vm519_vm15, %v518_v59  }
  0xb0   :  { %v536_v60 = vpop.permute.xlu0 %535   ;;  %v554_v61 = vpop.permute.xlu1 %553  }
  0xb1   :  { %538 = vst.msk [vmem:[#allocation0] sm:$0xf] %vm537_vm0, %v536_v60  }
  0xb2   :  { %556 = vst.msk [vmem:[#allocation0] sm:$0xf] %vm555_vm1, %v554_v61  }
  0xb4   :  { %v572_v62 = vpop.permute.xlu0 %571  }
  0xb5   :  { %574 = vst.msk [vmem:[#allocation0] sm:$0xf] %vm573_vm2, %v572_v62  }
  0xbc   :  { %v578_v63 = vld [vmem:[#allocation0] sm:$0xf] }
  0xbd   :  { %580 = vst [vmem:[%s1265_s1] sm:$0xf] %v578_v63 }

// kernel: neural_cde_forward.1
= control target key start
LH: loop header
LB: loop body
LE: loop exit
PB: predicated region body
PF: predicated region fallthrough
CT: control target
= control target key end

     0   :  { %v15352_v3 = vmov 0.0   ;;  %vm13270_vm0 = vmmov 0   ;;  %vm95_vm1 = vcmask 1043456   ;;  %vm91_vm2 = vcmask 31744   ;;  %s15340_s1 = inlined_call_operand.vmem [shape: f32[16,384], index: 1, kind: input, shape index: {}]   ;;  %s15341_s2 = inlined_call_operand.vmem [shape: f32[128,32], index: 2, kind: input, shape index: {}]   ;;  %s15342_s9 = inlined_call_operand.vmem [shape: f32[32,4], index: 9, kind: input, shape index: {}]   ;;  %s15343_s10 = inlined_call_operand.vmem [shape: f32[1,4], index: 10, kind: input, shape index: {}]   ;;  %s15344_s11 = inlined_call_operand.vmem [shape: f32[8,4], index: 11, kind: output, shape index: {}]   ;;  %s15345_s5 = inlined_call_operand.vmem [shape: f32[32,128], index: 5, kind: input, shape index: {}]   ;;  %s15346_s6 = inlined_call_operand.vmem [shape: f32[1,128], index: 6, kind: input, shape index: {}]   ;;  %s15347_s7 = inlined_call_operand.vmem [shape: f32[128,128], index: 7, kind: input, shape index: {}]   ;;  %s15348_s8 = inlined_call_operand.vmem [shape: f32[1,128], index: 8, kind: input, shape index: {}]   ;;  %s15349_s3 = inlined_call_operand.vmem [shape: f32[4,32], index: 3, kind: input, shape index: {}]   ;;  %s15350_s0 = inlined_call_operand.vmem [shape: f32[8,8,16], index: 0, kind: input, shape index: {}]   ;;  %s15351_s4 = inlined_call_operand.vmem [shape: f32[1,32], index: 4, kind: input, shape index: {}]  }
   0x1   :  { %v13338_v0 = vld [vmem:[%s15340_s1] sm:$0xff]  ;;  %v13343_v1 = vld [vmem:[%s15340_s1 + $0x8] sm:$0xff]  ;;  %v13348_v2 = vld [vmem:[%s15340_s1 + $0x10] sm:$0xff]  ;;  %8811 = vmatprep.subr.mxu0 %v15352_v3  ;;  %8813 = vmatprep.mubr.msk.f32.mxu0 %vm13270_vm0, %v15352_v3 }
   0x2   :  { %15357 = vst [vmem:[#allocation2_spill] sm:$0xff] %v13338_v0  ;;  %15358 = vst [vmem:[#allocation3_spill] sm:$0xff] %v13343_v1  ;;  %v13356_v4 = vld [vmem:[%s15340_s1 + $0x18] sm:$0xff]  ;;  %v13361_v5 = vld [vmem:[%s15340_s1 + $0x20] sm:$0xff] }
   0x3   :  { %15359 = vst [vmem:[#allocation4_spill] sm:$0xff] %v13348_v2  ;;  %15360 = vst [vmem:[#allocation5_spill] sm:$0xff] %v13356_v4  ;;  %v13366_v6 = vld [vmem:[%s15340_s1 + $0x28] sm:$0xff]  ;;  %v13371_v7 = vld [vmem:[%s15341_s2] sm:$0xff] }
   0x4   :  { %15361 = vst [vmem:[#allocation6_spill] sm:$0xff] %v13361_v5  ;;  %15362 = vst [vmem:[#allocation7_spill] sm:$0xff] %v13366_v6  ;;  %v13376_v8 = vld [vmem:[%s15341_s2 + $0x8] sm:$0xff]  ;;  %v13381_v9 = vld [vmem:[%s15341_s2 + $0x10] sm:$0xff] }
   0x5   :  { %15363 = vst [vmem:[#allocation8_spill] sm:$0xff] %v13371_v7  ;;  %15364 = vst [vmem:[#allocation9_spill] sm:$0xff] %v13376_v8  ;;  %v13386_v10 = vld [vmem:[%s15341_s2 + $0x18] sm:$0xff]  ;;  %v13391_v11 = vld [vmem:[%s15341_s2 + $0x20] sm:$0xff] }
   0x6   :  { %15365 = vst [vmem:[#allocation10_spill] sm:$0xff] %v13381_v9  ;;  %15366 = vst [vmem:[#allocation11_spill] sm:$0xff] %v13386_v10  ;;  %v13396_v12 = vld [vmem:[%s15341_s2 + $0x28] sm:$0xff]  ;;  %v13401_v13 = vld [vmem:[%s15341_s2 + $0x30] sm:$0xff] }
   0x7   :  { %15367 = vst [vmem:[#allocation12_spill] sm:$0xff] %v13391_v11  ;;  %15368 = vst [vmem:[#allocation13_spill] sm:$0xff] %v13396_v12  ;;  %v13406_v14 = vld [vmem:[%s15341_s2 + $0x38] sm:$0xff]  ;;  %v13411_v15 = vld [vmem:[%s15341_s2 + $0x40] sm:$0xff] }
   0x8   :  { %15369 = vst [vmem:[#allocation14_spill] sm:$0xff] %v13401_v13  ;;  %15370 = vst [vmem:[#allocation15_spill] sm:$0xff] %v13406_v14  ;;  %v13416_v16 = vld [vmem:[%s15341_s2 + $0x48] sm:$0xff]  ;;  %v13421_v17 = vld [vmem:[%s15341_s2 + $0x50] sm:$0xff] }
   0x9   :  { %v13426_v18 = vld [vmem:[%s15341_s2 + $0x58] sm:$0xff]  ;;  %v13431_v19 = vld [vmem:[%s15341_s2 + $0x60] sm:$0xff]  ;;  %v13436_v20 = vld [vmem:[%s15341_s2 + $0x68] sm:$0xff] }
   0xa   :  { %v13441_v21 = vld [vmem:[%s15341_s2 + $0x70] sm:$0xff]  ;;  %v13446_v22 = vld [vmem:[%s15341_s2 + $0x78] sm:$0xff]  ;;  %v13451_v23 = vld [vmem:[%s15345_s5] sm:$0xff] }
   0xb   :  { %15371 = vst [vmem:[#allocation16_spill] sm:$0xff] %v13451_v23  ;;  %v13456_v24 = vld [vmem:[%s15345_s5 + $0x8] sm:$0xff]  ;;  %v13461_v25 = vld [vmem:[%s15345_s5 + $0x10] sm:$0xff]  ;;  %v13466_v26 = vld [vmem:[%s15345_s5 + $0x18] sm:$0xff] }
   0xc   :  { %15372 = vst [vmem:[#allocation17_spill] sm:$0xff] %v13456_v24  ;;  %15373 = vst [vmem:[#allocation18_spill] sm:$0xff] %v13461_v25  ;;  %v13471_v27 = vld [vmem:[%s15346_s6] ss:$0 sm:$0xff]  ;;  %v13481_v29 = vld [vmem:[%s15347_s7 + $0x8] sm:$0xff] }
   0xd   :  { %15374 = vst [vmem:[#allocation19_spill] sm:$0xff] %v13466_v26  ;;  %v13476_v28 = vld [vmem:[%s15347_s7] sm:$0xff]  ;;  %15376 = vst [vmem:[#allocation21_spill] sm:$0xff] %v13481_v29  ;;  %v13486_v30 = vld [vmem:[%s15347_s7 + $0x10] sm:$0xff] }
   0xe   :  { %15375 = vst [vmem:[#allocation20_spill] sm:$0xff] %v13476_v28  ;;  %15377 = vst [vmem:[#allocation22_spill] sm:$0xff] %v13486_v30  ;;  %v13491_v31 = vld [vmem:[%s15347_s7 + $0x18] sm:$0xff]  ;;  %v13496_v32 = vld [vmem:[%s15347_s7 + $0x20] sm:$0xff] }
   0xf   :  { %15378 = vst [vmem:[#allocation23_spill] sm:$0xff] %v13491_v31  ;;  %15379 = vst [vmem:[#allocation24_spill] sm:$0xff] %v13496_v32  ;;  %v13501_v33 = vld [vmem:[%s15347_s7 + $0x28] sm:$0xff]  ;;  %v13506_v34 = vld [vmem:[%s15347_s7 + $0x30] sm:$0xff] }
  0x10   :  { %15380 = vst [vmem:[#allocation25_spill] sm:$0xff] %v13501_v33  ;;  %15381 = vst [vmem:[#allocation26_spill] sm:$0xff] %v13506_v34  ;;  %v13511_v35 = vld [vmem:[%s15347_s7 + $0x38] sm:$0xff]  ;;  %v13516_v36 = vld [vmem:[%s15347_s7 + $0x40] sm:$0xff] }
  0x11   :  { %15382 = vst [vmem:[#allocation27_spill] sm:$0xff] %v13511_v35  ;;  %15383 = vst [vmem:[#allocation28_spill] sm:$0xff] %v13516_v36  ;;  %v13521_v37 = vld [vmem:[%s15347_s7 + $0x48] sm:$0xff]  ;;  %v13526_v38 = vld [vmem:[%s15347_s7 + $0x50] sm:$0xff] }
  0x12   :  { %15384 = vst [vmem:[#allocation29_spill] sm:$0xff] %v13521_v37  ;;  %v13531_v39 = vld [vmem:[%s15347_s7 + $0x58] sm:$0xff]  ;;  %v13536_v40 = vld [vmem:[%s15347_s7 + $0x60] sm:$0xff]  ;;  %v13541_v41 = vld [vmem:[%s15347_s7 + $0x68] sm:$0xff] }
  0x13   :  { %v13546_v42 = vld [vmem:[%s15347_s7 + $0x70] sm:$0xff]  ;;  %v13551_v43 = vld [vmem:[%s15347_s7 + $0x78] sm:$0xff]  ;;  %v13556_v44 = vld [vmem:[%s15348_s8] ss:$0 sm:$0xff]  ;;  %s13570_s7 = smov 0  }
  0x14   :  { %v83_v45 = vld [vmem:[%s15349_s3] sm:$0xf] }
  0x15   :  { %8812 = vmatpush3.msk.msra.mxu0 %vm95_vm1, %v83_v45  ;;  %v82_v46 = vld [vmem:[%s15350_s0] sm:$0xff] }
  0x16   :  { %8814 = vmatmul.mubr.msk.f32.vlgmr.msra.gmra.mrb[0].mxu0 %vm91_vm2, %v82_v46  ;;  %v7511_v47 = vld [vmem:[%s15351_s4] ss:$0 sm:$0xff] }
  0xe9   :  { %v165_v48 = vpop.f32.mrb[0].mxu0 }
  0xea   :  { %v166_v49 = vadd.f32 %v7511_v47, %v165_v48   ;;  %v8815_v50 = vpop.f32.mrb[1].mxu0 }
  0xeb LB: > { %v15385_v1 = vld [vmem:[#allocation3_spill] sm:$0xff]  ;;  %v15386_v5 = vld [vmem:[#allocation6_spill] sm:$0xff]  ;;  %v15388_v4 = vld [vmem:[#allocation5_spill] sm:$0xff]  ;;  %v15353_v53 = vmov 0.0   ;;  %v15355_v54 = vmov 0.0|0.0   ;;  %s7514_s3 = sshll.u32 %s13267_s7, 3  ;;  %v13646_v45 = vpack.c.bf16 %v13531_v39, %v13526_v38  ;;  %v13651_v46 = vpack.c.bf16 %v13541_v41, %v13536_v40  ;;  %s13267_s7 = sphi %s13570_s7, %s174_s7   ;;  %v13263_v49 = vphi %v166_v49, %v15415_v49  }
  0xec   : > { %v11426_v51 = vpack.c.bf16 %v15386_v5, %v15385_v1  ;;  %v15387_v0 = vld [vmem:[#allocation2_spill] sm:$0xff]  ;;  %247 = vmatprep.mubr.f32.mxu0 %v15353_v53  ;;  %11430 = vmatprep.subr.bf16.mxu1 %v15355_v54  ;;  %v15389_v2 = vld [vmem:[#allocation4_spill] sm:$0xff]  ;;  %v15390_v6 = vld [vmem:[#allocation7_spill] sm:$0xff]  ;;  %vm13273_vm3 = vmmov 0   ;;  %s177_s25 = scalar_lea.vmem %s15350_s0, %s7514_s3  ;;  %vm179_vm4 = vcmask 130048   ;;  %vm342_vm5 = vcmask 261120  }
  0xed   : > { %v11428_v52 = vpack.c.bf16 %v15388_v4, %v15387_v0  ;;  %v11431_v55 = vpack.c.bf16 %v15390_v6, %v15389_v2  ;;  %8820 = vmatprep.mubr.msk.f32.mxu1 %vm13273_vm3, %v15353_v53  ;;  %v15391_v23 = vld [vmem:[#allocation16_spill] sm:$0xff]  ;;  %v15392_v24 = vld [vmem:[#allocation17_spill] sm:$0xff]  ;;  %v178_v57 = vld [vmem:[%s177_s25] sm:$0xff]  ;;  %v13658_v47 = vpack.c.bf16 %v13551_v43, %v13546_v42  ;;  %s174_s7 = sadd.s32 1, %s13267_s7  }
  0xee   : > { %11427 = vmatprep.subr.bf16.mxu0 %v11426_v51  ;;  %v13594_v56 = vpack.c.bf16 %v15392_v24, %v15391_v23  ;;  %v15393_v28 = vld [vmem:[#allocation20_spill] sm:$0xff]  ;;  %v15394_v29 = vld [vmem:[#allocation21_spill] sm:$0xff]  ;;  %v15395_v25 = vld [vmem:[#allocation18_spill] sm:$0xff]  ;;  %p171_p0 = scmp.ge.s32.totalorder %s174_s7, 8  }
  0xef   : > { %11429 = vmatpush1.bf16.msra.mxu0 %v11428_v52  ;;  %11432 = vmatpush3.bf16.msra.mxu1 %v11431_v55  ;;  %v13600_v58 = vpack.c.bf16 %v15394_v29, %v15393_v28  ;;  %v15396_v26 = vld [vmem:[#allocation19_spill] sm:$0xff]  ;;  %v15397_v30 = vld [vmem:[#allocation22_spill] sm:$0xff]  ;;  %v15399_v32 = vld [vmem:[#allocation24_spill] sm:$0xff] }
  0xf0   : > { %11433 = vmatprep.subr.bf16.mxu0 %v15355_v54  ;;  %11439 = vmatprep.subr.bf16.mxu1 %v15355_v54  ;;  %v13605_v59 = vpack.c.bf16 %v15396_v26, %v15395_v25  ;;  %v15398_v31 = vld [vmem:[#allocation23_spill] sm:$0xff]  ;;  %v15400_v33 = vld [vmem:[#allocation25_spill] sm:$0xff]  ;;  %v15401_v34 = vld [vmem:[#allocation26_spill] sm:$0xff] }
  0xf1   : > { %v13613_v60 = vpack.c.bf16 %v15398_v31, %v15397_v30  ;;  %v13622_v61 = vpack.c.bf16 %v15400_v33, %v15399_v32  ;;  %v15402_v35 = vld [vmem:[#allocation27_spill] sm:$0xff]  ;;  %v15403_v36 = vld [vmem:[#allocation28_spill] sm:$0xff]  ;;  %v15404_v37 = vld [vmem:[#allocation29_spill] sm:$0xff] }
  0xf2   : > { %7515 = vmatmul.mubr.msk.f32.vlgmr.msra.gmra.mrb[0].mxu0 %vm179_vm4, %v178_v57  ;;  %8821 = vmatmul.mubr.msk.f32.vlgmr.msra.gmra.mrb[0].mxu1 %vm179_vm4, %v178_v57  ;;  %v13633_v62 = vpack.c.bf16 %v15402_v35, %v15401_v34  ;;  %v13639_v63 = vpack.c.bf16 %v15404_v37, %v15403_v36  ;;  %v15405_v7 = vld [vmem:[#allocation8_spill] sm:$0xff]  ;;  %v15406_v8 = vld [vmem:[#allocation9_spill] sm:$0xff]  ;;  %v15407_v9 = vld [vmem:[#allocation10_spill] sm:$0xff] }
  0xf3   : > { %11435 = vmatpush3.bf16.msra.mxu0 %v13594_v56  ;;  %8831 = vmatprep.mubr.msk.f32.mxu0 %vm13273_vm3, %v15353_v53  ;;  %v13664_v48 = vpack.c.bf16 %v15406_v8, %v15405_v7  ;;  %v15408_v10 = vld [vmem:[#allocation11_spill] sm:$0xff]  ;;  %v15409_v11 = vld [vmem:[#allocation12_spill] sm:$0xff]  ;;  %v15410_v12 = vld [vmem:[#allocation13_spill] sm:$0xff] }
  0xf4   : > { %11436 = vmatprep.subr.bf16.mxu0 %v15355_v54  ;;  %11441 = vmatpush3.bf16.msra.mxu1 %v13600_v58  ;;  %v13669_v50 = vpack.c.bf16 %v15408_v10, %v15407_v9  ;;  %v13675_v51 = vpack.c.bf16 %v15410_v12, %v15409_v11  ;;  %v15411_v13 = vld [vmem:[#allocation14_spill] sm:$0xff]  ;;  %v15412_v14 = vld [vmem:[#allocation15_spill] sm:$0xff] }
  0xf5   : > { %11442 = vmatprep.subr.bf16.mxu1 %v15355_v54  ;;  %8866 = vmatprep.mubr.msk.f32.mxu1 %vm13273_vm3, %v15353_v53  ;;  %v13681_v52 = vpack.c.bf16 %v15412_v14, %v15411_v13 }
  0xf7   : > { %11438 = vmatpush3.bf16.msra.mxu0 %v13605_v59 }
  0xf8   : > { %11444 = vmatpush3.bf16.msra.mxu1 %v13613_v60  ;;  %11463 = vmatprep.subr.bf16.mxu0 %v15355_v54 }
  0xf9   : > { %11445 = vmatprep.subr.bf16.mxu1 %v15355_v54 }
  0xfa   : > { %8832 = vmatmul.mubr.msk.f32.vlgmr.msra.gmra.mrb[2].mxu0 %vm342_vm5, %v13263_v49 }
  0xfb   : > { %8901 = vmatprep.mubr.msk.f32.mxu0 %vm13273_vm3, %v15353_v53  ;;  %11465 = vmatpush3.bf16.msra.mxu0 %v13664_v48 }
  0xfc   : > { %11447 = vmatpush3.bf16.msra.mxu1 %v13622_v61  ;;  %11466 = vmatprep.subr.bf16.mxu0 %v15355_v54 }
  0xfd   : > { %11448 = vmatprep.subr.bf16.mxu1 %v15355_v54 }
  0xff   : > { %11468 = vmatpush3.bf16.msra.mxu0 %v13669_v50 }
 0x100   : > { %11450 = vmatpush3.bf16.msra.mxu1 %v13633_v62  ;;  %11469 = vmatprep.subr.bf16.mxu0 %v15355_v54 }
 0x101   : > { %11451 = vmatprep.subr.bf16.mxu1 %v15355_v54 }
 0x103   : > { %11471 = vmatpush3.bf16.msra.mxu0 %v13675_v51 }
 0x104   : > { %11453 = vmatpush3.bf16.msra.mxu1 %v13639_v63  ;;  %11472 = vmatprep.subr.bf16.mxu0 %v15355_v54 }
 0x105   : > { %11454 = vmatprep.subr.bf16.mxu1 %v15355_v54 }
 0x107   : > { %11474 = vmatpush3.bf16.msra.mxu0 %v13681_v52 }
 0x108   : > { %11456 = vmatpush3.bf16.msra.mxu1 %v13646_v45  ;;  %11475 = vmatprep.subr.bf16.mxu0 %v15355_v54 }
 0x109   : > { %11457 = vmatprep.subr.bf16.mxu1 %v15355_v54 }
 0x10c   : > { %11459 = vmatpush3.bf16.msra.mxu1 %v13651_v46 }
 0x10d   : > { %11460 = vmatprep.subr.bf16.mxu1 %v15355_v54 }
 0x110   : > { %11462 = vmatpush3.bf16.msra.mxu1 %v13658_v47 }
 0x111   : > { %11487 = vmatprep.subr.bf16.mxu1 %v15355_v54 }
 0x1c5   : > { %v13686_v55 = vpop.f32.mrb[0].mxu0  ;;  %v13688_v57 = vpop.f32.mrb[0].mxu1 }
 0x1c6   : > { %v13690_v3 = vpop.f32.mrb[1].mxu0  ;;  %v8822_v53 = vpop.f32.mrb[1].mxu1  ;;  %v326_v0 = vmul.f32 0.0, %v13688_v57  ;;  %v330_v1 = vmul.f32 0.00390625, %v13688_v57  ;;  %v334_v2 = vmul.f32 0.015625, %v13688_v57  ;;  %v1227_v4 = vmul.f32 0.03515625, %v13688_v57 }
 0x1c7   : > { %v324_v5 = vmul.f32 0.0, %v13690_v3  ;;  %v328_v6 = vmul.f32 0.0625, %v13690_v3  ;;  %v332_v54 = vmul.f32 0.125, %v13690_v3  ;;  %v1225_v7 = vmul.f32 0.1875, %v13690_v3 }
 0x1c8   : > { %v1229_v8 = vmul.f32 0.25, %v13690_v3  ;;  %v1231_v53 = vmul.f32 0.0625, %v13688_v57  ;;  %v2109_v9 = vmul.f32 0.3125, %v13690_v3  ;;  %v2111_v10 = vmul.f32 0.09765625, %v13688_v57 }
 0x1c9   : > { %v325_v11 = vadd.f32 %v324_v5, %v13686_v55  ;;  %v329_v12 = vadd.f32 %v328_v6, %v13686_v55  ;;  %v333_v13 = vadd.f32 %v332_v54, %v13686_v55  ;;  %v1226_v14 = vadd.f32 %v1225_v7, %v13686_v55 }
 0x1ca   : > { %v1230_v23 = vadd.f32 %v1229_v8, %v13686_v55  ;;  %v2110_v24 = vadd.f32 %v2109_v9, %v13686_v55  ;;  %v2113_v25 = vmul.f32 0.375, %v13690_v3  ;;  %v2115_v26 = vmul.f32 0.140625, %v13688_v57 }
 0x1cb   : > { %v13712_v28 = vadd.f32 %v326_v0, %v325_v11  ;;  %v13714_v29 = vadd.f32 %v330_v1, %v329_v12  ;;  %v13716_v30 = vadd.f32 %v334_v2, %v333_v13  ;;  %v13718_v5 = vadd.f32 %v1227_v4, %v1226_v14 }
 0x1cc   : > { %v13720_v6 = vadd.f32 %v1231_v53, %v1230_v23  ;;  %v13722_v54 = vadd.f32 %v2111_v10, %v2110_v24  ;;  %v2114_v7 = vadd.f32 %v2113_v25, %v13686_v55  ;;  %v2993_v8 = vmul.f32 0.4375, %v13690_v3 }
 0x1cd   : > { %v412_v9 = vpop.f32.mrb[2].mxu0  ;;  %v2995_v31 = vmul.f32 0.19140625, %v13688_v57  ;;  %v2997_v0 = vmul.f32 0.5, %v13690_v3  ;;  %v2999_v1 = vmul.f32 0.25, %v13688_v57  ;;  %v3877_v2 = vmul.f32 0.5625, %v13690_v3 }
 0x1ce   : > { %v413_v4 = vadd.f32 %v13471_v27, %v412_v9  ;;  %v8833_v11 = vpop.f32.mrb[3].mxu0  ;;  %v13731_v12 = vadd.f32 %v2115_v26, %v2114_v7  ;;  %v2994_v10 = vadd.f32 %v2993_v8, %v13686_v55  ;;  %v3879_v13 = vmul.f32 0.31640625, %v13688_v57 }
 0x1cf   : > { %v2998_v14 = vadd.f32 %v2997_v0, %v13686_v55  ;;  %v3878_v23 = vadd.f32 %v3877_v2, %v13686_v55  ;;  %v3881_v24 = vmul.f32 0.625, %v13690_v3  ;;  %v3883_v25 = vmul.f32 0.390625, %v13688_v57 }
 0x1d0   : > { %v416_v53 = vmax.f32 %v413_v4, 0.0  ;;  %v13739_v32 = vadd.f32 %v2995_v31, %v2994_v10  ;;  %v4761_v9 = vmul.f32 0.6875, %v13690_v3  ;;  %v4763_v26 = vmul.f32 0.47265625, %v13688_v57 }
 0x1d1   : > { %v13743_v7 = vadd.f32 %v2999_v1, %v2998_v14  ;;  %v13745_v8 = vadd.f32 %v3879_v13, %v3878_v23  ;;  %v3882_v11 = vadd.f32 %v3881_v24, %v13686_v55  ;;  %v4765_v0 = vmul.f32 0.75, %v13690_v3 }
 0x1d2   : > { %8867 = vmatmul.mubr.f32.vlgmr.msra.gmra.mrb[2].mxu1 %v416_v53  ;;  %v4762_v2 = vadd.f32 %v4761_v9, %v13686_v55  ;;  %v4767_v33 = vmul.f32 0.5625, %v13688_v57  ;;  %v5645_v31 = vmul.f32 0.8125, %v13690_v3  ;;  %v5647_v4 = vmul.f32 0.66015625, %v13688_v57 }
 0x1d3   : > { %11489 = vmatpush3.bf16.msra.mxu1 %v13594_v56  ;;  %v15413_v10 = vmov 0.0   ;;  %v13756_v1 = vadd.f32 %v3883_v25, %v3882_v11  ;;  %v4766_v13 = vadd.f32 %v4765_v0, %v13686_v55  ;;  %v5649_v14 = vmul.f32 0.875, %v13690_v3 }
 0x1d4   : > { %8912 = vmatprep.mubr.msk.f32.mxu1 %vm13273_vm3, %v15413_v10  ;;  %v5651_v23 = vmul.f32 0.765625, %v13688_v57  ;;  %v15414_v24 = vmov 0.0|0.0   ;;  %v13762_v53 = vadd.f32 %v4763_v26, %v4762_v2  ;;  %v5646_v9 = vadd.f32 %v5645_v31, %v13686_v55 }
 0x1d5   : > { %11490 = vmatprep.subr.bf16.mxu1 %v15414_v24  ;;  %v6529_v34 = vmul.f32 0.9375, %v13690_v3  ;;  %v6531_v35 = vmul.f32 0.87890625, %v13688_v57  ;;  %v13767_v36 = vadd.f32 %v4767_v33, %v4766_v13  ;;  %v5650_v25 = vadd.f32 %v5649_v14, %v13686_v55 }
 0x1d6   : > { %v6533_v11 = vadd.f32 %v13690_v3, %v13686_v55  ;;  %v13772_v0 = vadd.f32 %v5647_v4, %v5646_v9  ;;  %v13786_v31 = vpack.c.bf16 %v13416_v16, %v13411_v15  ;;  %v13792_v3 = vpack.c.bf16 %v13426_v18, %v13421_v17  ;;  %v7414_v15 = vld [vmem:[%s15342_s9 + $0x18] sm:$0xff] (%p171_p0)  ;;  %v7551_v17 = vld [vmem:[%s15343_s10] ss:$0 sm:$0xff] (%p171_p0) }
 0x1d7   : > { %v6530_v37 = vadd.f32 %v6529_v34, %v13686_v55  ;;  %11492 = vmatpush3.bf16.msra.mxu1 %v13605_v59  ;;  %v13776_v26 = vadd.f32 %v5651_v23, %v5650_v25  ;;  %v13797_v34 = vpack.c.bf16 %v13436_v20, %v13431_v19 }
 0x1d8   : > { %v13779_v2 = vadd.f32 %v6533_v11, %v13688_v57  ;;  %11517 = vmatprep.subr.bf16.mxu1 %v15414_v24  ;;  %11477 = vmatpush3.bf16.msra.mxu0 %v13786_v31 }
 0x1d9   : > { %v13782_v33 = vadd.f32 %v6531_v35, %v6530_v37  ;;  %11478 = vmatprep.subr.bf16.mxu0 %v15414_v24  ;;  %v13803_v35 = vpack.c.bf16 %v13446_v22, %v13441_v21 }
 0x1dc   : > { %11480 = vmatpush3.bf16.msra.mxu0 %v13792_v3 }
 0x1dd   : > { %11481 = vmatprep.subr.bf16.mxu0 %v15414_v24 }
 0x1e0   : > { %11483 = vmatpush3.bf16.msra.mxu0 %v13797_v34 }
 0x1e1   : > { %11484 = vmatprep.subr.bf16.mxu0 %v15414_v24 }
 0x1e4   : > { %11486 = vmatpush3.bf16.msra.mxu0 %v13803_v35 }
 0x1e5   : > { %11493 = vmatprep.subr.bf16.mxu0 %v15414_v24 }
 0x2a5   : > { %v489_v37 = vpop.f32.mrb[2].mxu1 }
 0x2a6   : > { %v490_v55 = vadd.f32 %v13556_v44, %v489_v37  ;;  %v8868_v57 = vpop.f32.mrb[3].mxu1 }
 0x2a8   : > { %13189 = vtanh.f32 %v490_v55 }
 0x2b2   : > { %v13190_v4 = vpop.eup %13189 }
 0x2b3   : > { %v494_v13 = vmul.f32 %v13190_v4, %v13712_v28 }
 0x2b5   : > { %8902 = vmatmul.mubr.f32.vlgmr.msra.gmra.mrb[4].mxu0 %v494_v13 }
 0x2b6   : > { %11495 = vmatpush3.bf16.msra.mxu0 %v13600_v58  ;;  %8947 = vmatprep.mubr.msk.f32.mxu0 %vm13273_vm3, %v15413_v10 }
 0x2b7   : > { %11496 = vmatprep.subr.bf16.mxu0 %v15414_v24 }
 0x2ba   : > { %11498 = vmatpush3.bf16.msra.mxu0 %v13613_v60 }
 0x2bb   : > { %11499 = vmatprep.subr.bf16.mxu0 %v15414_v24 }
 0x2be   : > { %11501 = vmatpush3.bf16.msra.mxu0 %v13622_v61 }
 0x2bf   : > { %11502 = vmatprep.subr.bf16.mxu0 %v15414_v24 }
 0x2c2   : > { %11504 = vmatpush3.bf16.msra.mxu0 %v13633_v62 }
 0x2c3   : > { %11505 = vmatprep.subr.bf16.mxu0 %v15414_v24 }
 0x2c6   : > { %11507 = vmatpush3.bf16.msra.mxu0 %v13639_v63 }
 0x2c7   : > { %11508 = vmatprep.subr.bf16.mxu0 %v15414_v24 }
 0x2ca   : > { %11510 = vmatpush3.bf16.msra.mxu0 %v13646_v45 }
 0x2cb   : > { %11511 = vmatprep.subr.bf16.mxu0 %v15414_v24 }
 0x2ce   : > { %11513 = vmatpush3.bf16.msra.mxu0 %v13651_v46 }
 0x2cf   : > { %11514 = vmatprep.subr.bf16.mxu0 %v15414_v24 }
 0x2d2   : > { %11516 = vmatpush3.bf16.msra.mxu0 %v13658_v47 }
 0x2d3   : > { %11541 = vmatprep.subr.bf16.mxu0 %v15414_v24 }
 0x388   : > { %v13828_v28 = vpop.f32.mrb[4].mxu0 }
 0x389   : > { %v565_v14 = vmul.f32 0.0625, %v13828_v28  ;;  %v8903_v23 = vpop.f32.mrb[5].mxu0 }
 0x38b   : > { %v566_v9 = vadd.f32 %v13263_v49, %v565_v14 }
 0x38d   : > { %8913 = vmatmul.mubr.msk.f32.vlgmr.msra.gmra.mrb[4].mxu1 %vm342_vm5, %v566_v9 }
 0x38e   : > { %11519 = vmatpush3.bf16.msra.mxu1 %v13664_v48  ;;  %8982 = vmatprep.mubr.msk.f32.mxu1 %vm13273_vm3, %v15413_v10 }
 0x38f   : > { %11520 = vmatprep.subr.bf16.mxu1 %v15414_v24 }
 0x392   : > { %11522 = vmatpush3.bf16.msra.mxu1 %v13669_v50 }
 0x393   : > { %11523 = vmatprep.subr.bf16.mxu1 %v15414_v24 }
 0x396   : > { %11525 = vmatpush3.bf16.msra.mxu1 %v13675_v51 }
 0x397   : > { %11526 = vmatprep.subr.bf16.mxu1 %v15414_v24 }
 0x39a   : > { %11528 = vmatpush3.bf16.msra.mxu1 %v13681_v52 }
 0x39b   : > { %11529 = vmatprep.subr.bf16.mxu1 %v15414_v24 }
 0x39e   : > { %11531 = vmatpush3.bf16.msra.mxu1 %v13786_v31 }
 0x39f   : > { %11532 = vmatprep.subr.bf16.mxu1 %v15414_v24 }
 0x3a2   : > { %11534 = vmatpush3.bf16.msra.mxu1 %v13792_v3 }
 0x3a3   : > { %11535 = vmatprep.subr.bf16.mxu1 %v15414_v24 }
 0x3a6   : > { %11537 = vmatpush3.bf16.msra.mxu1 %v13797_v34 }
 0x3a7   : > { %11538 = vmatprep.subr.bf16.mxu1 %v15414_v24 }
 0x3aa   : > { %11540 = vmatpush3.bf16.msra.mxu1 %v13803_v35 }
 0x3ab   : > { %11547 = vmatprep.subr.bf16.mxu1 %v15414_v24 }
 0x460   : > { %v636_v25 = vpop.f32.mrb[4].mxu1 }
 0x461   : > { %v637_v11 = vadd.f32 %v13471_v27, %v636_v25  ;;  %v8914_v37 = vpop.f32.mrb[5].mxu1 }
 0x463   : > { %v640_v55 = vmax.f32 %v637_v11, 0.0 }
 0x465   : > { %8948 = vmatmul.mubr.f32.vlgmr.msra.gmra.mrb[6].mxu0 %v640_v55 }
 0x466   : > { %11543 = vmatpush3.bf16.msra.mxu0 %v13594_v56  ;;  %8993 = vmatprep.mubr.msk.f32.mxu0 %vm13273_vm3, %v15413_v10 }
 0x467   : > { %11544 = vmatprep.subr.bf16.mxu0 %v15414_v24 }
 0x46a   : > { %11546 = vmatpush3.bf16.msra.mxu0 %v13605_v59 }
 0x46b   : > { %11571 = vmatprep.subr.bf16.mxu0 %v15414_v24 }
 0x538   : > { %v707_v57 = vpop.f32.mrb[6].mxu0 }
 0x539   : > { %v708_v4 = vadd.f32 %v13556_v44, %v707_v57  ;;  %v8949_v13 = vpop.f32.mrb[7].mxu0 }
 0x53b   : > { %13191 = vtanh.f32 %v708_v4 }
 0x545   : > { %v13192_v14 = vpop.eup %13191 }
 0x546   : > { %v712_v23 = vmul.f32 %v13192_v14, %v13714_v29 }
 0x548   : > { %8983 = vmatmul.mubr.f32.vlgmr.msra.gmra.mrb[6].mxu1 %v712_v23 }
 0x549   : > { %11549 = vmatpush3.bf16.msra.mxu1 %v13600_v58  ;;  %9028 = vmatprep.mubr.msk.f32.mxu1 %vm13273_vm3, %v15413_v10 }
 0x54a   : > { %11550 = vmatprep.subr.bf16.mxu1 %v15414_v24 }
 0x54d   : > { %11552 = vmatpush3.bf16.msra.mxu1 %v13613_v60 }
 0x54e   : > { %11553 = vmatprep.subr.bf16.mxu1 %v15414_v24 }
 0x551   : > { %11555 = vmatpush3.bf16.msra.mxu1 %v13622_v61 }
 0x552   : > { %11556 = vmatprep.subr.bf16.mxu1 %v15414_v24 }
 0x555   : > { %11558 = vmatpush3.bf16.msra.mxu1 %v13633_v62 }
 0x556   : > { %11559 = vmatprep.subr.bf16.mxu1 %v15414_v24 }
 0x559   : > { %11561 = vmatpush3.bf16.msra.mxu1 %v13639_v63 }
 0x55a   : > { %11562 = vmatprep.subr.bf16.mxu1 %v15414_v24 }
 0x55d   : > { %11564 = vmatpush3.bf16.msra.mxu1 %v13646_v45 }
 0x55e   : > { %11565 = vmatprep.subr.bf16.mxu1 %v15414_v24 }
 0x561   : > { %11567 = vmatpush3.bf16.msra.mxu1 %v13651_v46 }
 0x562   : > { %11568 = vmatprep.subr.bf16.mxu1 %v15414_v24 }
 0x565   : > { %11570 = vmatpush3.bf16.msra.mxu1 %v13658_v47 }
 0x566   : > { %11595 = vmatprep.subr.bf16.mxu1 %v15414_v24 }
 0x61b   : > { %v779_v9 = vpop.f32.mrb[6].mxu1 }
 0x61c   : > { %v783_v25 = vmul.f32 0.0625, %v779_v9  ;;  %v8984_v11 = vpop.f32.mrb[7].mxu1 }
 0x61e   : > { %v784_v37 = vadd.f32 %v13263_v49, %v783_v25 }
 0x620   : > { %8994 = vmatmul.mubr.msk.f32.vlgmr.msra.gmra.mrb[8].mxu0 %vm342_vm5, %v784_v37 }
 0x621   : > { %11573 = vmatpush3.bf16.msra.mxu0 %v13664_v48  ;;  %9063 = vmatprep.mubr.msk.f32.mxu0 %vm13273_vm3, %v15413_v10 }
 0x622   : > { %11574 = vmatprep.subr.bf16.mxu0 %v15414_v24 }
 0x625   : > { %11576 = vmatpush3.bf16.msra.mxu0 %v13669_v50 }
 0x626   : > { %11577 = vmatprep.subr.bf16.mxu0 %v15414_v24 }
 0x629   : > { %11579 = vmatpush3.bf16.msra.mxu0 %v13675_v51 }
 0x62a   : > { %11580 = vmatprep.subr.bf16.mxu0 %v15414_v24 }
 0x62d   : > { %11582 = vmatpush3.bf16.msra.mxu0 %v13681_v52 }
 0x62e   : > { %11583 = vmatprep.subr.bf16.mxu0 %v15414_v24 }
 0x631   : > { %11585 = vmatpush3.bf16.msra.mxu0 %v13786_v31 }
 0x632   : > { %11586 = vmatprep.subr.bf16.mxu0 %v15414_v24 }
 0x635   : > { %11588 = vmatpush3.bf16.msra.mxu0 %v13792_v3 }
 0x636   : > { %11589 = vmatprep.subr.bf16.mxu0 %v15414_v24 }
 0x639   : > { %11591 = vmatpush3.bf16.msra.mxu0 %v13797_v34 }
 0x63a   : > { %11592 = vmatprep.subr.bf16.mxu0 %v15414_v24 }
 0x63d   : > { %11594 = vmatpush3.bf16.msra.mxu0 %v13803_v35 }
 0x63e   : > { %11601 = vmatprep.subr.bf16.mxu0 %v15414_v24 }
 0x6f3   : > { %v854_v55 = vpop.f32.mrb[8].mxu0 }
 0x6f4   : > { %v855_v57 = vadd.f32 %v13471_v27, %v854_v55  ;;  %v8995_v4 = vpop.f32.mrb[9].mxu0 }
 0x6f6   : > { %v858_v13 = vmax.f32 %v855_v57, 0.0 }
 0x6f8   : > { %9029 = vmatmul.mubr.f32.vlgmr.msra.gmra.mrb[8].mxu1 %v858_v13 }
 0x6f9   : > { %11597 = vmatpush3.bf16.msra.mxu1 %v13594_v56  ;;  %9074 = vmatprep.mubr.msk.f32.mxu1 %vm13273_vm3, %v15413_v10 }
 0x6fa   : > { %11598 = vmatprep.subr.bf16.mxu1 %v15414_v24 }
 0x6fd   : > { %11600 = vmatpush3.bf16.msra.mxu1 %v13605_v59 }
 0x6fe   : > { %11625 = vmatprep.subr.bf16.mxu1 %v15414_v24 }
 0x7cb   : > { %v925_v14 = vpop.f32.mrb[8].mxu1 }
 0x7cc   : > { %v926_v23 = vadd.f32 %v13556_v44, %v925_v14  ;;  %v9030_v25 = vpop.f32.mrb[9].mxu1 }
 0x7ce   : > { %13193 = vtanh.f32 %v926_v23 }
 0x7d8   : > { %v13194_v11 = vpop.eup %13193 }
 0x7d9   : > { %v930_v37 = vmul.f32 %v13194_v11, %v13714_v29 }
 0x7db   : > { %9064 = vmatmul.mubr.f32.vlgmr.msra.gmra.mrb[10].mxu0 %v930_v37 }
 0x7dc   : > { %11603 = vmatpush3.bf16.msra.mxu0 %v13600_v58  ;;  %9109 = vmatprep.mubr.msk.f32.mxu0 %vm13273_vm3, %v15413_v10 }
 0x7dd   : > { %11604 = vmatprep.subr.bf16.mxu0 %v15414_v24 }
 0x7e0   : > { %11606 = vmatpush3.bf16.msra.mxu0 %v13613_v60 }
 0x7e1   : > { %11607 = vmatprep.subr.bf16.mxu0 %v15414_v24 }
 0x7e4   : > { %11609 = vmatpush3.bf16.msra.mxu0 %v13622_v61 }
 0x7e5   : > { %11610 = vmatprep.subr.bf16.mxu0 %v15414_v24 }
 0x7e8   : > { %11612 = vmatpush3.bf16.msra.mxu0 %v13633_v62 }
 0x7e9   : > { %11613 = vmatprep.subr.bf16.mxu0 %v15414_v24 }
 0x7ec   : > { %11615 = vmatpush3.bf16.msra.mxu0 %v13639_v63 }
 0x7ed   : > { %11616 = vmatprep.subr.bf16.mxu0 %v15414_v24 }
 0x7f0   : > { %11618 = vmatpush3.bf16.msra.mxu0 %v13646_v45 }
 0x7f1   : > { %11619 = vmatprep.subr.bf16.mxu0 %v15414_v24 }
 0x7f4   : > { %11621 = vmatpush3.bf16.msra.mxu0 %v13651_v46 }
 0x7f5   : > { %11622 = vmatprep.subr.bf16.mxu0 %v15414_v24 }
 0x7f8   : > { %11624 = vmatpush3.bf16.msra.mxu0 %v13658_v47 }
 0x7f9   : > { %11649 = vmatprep.subr.bf16.mxu0 %v15414_v24 }
 0x8ae   : > { %v997_v29 = vpop.f32.mrb[10].mxu0 }
 0x8af   : > { %v1001_v55 = vmul.f32 0.125, %v997_v29  ;;  %v1219_v57 = vadd.f32 %v997_v29, %v779_v9  ;;  %v9065_v4 = vpop.f32.mrb[11].mxu0 }
 0x8b1   : > { %v1002_v13 = vadd.f32 %v13263_v49, %v1001_v55  ;;  %v1220_v14 = vmul.f32 2.0, %v1219_v57 }
 0x8b3   : > { %9075 = vmatmul.mubr.msk.f32.vlgmr.msra.gmra.mrb[10].mxu1 %vm342_vm5, %v1002_v13  ;;  %v1221_v23 = vadd.f32 %v1220_v14, %v13828_v28 }
 0x8b4   : > { %11627 = vmatpush3.bf16.msra.mxu1 %v13664_v48  ;;  %9144 = vmatprep.mubr.msk.f32.mxu1 %vm13273_vm3, %v15413_v10 }
 0x8b5   : > { %11628 = vmatprep.subr.bf16.mxu1 %v15414_v24 }
 0x8b8   : > { %11630 = vmatpush3.bf16.msra.mxu1 %v13669_v50 }
 0x8b9   : > { %11631 = vmatprep.subr.bf16.mxu1 %v15414_v24 }
 0x8bc   : > { %11633 = vmatpush3.bf16.msra.mxu1 %v13675_v51 }
 0x8bd   : > { %11634 = vmatprep.subr.bf16.mxu1 %v15414_v24 }
 0x8c0   : > { %11636 = vmatpush3.bf16.msra.mxu1 %v13681_v52 }
 0x8c1   : > { %11637 = vmatprep.subr.bf16.mxu1 %v15414_v24 }
 0x8c4   : > { %11639 = vmatpush3.bf16.msra.mxu1 %v13786_v31 }
 0x8c5   : > { %11640 = vmatprep.subr.bf16.mxu1 %v15414_v24 }
 0x8c8   : > { %11642 = vmatpush3.bf16.msra.mxu1 %v13792_v3 }
 0x8c9   : > { %11643 = vmatprep.subr.bf16.mxu1 %v15414_v24 }
 0x8cc   : > { %11645 = vmatpush3.bf16.msra.mxu1 %v13797_v34 }
 0x8cd   : > { %11646 = vmatprep.subr.bf16.mxu1 %v15414_v24 }
 0x8d0   : > { %11648 = vmatpush3.bf16.msra.mxu1 %v13803_v35 }
 0x8d1   : > { %11655 = vmatprep.subr.bf16.mxu1 %v15414_v24 }
 0x986   : > { %v1072_v28 = vpop.f32.mrb[10].mxu1 }
 0x987   : > { %v1073_v9 = vadd.f32 %v13471_v27, %v1072_v28  ;;  %v9076_v25 = vpop.f32.mrb[11].mxu1 }
 0x989   : > { %v1076_v11 = vmax.f32 %v1073_v9, 0.0 }
 0x98b   : > { %9110 = vmatmul.mubr.f32.vlgmr.msra.gmra.mrb[12].mxu0 %v1076_v11 }
 0x98c   : > { %11651 = vmatpush3.bf16.msra.mxu0 %v13594_v56  ;;  %9155 = vmatprep.mubr.msk.f32.mxu0 %vm13273_vm3, %v15413_v10 }
 0x98d   : > { %11652 = vmatprep.subr.bf16.mxu0 %v15414_v24 }
 0x990   : > { %11654 = vmatpush3.bf16.msra.mxu0 %v13605_v59 }
 0x991   : > { %11679 = vmatprep.subr.bf16.mxu0 %v15414_v24 }
 0xa5e   : > { %v1143_v37 = vpop.f32.mrb[12].mxu0 }
 0xa5f   : > { %v1144_v29 = vadd.f32 %v13556_v44, %v1143_v37  ;;  %v9111_v55 = vpop.f32.mrb[13].mxu0 }
 0xa61   : > { %13195 = vtanh.f32 %v1144_v29 }
 0xa6b   : > { %v13196_v57 = vpop.eup %13195 }
 0xa6c   : > { %v1148_v4 = vmul.f32 %v13196_v57, %v13716_v30 }
 0xa6e   : > { %9145 = vmatmul.mubr.f32.vlgmr.msra.gmra.mrb[12].mxu1 %v1148_v4 }
 0xa6f   : > { %11657 = vmatpush3.bf16.msra.mxu1 %v13600_v58  ;;  %9190 = vmatprep.mubr.msk.f32.mxu1 %vm13273_vm3, %v15413_v10 }
 0xa70   : > { %11658 = vmatprep.subr.bf16.mxu1 %v15414_v24 }
 0xa73   : > { %11660 = vmatpush3.bf16.msra.mxu1 %v13613_v60 }
 0xa74   : > { %11661 = vmatprep.subr.bf16.mxu1 %v15414_v24 }
 0xa77   : > { %11663 = vmatpush3.bf16.msra.mxu1 %v13622_v61 }
 0xa78   : > { %11664 = vmatprep.subr.bf16.mxu1 %v15414_v24 }
 0xa7b   : > { %11666 = vmatpush3.bf16.msra.mxu1 %v13633_v62 }
 0xa7c   : > { %11667 = vmatprep.subr.bf16.mxu1 %v15414_v24 }
 0xa7f   : > { %11669 = vmatpush3.bf16.msra.mxu1 %v13639_v63 }
 0xa80   : > { %11670 = vmatprep.subr.bf16.mxu1 %v15414_v24 }
 0xa83   : > { %11672 = vmatpush3.bf16.msra.mxu1 %v13646_v45 }
 0xa84   : > { %11673 = vmatprep.subr.bf16.mxu1 %v15414_v24 }
 0xa87   : > { %11675 = vmatpush3.bf16.msra.mxu1 %v13651_v46 }
 0xa88   : > { %11676 = vmatprep.subr.bf16.mxu1 %v15414_v24 }
 0xa8b   : > { %11678 = vmatpush3.bf16.msra.mxu1 %v13658_v47 }
 0xa8c   : > { %11703 = vmatprep.subr.bf16.mxu1 %v15414_v24 }
 0xb41   : > { %v1215_v13 = vpop.f32.mrb[12].mxu1 }
 0xb42   : > { %v1222_v14 = vadd.f32 %v1221_v23, %v1215_v13  ;;  %v9146_v28 = vpop.f32.mrb[13].mxu1 }
 0xb44   : > { %v1223_v9 = vmul.f32 0.020833334, %v1222_v14 }
 0xb46   : > { %v13974_v25 = vadd.f32 %v13263_v49, %v1223_v9 }
 0xb48   : > { %9156 = vmatmul.mubr.msk.f32.vlgmr.msra.gmra.mrb[14].mxu0 %vm342_vm5, %v13974_v25 }
 0xb49   : > { %11681 = vmatpush3.bf16.msra.mxu0 %v13664_v48  ;;  %9225 = vmatprep.mubr.msk.f32.mxu0 %vm13273_vm3, %v15413_v10 }
 0xb4a   : > { %11682 = vmatprep.subr.bf16.mxu0 %v15414_v24 }
 0xb4d   : > { %11684 = vmatpush3.bf16.msra.mxu0 %v13669_v50 }
 0xb4e   : > { %11685 = vmatprep.subr.bf16.mxu0 %v15414_v24 }
 0xb51   : > { %11687 = vmatpush3.bf16.msra.mxu0 %v13675_v51 }
 0xb52   : > { %11688 = vmatprep.subr.bf16.mxu0 %v15414_v24 }
 0xb55   : > { %11690 = vmatpush3.bf16.msra.mxu0 %v13681_v52 }
 0xb56   : > { %11691 = vmatprep.subr.bf16.mxu0 %v15414_v24 }
 0xb59   : > { %11693 = vmatpush3.bf16.msra.mxu0 %v13786_v31 }
 0xb5a   : > { %11694 = vmatprep.subr.bf16.mxu0 %v15414_v24 }
 0xb5d   : > { %11696 = vmatpush3.bf16.msra.mxu0 %v13792_v3 }
 0xb5e   : > { %11697 = vmatprep.subr.bf16.mxu0 %v15414_v24 }
 0xb61   : > { %11699 = vmatpush3.bf16.msra.mxu0 %v13797_v34 }
 0xb62   : > { %11700 = vmatprep.subr.bf16.mxu0 %v15414_v24 }
 0xb65   : > { %11702 = vmatpush3.bf16.msra.mxu0 %v13803_v35 }
 0xb66   : > { %11709 = vmatprep.subr.bf16.mxu0 %v15414_v24 }
 0xc1b   : > { %v1302_v49 = vpop.f32.mrb[14].mxu0 }
 0xc1c   : > { %v1303_v23 = vadd.f32 %v13471_v27, %v1302_v49  ;;  %v9157_v11 = vpop.f32.mrb[15].mxu0 }
 0xc1e   : > { %v1306_v37 = vmax.f32 %v1303_v23, 0.0 }
 0xc20   : > { %9191 = vmatmul.mubr.f32.vlgmr.msra.gmra.mrb[14].mxu1 %v1306_v37 }
 0xc21   : > { %11705 = vmatpush3.bf16.msra.mxu1 %v13594_v56  ;;  %9236 = vmatprep.mubr.msk.f32.mxu1 %vm13273_vm3, %v15413_v10 }
 0xc22   : > { %11706 = vmatprep.subr.bf16.mxu1 %v15414_v24 }
 0xc25   : > { %11708 = vmatpush3.bf16.msra.mxu1 %v13605_v59 }
 0xc26   : > { %11733 = vmatprep.subr.bf16.mxu1 %v15414_v24 }
 0xcf3   : > { %v1373_v29 = vpop.f32.mrb[14].mxu1 }
 0xcf4   : > { %v1374_v55 = vadd.f32 %v13556_v44, %v1373_v29  ;;  %v9192_v57 = vpop.f32.mrb[15].mxu1 }
 0xcf6   : > { %13197 = vtanh.f32 %v1374_v55 }
 0xd00   : > { %v13198_v4 = vpop.eup %13197 }
 0xd01   : > { %v1378_v13 = vmul.f32 %v13198_v4, %v13716_v30 }
 0xd03   : > { %9226 = vmatmul.mubr.f32.vlgmr.msra.gmra.mrb[16].mxu0 %v1378_v13 }
 0xd04   : > { %11711 = vmatpush3.bf16.msra.mxu0 %v13600_v58  ;;  %9271 = vmatprep.mubr.msk.f32.mxu0 %vm13273_vm3, %v15413_v10 }
 0xd05   : > { %11712 = vmatprep.subr.bf16.mxu0 %v15414_v24 }
 0xd08   : > { %11714 = vmatpush3.bf16.msra.mxu0 %v13613_v60 }
 0xd09   : > { %11715 = vmatprep.subr.bf16.mxu0 %v15414_v24 }
 0xd0c   : > { %11717 = vmatpush3.bf16.msra.mxu0 %v13622_v61 }
 0xd0d   : > { %11718 = vmatprep.subr.bf16.mxu0 %v15414_v24 }
 0xd10   : > { %11720 = vmatpush3.bf16.msra.mxu0 %v13633_v62 }
 0xd11   : > { %11721 = vmatprep.subr.bf16.mxu0 %v15414_v24 }
 0xd14   : > { %11723 = vmatpush3.bf16.msra.mxu0 %v13639_v63 }
 0xd15   : > { %11724 = vmatprep.subr.bf16.mxu0 %v15414_v24 }
 0xd18   : > { %11726 = vmatpush3.bf16.msra.mxu0 %v13646_v45 }
 0xd19   : > { %11727 = vmatprep.subr.bf16.mxu0 %v15414_v24 }
 0xd1c   : > { %11729 = vmatpush3.bf16.msra.mxu0 %v13651_v46 }
 0xd1d   : > { %11730 = vmatprep.subr.bf16.mxu0 %v15414_v24 }
 0xd20   : > { %11732 = vmatpush3.bf16.msra.mxu0 %v13658_v47 }
 0xd21   : > { %11757 = vmatprep.subr.bf16.mxu0 %v15414_v24 }
 0xdd6   : > { %v14023_v30 = vpop.f32.mrb[16].mxu0 }
 0xdd7   : > { %v1449_v14 = vmul.f32 0.0625, %v14023_v30  ;;  %v9227_v28 = vpop.f32.mrb[17].mxu0 }
 0xdd9   : > { %v1450_v9 = vadd.f32 %v1449_v14, %v13974_v25 }
 0xddb   : > { %9237 = vmatmul.mubr.msk.f32.vlgmr.msra.gmra.mrb[16].mxu1 %vm342_vm5, %v1450_v9 }
 0xddc   : > { %11735 = vmatpush3.bf16.msra.mxu1 %v13664_v48  ;;  %9306 = vmatprep.mubr.msk.f32.mxu1 %vm13273_vm3, %v15413_v10 }
 0xddd   : > { %11736 = vmatprep.subr.bf16.mxu1 %v15414_v24 }
 0xde0   : > { %11738 = vmatpush3.bf16.msra.mxu1 %v13669_v50 }
 0xde1   : > { %11739 = vmatprep.subr.bf16.mxu1 %v15414_v24 }
 0xde4   : > { %11741 = vmatpush3.bf16.msra.mxu1 %v13675_v51 }
 0xde5   : > { %11742 = vmatprep.subr.bf16.mxu1 %v15414_v24 }
 0xde8   : > { %11744 = vmatpush3.bf16.msra.mxu1 %v13681_v52 }
 0xde9   : > { %11745 = vmatprep.subr.bf16.mxu1 %v15414_v24 }
 0xdec   : > { %11747 = vmatpush3.bf16.msra.mxu1 %v13786_v31 }
 0xded   : > { %11748 = vmatprep.subr.bf16.mxu1 %v15414_v24 }
 0xdf0   : > { %11750 = vmatpush3.bf16.msra.mxu1 %v13792_v3 }
 0xdf1   : > { %11751 = vmatprep.subr.bf16.mxu1 %v15414_v24 }
 0xdf4   : > { %11753 = vmatpush3.bf16.msra.mxu1 %v13797_v34 }
 0xdf5   : > { %11754 = vmatprep.subr.bf16.mxu1 %v15414_v24 }
 0xdf8   : > { %11756 = vmatpush3.bf16.msra.mxu1 %v13803_v35 }
 0xdf9   : > { %11763 = vmatprep.subr.bf16.mxu1 %v15414_v24 }
 0xeae   : > { %v1520_v49 = vpop.f32.mrb[16].mxu1 }
 0xeaf   : > { %v1521_v23 = vadd.f32 %v13471_v27, %v1520_v49  ;;  %v9238_v11 = vpop.f32.mrb[17].mxu1 }
 0xeb1   : > { %v1524_v37 = vmax.f32 %v1521_v23, 0.0 }
 0xeb3   : > { %9272 = vmatmul.mubr.f32.vlgmr.msra.gmra.mrb[18].mxu0 %v1524_v37 }
 0xeb4   : > { %11759 = vmatpush3.bf16.msra.mxu0 %v13594_v56  ;;  %9317 = vmatprep.mubr.msk.f32.mxu0 %vm13273_vm3, %v15413_v10 }
 0xeb5   : > { %11760 = vmatprep.subr.bf16.mxu0 %v15414_v24 }
 0xeb8   : > { %11762 = vmatpush3.bf16.msra.mxu0 %v13605_v59 }
 0xeb9   : > { %11787 = vmatprep.subr.bf16.mxu0 %v15414_v24 }
 0xf86   : > { %v1591_v29 = vpop.f32.mrb[18].mxu0 }
 0xf87   : > { %v1592_v55 = vadd.f32 %v13556_v44, %v1591_v29  ;;  %v9273_v57 = vpop.f32.mrb[19].mxu0 }
 0xf89   : > { %13199 = vtanh.f32 %v1592_v55 }
 0xf93   : > { %v13200_v4 = vpop.eup %13199 }
 0xf94   : > { %v1596_v13 = vmul.f32 %v13200_v4, %v13718_v5 }
 0xf96   : > { %9307 = vmatmul.mubr.f32.vlgmr.msra.gmra.mrb[18].mxu1 %v1596_v13 }
 0xf97   : > { %11765 = vmatpush3.bf16.msra.mxu1 %v13600_v58  ;;  %9352 = vmatprep.mubr.msk.f32.mxu1 %vm13273_vm3, %v15413_v10 }
 0xf98   : > { %11766 = vmatprep.subr.bf16.mxu1 %v15414_v24 }
 0xf9b   : > { %11768 = vmatpush3.bf16.msra.mxu1 %v13613_v60 }
 0xf9c   : > { %11769 = vmatprep.subr.bf16.mxu1 %v15414_v24 }
 0xf9f   : > { %11771 = vmatpush3.bf16.msra.mxu1 %v13622_v61 }
 0xfa0   : > { %11772 = vmatprep.subr.bf16.mxu1 %v15414_v24 }
 0xfa3   : > { %11774 = vmatpush3.bf16.msra.mxu1 %v13633_v62 }
 0xfa4   : > { %11775 = vmatprep.subr.bf16.mxu1 %v15414_v24 }
 0xfa7   : > { %11777 = vmatpush3.bf16.msra.mxu1 %v13639_v63 }
 0xfa8   : > { %11778 = vmatprep.subr.bf16.mxu1 %v15414_v24 }
 0xfab   : > { %11780 = vmatpush3.bf16.msra.mxu1 %v13646_v45 }
 0xfac   : > { %11781 = vmatprep.subr.bf16.mxu1 %v15414_v24 }
 0xfaf   : > { %11783 = vmatpush3.bf16.msra.mxu1 %v13651_v46 }
 0xfb0   : > { %11784 = vmatprep.subr.bf16.mxu1 %v15414_v24 }
 0xfb3   : > { %11786 = vmatpush3.bf16.msra.mxu1 %v13658_v47 }
 0xfb4   : > { %11811 = vmatprep.subr.bf16.mxu1 %v15414_v24 }
0x1069   : > { %v1663_v14 = vpop.f32.mrb[18].mxu1 }
0x106a   : > { %v1667_v28 = vmul.f32 0.0625, %v1663_v14  ;;  %v9308_v9 = vpop.f32.mrb[19].mxu1 }
0x106c   : > { %v1668_v49 = vadd.f32 %v1667_v28, %v13974_v25 }
0x106e   : > { %9318 = vmatmul.mubr.msk.f32.vlgmr.msra.gmra.mrb[20].mxu0 %vm342_vm5, %v1668_v49 }
0x106f   : > { %11789 = vmatpush3.bf16.msra.mxu0 %v13664_v48  ;;  %9387 = vmatprep.mubr.msk.f32.mxu0 %vm13273_vm3, %v15413_v10 }
0x1070   : > { %11790 = vmatprep.subr.bf16.mxu0 %v15414_v24 }
0x1073   : > { %11792 = vmatpush3.bf16.msra.mxu0 %v13669_v50 }
0x1074   : > { %11793 = vmatprep.subr.bf16.mxu0 %v15414_v24 }
0x1077   : > { %11795 = vmatpush3.bf16.msra.mxu0 %v13675_v51 }
0x1078   : > { %11796 = vmatprep.subr.bf16.mxu0 %v15414_v24 }
0x107b   : > { %11798 = vmatpush3.bf16.msra.mxu0 %v13681_v52 }
0x107c   : > { %11799 = vmatprep.subr.bf16.mxu0 %v15414_v24 }
0x107f   : > { %11801 = vmatpush3.bf16.msra.mxu0 %v13786_v31 }
0x1080   : > { %11802 = vmatprep.subr.bf16.mxu0 %v15414_v24 }
0x1083   : > { %11804 = vmatpush3.bf16.msra.mxu0 %v13792_v3 }
0x1084   : > { %11805 = vmatprep.subr.bf16.mxu0 %v15414_v24 }
0x1087   : > { %11807 = vmatpush3.bf16.msra.mxu0 %v13797_v34 }
0x1088   : > { %11808 = vmatprep.subr.bf16.mxu0 %v15414_v24 }
0x108b   : > { %11810 = vmatpush3.bf16.msra.mxu0 %v13803_v35 }
0x108c   : > { %11817 = vmatprep.subr.bf16.mxu0 %v15414_v24 }
0x1141   : > { %v1738_v23 = vpop.f32.mrb[20].mxu0 }
0x1142   : > { %v1739_v11 = vadd.f32 %v13471_v27, %v1738_v23  ;;  %v9319_v37 = vpop.f32.mrb[21].mxu0 }
0x1144   : > { %v1742_v29 = vmax.f32 %v1739_v11, 0.0 }
0x1146   : > { %9353 = vmatmul.mubr.f32.vlgmr.msra.gmra.mrb[20].mxu1 %v1742_v29 }
0x1147   : > { %11813 = vmatpush3.bf16.msra.mxu1 %v13594_v56  ;;  %9398 = vmatprep.mubr.msk.f32.mxu1 %vm13273_vm3, %v15413_v10 }
0x1148   : > { %11814 = vmatprep.subr.bf16.mxu1 %v15414_v24 }
0x114b   : > { %11816 = vmatpush3.bf16.msra.mxu1 %v13605_v59 }
0x114c   : > { %11841 = vmatprep.subr.bf16.mxu1 %v15414_v24 }
0x1219   : > { %v1809_v55 = vpop.f32.mrb[20].mxu1 }
0x121a   : > { %v1810_v57 = vadd.f32 %v13556_v44, %v1809_v55  ;;  %v9354_v4 = vpop.f32.mrb[21].mxu1 }
0x121c   : > { %13201 = vtanh.f32 %v1810_v57 }
0x1226   : > { %v13202_v13 = vpop.eup %13201 }
0x1227   : > { %v1814_v28 = vmul.f32 %v13202_v13, %v13718_v5 }
0x1229   : > { %9388 = vmatmul.mubr.f32.vlgmr.msra.gmra.mrb[22].mxu0 %v1814_v28 }
0x122a   : > { %11819 = vmatpush3.bf16.msra.mxu0 %v13600_v58  ;;  %9433 = vmatprep.mubr.msk.f32.mxu0 %vm13273_vm3, %v15413_v10 }
0x122b   : > { %11820 = vmatprep.subr.bf16.mxu0 %v15414_v24 }
0x122e   : > { %11822 = vmatpush3.bf16.msra.mxu0 %v13613_v60 }
0x122f   : > { %11823 = vmatprep.subr.bf16.mxu0 %v15414_v24 }
0x1232   : > { %11825 = vmatpush3.bf16.msra.mxu0 %v13622_v61 }
0x1233   : > { %11826 = vmatprep.subr.bf16.mxu0 %v15414_v24 }
0x1236   : > { %11828 = vmatpush3.bf16.msra.mxu0 %v13633_v62 }
0x1237   : > { %11829 = vmatprep.subr.bf16.mxu0 %v15414_v24 }
0x123a   : > { %11831 = vmatpush3.bf16.msra.mxu0 %v13639_v63 }
0x123b   : > { %11832 = vmatprep.subr.bf16.mxu0 %v15414_v24 }
0x123e   : > { %11834 = vmatpush3.bf16.msra.mxu0 %v13646_v45 }
0x123f   : > { %11835 = vmatprep.subr.bf16.mxu0 %v15414_v24 }
0x1242   : > { %11837 = vmatpush3.bf16.msra.mxu0 %v13651_v46 }
0x1243   : > { %11838 = vmatprep.subr.bf16.mxu0 %v15414_v24 }
0x1246   : > { %11840 = vmatpush3.bf16.msra.mxu0 %v13658_v47 }
0x1247   : > { %11865 = vmatprep.subr.bf16.mxu0 %v15414_v24 }
0x12fc   : > { %v1881_v5 = vpop.f32.mrb[22].mxu0 }
0x12fd   : > { %v1885_v9 = vmul.f32 0.125, %v1881_v5  ;;  %v2103_v49 = vadd.f32 %v1881_v5, %v1663_v14  ;;  %v9389_v23 = vpop.f32.mrb[23].mxu0 }
0x12ff   : > { %v1886_v11 = vadd.f32 %v1885_v9, %v13974_v25  ;;  %v2104_v37 = vmul.f32 2.0, %v2103_v49 }
0x1301   : > { %9399 = vmatmul.mubr.msk.f32.vlgmr.msra.gmra.mrb[22].mxu1 %vm342_vm5, %v1886_v11  ;;  %v2105_v29 = vadd.f32 %v2104_v37, %v14023_v30 }
0x1302   : > { %11843 = vmatpush3.bf16.msra.mxu1 %v13664_v48  ;;  %9468 = vmatprep.mubr.msk.f32.mxu1 %vm13273_vm3, %v15413_v10 }
0x1303   : > { %11844 = vmatprep.subr.bf16.mxu1 %v15414_v24 }
0x1306   : > { %11846 = vmatpush3.bf16.msra.mxu1 %v13669_v50 }
0x1307   : > { %11847 = vmatprep.subr.bf16.mxu1 %v15414_v24 }
0x130a   : > { %11849 = vmatpush3.bf16.msra.mxu1 %v13675_v51 }
0x130b   : > { %11850 = vmatprep.subr.bf16.mxu1 %v15414_v24 }
0x130e   : > { %11852 = vmatpush3.bf16.msra.mxu1 %v13681_v52 }
0x130f   : > { %11853 = vmatprep.subr.bf16.mxu1 %v15414_v24 }
0x1312   : > { %11855 = vmatpush3.bf16.msra.mxu1 %v13786_v31 }
0x1313   : > { %11856 = vmatprep.subr.bf16.mxu1 %v15414_v24 }
0x1316   : > { %11858 = vmatpush3.bf16.msra.mxu1 %v13792_v3 }
0x1317   : > { %11859 = vmatprep.subr.bf16.mxu1 %v15414_v24 }
0x131a   : > { %11861 = vmatpush3.bf16.msra.mxu1 %v13797_v34 }
0x131b   : > { %11862 = vmatprep.subr.bf16.mxu1 %v15414_v24 }
0x131e   : > { %11864 = vmatpush3.bf16.msra.mxu1 %v13803_v35 }
0x131f   : > { %11871 = vmatprep.subr.bf16.mxu1 %v15414_v24 }
0x13d4   : > { %v1956_v30 = vpop.f32.mrb[22].mxu1 }
0x13d5   : > { %v1957_v14 = vadd.f32 %v13471_v27, %v1956_v30  ;;  %v9400_v55 = vpop.f32.mrb[23].mxu1 }
0x13d7   : > { %v1960_v57 = vmax.f32 %v1957_v14, 0.0 }
0x13d9   : > { %9434 = vmatmul.mubr.f32.vlgmr.msra.gmra.mrb[24].mxu0 %v1960_v57 }
0x13da   : > { %11867 = vmatpush3.bf16.msra.mxu0 %v13594_v56  ;;  %9479 = vmatprep.mubr.msk.f32.mxu0 %vm13273_vm3, %v15413_v10 }
0x13db   : > { %11868 = vmatprep.subr.bf16.mxu0 %v15414_v24 }
0x13de   : > { %11870 = vmatpush3.bf16.msra.mxu0 %v13605_v59 }
0x13df   : > { %11895 = vmatprep.subr.bf16.mxu0 %v15414_v24 }
0x14ac   : > { %v2027_v4 = vpop.f32.mrb[24].mxu0 }
0x14ad   : > { %v2028_v13 = vadd.f32 %v13556_v44, %v2027_v4  ;;  %v9435_v28 = vpop.f32.mrb[25].mxu0 }
0x14af   : > { %13203 = vtanh.f32 %v2028_v13 }
0x14b9   : > { %v13204_v5 = vpop.eup %13203 }
0x14ba   : > { %v2032_v9 = vmul.f32 %v13204_v5, %v13720_v6 }
0x14bc   : > { %9469 = vmatmul.mubr.f32.vlgmr.msra.gmra.mrb[24].mxu1 %v2032_v9 }
0x14bd   : > { %11873 = vmatpush3.bf16.msra.mxu1 %v13600_v58  ;;  %9514 = vmatprep.mubr.msk.f32.mxu1 %vm13273_vm3, %v15413_v10 }
0x14be   : > { %11874 = vmatprep.subr.bf16.mxu1 %v15414_v24 }
0x14c1   : > { %11876 = vmatpush3.bf16.msra.mxu1 %v13613_v60 }
0x14c2   : > { %11877 = vmatprep.subr.bf16.mxu1 %v15414_v24 }
0x14c5   : > { %11879 = vmatpush3.bf16.msra.mxu1 %v13622_v61 }
0x14c6   : > { %11880 = vmatprep.subr.bf16.mxu1 %v15414_v24 }
0x14c9   : > { %11882 = vmatpush3.bf16.msra.mxu1 %v13633_v62 }
0x14ca   : > { %11883 = vmatprep.subr.bf16.mxu1 %v15414_v24 }
0x14cd   : > { %11885 = vmatpush3.bf16.msra.mxu1 %v13639_v63 }
0x14ce   : > { %11886 = vmatprep.subr.bf16.mxu1 %v15414_v24 }
0x14d1   : > { %11888 = vmatpush3.bf16.msra.mxu1 %v13646_v45 }
0x14d2   : > { %11889 = vmatprep.subr.bf16.mxu1 %v15414_v24 }
0x14d5   : > { %11891 = vmatpush3.bf16.msra.mxu1 %v13651_v46 }
0x14d6   : > { %11892 = vmatprep.subr.bf16.mxu1 %v15414_v24 }
0x14d9   : > { %11894 = vmatpush3.bf16.msra.mxu1 %v13658_v47 }
0x14da   : > { %11919 = vmatprep.subr.bf16.mxu1 %v15414_v24 }
0x158f   : > { %v2099_v49 = vpop.f32.mrb[24].mxu1 }
0x1590   : > { %v2106_v23 = vadd.f32 %v2105_v29, %v2099_v49  ;;  %v9470_v11 = vpop.f32.mrb[25].mxu1 }
0x1592   : > { %v2107_v37 = vmul.f32 0.020833334, %v2106_v23 }
0x1594   : > { %v14169_v30 = vadd.f32 %v2107_v37, %v13974_v25 }
0x1596   : > { %9480 = vmatmul.mubr.msk.f32.vlgmr.msra.gmra.mrb[26].mxu0 %vm342_vm5, %v14169_v30 }
0x1597   : > { %11897 = vmatpush3.bf16.msra.mxu0 %v13664_v48  ;;  %9549 = vmatprep.mubr.msk.f32.mxu0 %vm13273_vm3, %v15413_v10 }
0x1598   : > { %11898 = vmatprep.subr.bf16.mxu0 %v15414_v24 }
0x159b   : > { %11900 = vmatpush3.bf16.msra.mxu0 %v13669_v50 }
0x159c   : > { %11901 = vmatprep.subr.bf16.mxu0 %v15414_v24 }
0x159f   : > { %11903 = vmatpush3.bf16.msra.mxu0 %v13675_v51 }
0x15a0   : > { %11904 = vmatprep.subr.bf16.mxu0 %v15414_v24 }
0x15a3   : > { %11906 = vmatpush3.bf16.msra.mxu0 %v13681_v52 }
0x15a4   : > { %11907 = vmatprep.subr.bf16.mxu0 %v15414_v24 }
0x15a7   : > { %11909 = vmatpush3.bf16.msra.mxu0 %v13786_v31 }
0x15a8   : > { %11910 = vmatprep.subr.bf16.mxu0 %v15414_v24 }
0x15ab   : > { %11912 = vmatpush3.bf16.msra.mxu0 %v13792_v3 }
0x15ac   : > { %11913 = vmatprep.subr.bf16.mxu0 %v15414_v24 }
0x15af   : > { %11915 = vmatpush3.bf16.msra.mxu0 %v13797_v34 }
0x15b0   : > { %11916 = vmatprep.subr.bf16.mxu0 %v15414_v24 }
0x15b3   : > { %11918 = vmatpush3.bf16.msra.mxu0 %v13803_v35 }
0x15b4   : > { %11925 = vmatprep.subr.bf16.mxu0 %v15414_v24 }
0x1669   : > { %v2186_v25 = vpop.f32.mrb[26].mxu0 }
0x166a   : > { %v2187_v29 = vadd.f32 %v13471_v27, %v2186_v25  ;;  %v9481_v14 = vpop.f32.mrb[27].mxu0 }
0x166c   : > { %v2190_v55 = vmax.f32 %v2187_v29, 0.0 }
0x166e   : > { %9515 = vmatmul.mubr.f32.vlgmr.msra.gmra.mrb[26].mxu1 %v2190_v55 }
0x166f   : > { %11921 = vmatpush3.bf16.msra.mxu1 %v13594_v56  ;;  %9560 = vmatprep.mubr.msk.f32.mxu1 %vm13273_vm3, %v15413_v10 }
0x1670   : > { %11922 = vmatprep.subr.bf16.mxu1 %v15414_v24 }
0x1673   : > { %11924 = vmatpush3.bf16.msra.mxu1 %v13605_v59 }
0x1674   : > { %11949 = vmatprep.subr.bf16.mxu1 %v15414_v24 }
0x1741   : > { %v2257_v57 = vpop.f32.mrb[26].mxu1 }
0x1742   : > { %v2258_v4 = vadd.f32 %v13556_v44, %v2257_v57  ;;  %v9516_v13 = vpop.f32.mrb[27].mxu1 }
0x1744   : > { %13205 = vtanh.f32 %v2258_v4 }
0x174e   : > { %v13206_v28 = vpop.eup %13205 }
0x174f   : > { %v2262_v5 = vmul.f32 %v13206_v28, %v13720_v6 }
0x1751   : > { %9550 = vmatmul.mubr.f32.vlgmr.msra.gmra.mrb[28].mxu0 %v2262_v5 }
0x1752   : > { %11927 = vmatpush3.bf16.msra.mxu0 %v13600_v58  ;;  %9595 = vmatprep.mubr.msk.f32.mxu0 %vm13273_vm3, %v15413_v10 }
0x1753   : > { %11928 = vmatprep.subr.bf16.mxu0 %v15414_v24 }
0x1756   : > { %11930 = vmatpush3.bf16.msra.mxu0 %v13613_v60 }
0x1757   : > { %11931 = vmatprep.subr.bf16.mxu0 %v15414_v24 }
0x175a   : > { %11933 = vmatpush3.bf16.msra.mxu0 %v13622_v61 }
0x175b   : > { %11934 = vmatprep.subr.bf16.mxu0 %v15414_v24 }
0x175e   : > { %11936 = vmatpush3.bf16.msra.mxu0 %v13633_v62 }
0x175f   : > { %11937 = vmatprep.subr.bf16.mxu0 %v15414_v24 }
0x1762   : > { %11939 = vmatpush3.bf16.msra.mxu0 %v13639_v63 }
0x1763   : > { %11940 = vmatprep.subr.bf16.mxu0 %v15414_v24 }
0x1766   : > { %11942 = vmatpush3.bf16.msra.mxu0 %v13646_v45 }
0x1767   : > { %11943 = vmatprep.subr.bf16.mxu0 %v15414_v24 }
0x176a   : > { %11945 = vmatpush3.bf16.msra.mxu0 %v13651_v46 }
0x176b   : > { %11946 = vmatprep.subr.bf16.mxu0 %v15414_v24 }
0x176e   : > { %11948 = vmatpush3.bf16.msra.mxu0 %v13658_v47 }
0x176f   : > { %11973 = vmatprep.subr.bf16.mxu0 %v15414_v24 }
0x1824   : > { %v14218_v6 = vpop.f32.mrb[28].mxu0 }
0x1825   : > { %v2333_v9 = vmul.f32 0.0625, %v14218_v6  ;;  %v9551_v49 = vpop.f32.mrb[29].mxu0 }
0x1827   : > { %v2334_v23 = vadd.f32 %v2333_v9, %v14169_v30 }
0x1829   : > { %9561 = vmatmul.mubr.msk.f32.vlgmr.msra.gmra.mrb[28].mxu1 %vm342_vm5, %v2334_v23 }
0x182a   : > { %11951 = vmatpush3.bf16.msra.mxu1 %v13664_v48  ;;  %9630 = vmatprep.mubr.msk.f32.mxu1 %vm13273_vm3, %v15413_v10 }
0x182b   : > { %11952 = vmatprep.subr.bf16.mxu1 %v15414_v24 }
0x182e   : > { %11954 = vmatpush3.bf16.msra.mxu1 %v13669_v50 }
0x182f   : > { %11955 = vmatprep.subr.bf16.mxu1 %v15414_v24 }
0x1832   : > { %11957 = vmatpush3.bf16.msra.mxu1 %v13675_v51 }
0x1833   : > { %11958 = vmatprep.subr.bf16.mxu1 %v15414_v24 }
0x1836   : > { %11960 = vmatpush3.bf16.msra.mxu1 %v13681_v52 }
0x1837   : > { %11961 = vmatprep.subr.bf16.mxu1 %v15414_v24 }
0x183a   : > { %11963 = vmatpush3.bf16.msra.mxu1 %v13786_v31 }
0x183b   : > { %11964 = vmatprep.subr.bf16.mxu1 %v15414_v24 }
0x183e   : > { %11966 = vmatpush3.bf16.msra.mxu1 %v13792_v3 }
0x183f   : > { %11967 = vmatprep.subr.bf16.mxu1 %v15414_v24 }
0x1842   : > { %11969 = vmatpush3.bf16.msra.mxu1 %v13797_v34 }
0x1843   : > { %11970 = vmatprep.subr.bf16.mxu1 %v15414_v24 }
0x1846   : > { %11972 = vmatpush3.bf16.msra.mxu1 %v13803_v35 }
0x1847   : > { %11979 = vmatprep.subr.bf16.mxu1 %v15414_v24 }
0x18fc   : > { %v2404_v11 = vpop.f32.mrb[28].mxu1 }
0x18fd   : > { %v2405_v37 = vadd.f32 %v13471_v27, %v2404_v11  ;;  %v9562_v25 = vpop.f32.mrb[29].mxu1 }
0x18ff   : > { %v2408_v29 = vmax.f32 %v2405_v37, 0.0 }
0x1901   : > { %9596 = vmatmul.mubr.f32.vlgmr.msra.gmra.mrb[30].mxu0 %v2408_v29 }
0x1902   : > { %11975 = vmatpush3.bf16.msra.mxu0 %v13594_v56  ;;  %9641 = vmatprep.mubr.msk.f32.mxu0 %vm13273_vm3, %v15413_v10 }
0x1903   : > { %11976 = vmatprep.subr.bf16.mxu0 %v15414_v24 }
0x1906   : > { %11978 = vmatpush3.bf16.msra.mxu0 %v13605_v59 }
0x1907   : > { %12003 = vmatprep.subr.bf16.mxu0 %v15414_v24 }
0x19d4   : > { %v2475_v14 = vpop.f32.mrb[30].mxu0 }
0x19d5   : > { %v2476_v55 = vadd.f32 %v13556_v44, %v2475_v14  ;;  %v9597_v57 = vpop.f32.mrb[31].mxu0 }
0x19d7   : > { %13207 = vtanh.f32 %v2476_v55 }
0x19e1   : > { %v13208_v4 = vpop.eup %13207 }
0x19e2   : > { %v2480_v13 = vmul.f32 %v13208_v4, %v13722_v54 }
0x19e4   : > { %9631 = vmatmul.mubr.f32.vlgmr.msra.gmra.mrb[30].mxu1 %v2480_v13 }
0x19e5   : > { %11981 = vmatpush3.bf16.msra.mxu1 %v13600_v58  ;;  %9676 = vmatprep.mubr.msk.f32.mxu1 %vm13273_vm3, %v15413_v10 }
0x19e6   : > { %11982 = vmatprep.subr.bf16.mxu1 %v15414_v24 }
0x19e9   : > { %11984 = vmatpush3.bf16.msra.mxu1 %v13613_v60 }
0x19ea   : > { %11985 = vmatprep.subr.bf16.mxu1 %v15414_v24 }
0x19ed   : > { %11987 = vmatpush3.bf16.msra.mxu1 %v13622_v61 }
0x19ee   : > { %11988 = vmatprep.subr.bf16.mxu1 %v15414_v24 }
0x19f1   : > { %11990 = vmatpush3.bf16.msra.mxu1 %v13633_v62 }
0x19f2   : > { %11991 = vmatprep.subr.bf16.mxu1 %v15414_v24 }
0x19f5   : > { %11993 = vmatpush3.bf16.msra.mxu1 %v13639_v63 }
0x19f6   : > { %11994 = vmatprep.subr.bf16.mxu1 %v15414_v24 }
0x19f9   : > { %11996 = vmatpush3.bf16.msra.mxu1 %v13646_v45 }
0x19fa   : > { %11997 = vmatprep.subr.bf16.mxu1 %v15414_v24 }
0x19fd   : > { %11999 = vmatpush3.bf16.msra.mxu1 %v13651_v46 }
0x19fe   : > { %12000 = vmatprep.subr.bf16.mxu1 %v15414_v24 }
0x1a01   : > { %12002 = vmatpush3.bf16.msra.mxu1 %v13658_v47 }
0x1a02   : > { %12027 = vmatprep.subr.bf16.mxu1 %v15414_v24 }
0x1ab7   : > { %v2547_v28 = vpop.f32.mrb[30].mxu1 }
0x1ab8   : > { %v2551_v5 = vmul.f32 0.0625, %v2547_v28  ;;  %v9632_v9 = vpop.f32.mrb[31].mxu1 }
0x1aba   : > { %v2552_v49 = vadd.f32 %v2551_v5, %v14169_v30 }
0x1abc   : > { %9642 = vmatmul.mubr.msk.f32.vlgmr.msra.gmra.mrb[32].mxu0 %vm342_vm5, %v2552_v49 }
0x1abd   : > { %12005 = vmatpush3.bf16.msra.mxu0 %v13664_v48  ;;  %9711 = vmatprep.mubr.msk.f32.mxu0 %vm13273_vm3, %v15413_v10 }
0x1abe   : > { %12006 = vmatprep.subr.bf16.mxu0 %v15414_v24 }
0x1ac1   : > { %12008 = vmatpush3.bf16.msra.mxu0 %v13669_v50 }
0x1ac2   : > { %12009 = vmatprep.subr.bf16.mxu0 %v15414_v24 }
0x1ac5   : > { %12011 = vmatpush3.bf16.msra.mxu0 %v13675_v51 }
0x1ac6   : > { %12012 = vmatprep.subr.bf16.mxu0 %v15414_v24 }
0x1ac9   : > { %12014 = vmatpush3.bf16.msra.mxu0 %v13681_v52 }
0x1aca   : > { %12015 = vmatprep.subr.bf16.mxu0 %v15414_v24 }
0x1acd   : > { %12017 = vmatpush3.bf16.msra.mxu0 %v13786_v31 }
0x1ace   : > { %12018 = vmatprep.subr.bf16.mxu0 %v15414_v24 }
0x1ad1   : > { %12020 = vmatpush3.bf16.msra.mxu0 %v13792_v3 }
0x1ad2   : > { %12021 = vmatprep.subr.bf16.mxu0 %v15414_v24 }
0x1ad5   : > { %12023 = vmatpush3.bf16.msra.mxu0 %v13797_v34 }
0x1ad6   : > { %12024 = vmatprep.subr.bf16.mxu0 %v15414_v24 }
0x1ad9   : > { %12026 = vmatpush3.bf16.msra.mxu0 %v13803_v35 }
0x1ada   : > { %12033 = vmatprep.subr.bf16.mxu0 %v15414_v24 }
0x1b8f   : > { %v2622_v23 = vpop.f32.mrb[32].mxu0 }
0x1b90   : > { %v2623_v11 = vadd.f32 %v13471_v27, %v2622_v23  ;;  %v9643_v37 = vpop.f32.mrb[33].mxu0 }
0x1b92   : > { %v2626_v25 = vmax.f32 %v2623_v11, 0.0 }
0x1b94   : > { %9677 = vmatmul.mubr.f32.vlgmr.msra.gmra.mrb[32].mxu1 %v2626_v25 }
0x1b95   : > { %12029 = vmatpush3.bf16.msra.mxu1 %v13594_v56  ;;  %9722 = vmatprep.mubr.msk.f32.mxu1 %vm13273_vm3, %v15413_v10 }
0x1b96   : > { %12030 = vmatprep.subr.bf16.mxu1 %v15414_v24 }
0x1b99   : > { %12032 = vmatpush3.bf16.msra.mxu1 %v13605_v59 }
0x1b9a   : > { %12057 = vmatprep.subr.bf16.mxu1 %v15414_v24 }
0x1c67   : > { %v2693_v29 = vpop.f32.mrb[32].mxu1 }
0x1c68   : > { %v2694_v14 = vadd.f32 %v13556_v44, %v2693_v29  ;;  %v9678_v55 = vpop.f32.mrb[33].mxu1 }
0x1c6a   : > { %13209 = vtanh.f32 %v2694_v14 }
0x1c74   : > { %v13210_v57 = vpop.eup %13209 }
0x1c75   : > { %v2698_v4 = vmul.f32 %v13210_v57, %v13722_v54 }
0x1c77   : > { %9712 = vmatmul.mubr.f32.vlgmr.msra.gmra.mrb[34].mxu0 %v2698_v4 }
0x1c78   : > { %12035 = vmatpush3.bf16.msra.mxu0 %v13600_v58  ;;  %9757 = vmatprep.mubr.msk.f32.mxu0 %vm13273_vm3, %v15413_v10 }
0x1c79   : > { %12036 = vmatprep.subr.bf16.mxu0 %v15414_v24 }
0x1c7c   : > { %12038 = vmatpush3.bf16.msra.mxu0 %v13613_v60 }
0x1c7d   : > { %12039 = vmatprep.subr.bf16.mxu0 %v15414_v24 }
0x1c80   : > { %12041 = vmatpush3.bf16.msra.mxu0 %v13622_v61 }
0x1c81   : > { %12042 = vmatprep.subr.bf16.mxu0 %v15414_v24 }
0x1c84   : > { %12044 = vmatpush3.bf16.msra.mxu0 %v13633_v62 }
0x1c85   : > { %12045 = vmatprep.subr.bf16.mxu0 %v15414_v24 }
0x1c88   : > { %12047 = vmatpush3.bf16.msra.mxu0 %v13639_v63 }
0x1c89   : > { %12048 = vmatprep.subr.bf16.mxu0 %v15414_v24 }
0x1c8c   : > { %12050 = vmatpush3.bf16.msra.mxu0 %v13646_v45 }
0x1c8d   : > { %12051 = vmatprep.subr.bf16.mxu0 %v15414_v24 }
0x1c90   : > { %12053 = vmatpush3.bf16.msra.mxu0 %v13651_v46 }
0x1c91   : > { %12054 = vmatprep.subr.bf16.mxu0 %v15414_v24 }
0x1c94   : > { %12056 = vmatpush3.bf16.msra.mxu0 %v13658_v47 }
0x1c95   : > { %12081 = vmatprep.subr.bf16.mxu0 %v15414_v24 }
0x1d4a   : > { %v2765_v54 = vpop.f32.mrb[34].mxu0 }
0x1d4b   : > { %v2769_v13 = vmul.f32 0.125, %v2765_v54  ;;  %v2987_v5 = vadd.f32 %v2765_v54, %v2547_v28  ;;  %v9713_v9 = vpop.f32.mrb[35].mxu0 }
0x1d4d   : > { %v2770_v49 = vadd.f32 %v2769_v13, %v14169_v30  ;;  %v2988_v23 = vmul.f32 2.0, %v2987_v5 }
0x1d4f   : > { %9723 = vmatmul.mubr.msk.f32.vlgmr.msra.gmra.mrb[34].mxu1 %vm342_vm5, %v2770_v49  ;;  %v2989_v11 = vadd.f32 %v2988_v23, %v14218_v6 }
0x1d50   : > { %12059 = vmatpush3.bf16.msra.mxu1 %v13664_v48  ;;  %9792 = vmatprep.mubr.msk.f32.mxu1 %vm13273_vm3, %v15413_v10 }
0x1d51   : > { %12060 = vmatprep.subr.bf16.mxu1 %v15414_v24 }
0x1d54   : > { %12062 = vmatpush3.bf16.msra.mxu1 %v13669_v50 }
0x1d55   : > { %12063 = vmatprep.subr.bf16.mxu1 %v15414_v24 }
0x1d58   : > { %12065 = vmatpush3.bf16.msra.mxu1 %v13675_v51 }
0x1d59   : > { %12066 = vmatprep.subr.bf16.mxu1 %v15414_v24 }
0x1d5c   : > { %12068 = vmatpush3.bf16.msra.mxu1 %v13681_v52 }
0x1d5d   : > { %12069 = vmatprep.subr.bf16.mxu1 %v15414_v24 }
0x1d60   : > { %12071 = vmatpush3.bf16.msra.mxu1 %v13786_v31 }
0x1d61   : > { %12072 = vmatprep.subr.bf16.mxu1 %v15414_v24 }
0x1d64   : > { %12074 = vmatpush3.bf16.msra.mxu1 %v13792_v3 }
0x1d65   : > { %12075 = vmatprep.subr.bf16.mxu1 %v15414_v24 }
0x1d68   : > { %12077 = vmatpush3.bf16.msra.mxu1 %v13797_v34 }
0x1d69   : > { %12078 = vmatprep.subr.bf16.mxu1 %v15414_v24 }
0x1d6c   : > { %12080 = vmatpush3.bf16.msra.mxu1 %v13803_v35 }
0x1d6d   : > { %12087 = vmatprep.subr.bf16.mxu1 %v15414_v24 }
0x1e22   : > { %v2840_v6 = vpop.f32.mrb[34].mxu1 }
0x1e23   : > { %v2841_v28 = vadd.f32 %v13471_v27, %v2840_v6  ;;  %v9724_v37 = vpop.f32.mrb[35].mxu1 }
0x1e25   : > { %v2844_v25 = vmax.f32 %v2841_v28, 0.0 }
0x1e27   : > { %9758 = vmatmul.mubr.f32.vlgmr.msra.gmra.mrb[36].mxu0 %v2844_v25 }
0x1e28   : > { %12083 = vmatpush3.bf16.msra.mxu0 %v13594_v56  ;;  %9803 = vmatprep.mubr.msk.f32.mxu0 %vm13273_vm3, %v15413_v10 }
0x1e29   : > { %12084 = vmatprep.subr.bf16.mxu0 %v15414_v24 }
0x1e2c   : > { %12086 = vmatpush3.bf16.msra.mxu0 %v13605_v59 }
0x1e2d   : > { %12111 = vmatprep.subr.bf16.mxu0 %v15414_v24 }
0x1efa   : > { %v2911_v29 = vpop.f32.mrb[36].mxu0 }
0x1efb   : > { %v2912_v14 = vadd.f32 %v13556_v44, %v2911_v29  ;;  %v9759_v55 = vpop.f32.mrb[37].mxu0 }
0x1efd   : > { %13211 = vtanh.f32 %v2912_v14 }
0x1f07   : > { %v13212_v57 = vpop.eup %13211 }
0x1f08   : > { %v2916_v4 = vmul.f32 %v13212_v57, %v13731_v12 }
0x1f0a   : > { %9793 = vmatmul.mubr.f32.vlgmr.msra.gmra.mrb[36].mxu1 %v2916_v4 }
0x1f0b   : > { %12089 = vmatpush3.bf16.msra.mxu1 %v13600_v58  ;;  %9838 = vmatprep.mubr.msk.f32.mxu1 %vm13273_vm3, %v15413_v10 }
0x1f0c   : > { %12090 = vmatprep.subr.bf16.mxu1 %v15414_v24 }
0x1f0f   : > { %12092 = vmatpush3.bf16.msra.mxu1 %v13613_v60 }
0x1f10   : > { %12093 = vmatprep.subr.bf16.mxu1 %v15414_v24 }
0x1f13   : > { %12095 = vmatpush3.bf16.msra.mxu1 %v13622_v61 }
0x1f14   : > { %12096 = vmatprep.subr.bf16.mxu1 %v15414_v24 }
0x1f17   : > { %12098 = vmatpush3.bf16.msra.mxu1 %v13633_v62 }
0x1f18   : > { %12099 = vmatprep.subr.bf16.mxu1 %v15414_v24 }
0x1f1b   : > { %12101 = vmatpush3.bf16.msra.mxu1 %v13639_v63 }
0x1f1c   : > { %12102 = vmatprep.subr.bf16.mxu1 %v15414_v24 }
0x1f1f   : > { %12104 = vmatpush3.bf16.msra.mxu1 %v13646_v45 }
0x1f20   : > { %12105 = vmatprep.subr.bf16.mxu1 %v15414_v24 }
0x1f23   : > { %12107 = vmatpush3.bf16.msra.mxu1 %v13651_v46 }
0x1f24   : > { %12108 = vmatprep.subr.bf16.mxu1 %v15414_v24 }
0x1f27   : > { %12110 = vmatpush3.bf16.msra.mxu1 %v13658_v47 }
0x1f28   : > { %12135 = vmatprep.subr.bf16.mxu1 %v15414_v24 }
0x1fdd   : > { %v2983_v54 = vpop.f32.mrb[36].mxu1 }
0x1fde   : > { %v2990_v13 = vadd.f32 %v2989_v11, %v2983_v54  ;;  %v9794_v5 = vpop.f32.mrb[37].mxu1 }
0x1fe0   : > { %v2991_v9 = vmul.f32 0.020833334, %v2990_v13 }
0x1fe2   : > { %v14364_v49 = vadd.f32 %v2991_v9, %v14169_v30 }
0x1fe4   : > { %9804 = vmatmul.mubr.msk.f32.vlgmr.msra.gmra.mrb[38].mxu0 %vm342_vm5, %v14364_v49 }
0x1fe5   : > { %12113 = vmatpush3.bf16.msra.mxu0 %v13664_v48  ;;  %9873 = vmatprep.mubr.msk.f32.mxu0 %vm13273_vm3, %v15413_v10 }
0x1fe6   : > { %12114 = vmatprep.subr.bf16.mxu0 %v15414_v24 }
0x1fe9   : > { %12116 = vmatpush3.bf16.msra.mxu0 %v13669_v50 }
0x1fea   : > { %12117 = vmatprep.subr.bf16.mxu0 %v15414_v24 }
0x1fed   : > { %12119 = vmatpush3.bf16.msra.mxu0 %v13675_v51 }
0x1fee   : > { %12120 = vmatprep.subr.bf16.mxu0 %v15414_v24 }
0x1ff1   : > { %12122 = vmatpush3.bf16.msra.mxu0 %v13681_v52 }
0x1ff2   : > { %12123 = vmatprep.subr.bf16.mxu0 %v15414_v24 }
0x1ff5   : > { %12125 = vmatpush3.bf16.msra.mxu0 %v13786_v31 }
0x1ff6   : > { %12126 = vmatprep.subr.bf16.mxu0 %v15414_v24 }
0x1ff9   : > { %12128 = vmatpush3.bf16.msra.mxu0 %v13792_v3 }
0x1ffa   : > { %12129 = vmatprep.subr.bf16.mxu0 %v15414_v24 }
0x1ffd   : > { %12131 = vmatpush3.bf16.msra.mxu0 %v13797_v34 }
0x1ffe   : > { %12132 = vmatprep.subr.bf16.mxu0 %v15414_v24 }
0x2001   : > { %12134 = vmatpush3.bf16.msra.mxu0 %v13803_v35 }
0x2002   : > { %12141 = vmatprep.subr.bf16.mxu0 %v15414_v24 }
0x20b7   : > { %v3070_v30 = vpop.f32.mrb[38].mxu0 }
0x20b8   : > { %v3071_v23 = vadd.f32 %v13471_v27, %v3070_v30  ;;  %v9805_v11 = vpop.f32.mrb[39].mxu0 }
0x20ba   : > { %v3074_v6 = vmax.f32 %v3071_v23, 0.0 }
0x20bc   : > { %9839 = vmatmul.mubr.f32.vlgmr.msra.gmra.mrb[38].mxu1 %v3074_v6 }
0x20bd   : > { %12137 = vmatpush3.bf16.msra.mxu1 %v13594_v56  ;;  %9884 = vmatprep.mubr.msk.f32.mxu1 %vm13273_vm3, %v15413_v10 }
0x20be   : > { %12138 = vmatprep.subr.bf16.mxu1 %v15414_v24 }
0x20c1   : > { %12140 = vmatpush3.bf16.msra.mxu1 %v13605_v59 }
0x20c2   : > { %12165 = vmatprep.subr.bf16.mxu1 %v15414_v24 }
0x218f   : > { %v3141_v28 = vpop.f32.mrb[38].mxu1 }
0x2190   : > { %v3142_v37 = vadd.f32 %v13556_v44, %v3141_v28  ;;  %v9840_v25 = vpop.f32.mrb[39].mxu1 }
0x2192   : > { %13213 = vtanh.f32 %v3142_v37 }
0x219c   : > { %v13214_v29 = vpop.eup %13213 }
0x219d   : > { %v3146_v14 = vmul.f32 %v13214_v29, %v13731_v12 }
0x219f   : > { %9874 = vmatmul.mubr.f32.vlgmr.msra.gmra.mrb[40].mxu0 %v3146_v14 }
0x21a0   : > { %12143 = vmatpush3.bf16.msra.mxu0 %v13600_v58  ;;  %9919 = vmatprep.mubr.msk.f32.mxu0 %vm13273_vm3, %v15413_v10 }
0x21a1   : > { %12144 = vmatprep.subr.bf16.mxu0 %v15414_v24 }
0x21a4   : > { %12146 = vmatpush3.bf16.msra.mxu0 %v13613_v60 }
0x21a5   : > { %12147 = vmatprep.subr.bf16.mxu0 %v15414_v24 }
0x21a8   : > { %12149 = vmatpush3.bf16.msra.mxu0 %v13622_v61 }
0x21a9   : > { %12150 = vmatprep.subr.bf16.mxu0 %v15414_v24 }
0x21ac   : > { %12152 = vmatpush3.bf16.msra.mxu0 %v13633_v62 }
0x21ad   : > { %12153 = vmatprep.subr.bf16.mxu0 %v15414_v24 }
0x21b0   : > { %12155 = vmatpush3.bf16.msra.mxu0 %v13639_v63 }
0x21b1   : > { %12156 = vmatprep.subr.bf16.mxu0 %v15414_v24 }
0x21b4   : > { %12158 = vmatpush3.bf16.msra.mxu0 %v13646_v45 }
0x21b5   : > { %12159 = vmatprep.subr.bf16.mxu0 %v15414_v24 }
0x21b8   : > { %12161 = vmatpush3.bf16.msra.mxu0 %v13651_v46 }
0x21b9   : > { %12162 = vmatprep.subr.bf16.mxu0 %v15414_v24 }
0x21bc   : > { %12164 = vmatpush3.bf16.msra.mxu0 %v13658_v47 }
0x21bd   : > { %12189 = vmatprep.subr.bf16.mxu0 %v15414_v24 }
0x2272   : > { %v14413_v12 = vpop.f32.mrb[40].mxu0 }
0x2273   : > { %v3217_v55 = vmul.f32 0.0625, %v14413_v12  ;;  %v9875_v57 = vpop.f32.mrb[41].mxu0 }
0x2275   : > { %v3218_v4 = vadd.f32 %v3217_v55, %v14364_v49 }
0x2277   : > { %9885 = vmatmul.mubr.msk.f32.vlgmr.msra.gmra.mrb[40].mxu1 %vm342_vm5, %v3218_v4 }
0x2278   : > { %12167 = vmatpush3.bf16.msra.mxu1 %v13664_v48  ;;  %9954 = vmatprep.mubr.msk.f32.mxu1 %vm13273_vm3, %v15413_v10 }
0x2279   : > { %12168 = vmatprep.subr.bf16.mxu1 %v15414_v24 }
0x227c   : > { %12170 = vmatpush3.bf16.msra.mxu1 %v13669_v50 }
0x227d   : > { %12171 = vmatprep.subr.bf16.mxu1 %v15414_v24 }
0x2280   : > { %12173 = vmatpush3.bf16.msra.mxu1 %v13675_v51 }
0x2281   : > { %12174 = vmatprep.subr.bf16.mxu1 %v15414_v24 }
0x2284   : > { %12176 = vmatpush3.bf16.msra.mxu1 %v13681_v52 }
0x2285   : > { %12177 = vmatprep.subr.bf16.mxu1 %v15414_v24 }
0x2288   : > { %12179 = vmatpush3.bf16.msra.mxu1 %v13786_v31 }
0x2289   : > { %12180 = vmatprep.subr.bf16.mxu1 %v15414_v24 }
0x228c   : > { %12182 = vmatpush3.bf16.msra.mxu1 %v13792_v3 }
0x228d   : > { %12183 = vmatprep.subr.bf16.mxu1 %v15414_v24 }
0x2290   : > { %12185 = vmatpush3.bf16.msra.mxu1 %v13797_v34 }
0x2291   : > { %12186 = vmatprep.subr.bf16.mxu1 %v15414_v24 }
0x2294   : > { %12188 = vmatpush3.bf16.msra.mxu1 %v13803_v35 }
0x2295   : > { %12195 = vmatprep.subr.bf16.mxu1 %v15414_v24 }
0x234a   : > { %v3288_v54 = vpop.f32.mrb[40].mxu1 }
0x234b   : > { %v3289_v13 = vadd.f32 %v13471_v27, %v3288_v54  ;;  %v9886_v5 = vpop.f32.mrb[41].mxu1 }
0x234d   : > { %v3292_v9 = vmax.f32 %v3289_v13, 0.0 }
0x234f   : > { %9920 = vmatmul.mubr.f32.vlgmr.msra.gmra.mrb[42].mxu0 %v3292_v9 }
0x2350   : > { %12191 = vmatpush3.bf16.msra.mxu0 %v13594_v56  ;;  %9965 = vmatprep.mubr.msk.f32.mxu0 %vm13273_vm3, %v15413_v10 }
0x2351   : > { %12192 = vmatprep.subr.bf16.mxu0 %v15414_v24 }
0x2354   : > { %12194 = vmatpush3.bf16.msra.mxu0 %v13605_v59 }
0x2355   : > { %12219 = vmatprep.subr.bf16.mxu0 %v15414_v24 }
0x2422   : > { %v3359_v30 = vpop.f32.mrb[42].mxu0 }
0x2423   : > { %v3360_v23 = vadd.f32 %v13556_v44, %v3359_v30  ;;  %v9921_v11 = vpop.f32.mrb[43].mxu0 }
0x2425   : > { %13215 = vtanh.f32 %v3360_v23 }
0x242f   : > { %v13216_v6 = vpop.eup %13215 }
0x2430   : > { %v3364_v28 = vmul.f32 %v13216_v6, %v13739_v32 }
0x2432   : > { %9955 = vmatmul.mubr.f32.vlgmr.msra.gmra.mrb[42].mxu1 %v3364_v28 }
0x2433   : > { %12197 = vmatpush3.bf16.msra.mxu1 %v13600_v58  ;;  %10000 = vmatprep.mubr.msk.f32.mxu1 %vm13273_vm3, %v15413_v10 }
0x2434   : > { %12198 = vmatprep.subr.bf16.mxu1 %v15414_v24 }
0x2437   : > { %12200 = vmatpush3.bf16.msra.mxu1 %v13613_v60 }
0x2438   : > { %12201 = vmatprep.subr.bf16.mxu1 %v15414_v24 }
0x243b   : > { %12203 = vmatpush3.bf16.msra.mxu1 %v13622_v61 }
0x243c   : > { %12204 = vmatprep.subr.bf16.mxu1 %v15414_v24 }
0x243f   : > { %12206 = vmatpush3.bf16.msra.mxu1 %v13633_v62 }
0x2440   : > { %12207 = vmatprep.subr.bf16.mxu1 %v15414_v24 }
0x2443   : > { %12209 = vmatpush3.bf16.msra.mxu1 %v13639_v63 }
0x2444   : > { %12210 = vmatprep.subr.bf16.mxu1 %v15414_v24 }
0x2447   : > { %12212 = vmatpush3.bf16.msra.mxu1 %v13646_v45 }
0x2448   : > { %12213 = vmatprep.subr.bf16.mxu1 %v15414_v24 }
0x244b   : > { %12215 = vmatpush3.bf16.msra.mxu1 %v13651_v46 }
0x244c   : > { %12216 = vmatprep.subr.bf16.mxu1 %v15414_v24 }
0x244f   : > { %12218 = vmatpush3.bf16.msra.mxu1 %v13658_v47 }
0x2450   : > { %12243 = vmatprep.subr.bf16.mxu1 %v15414_v24 }
0x2505   : > { %v3431_v37 = vpop.f32.mrb[42].mxu1 }
0x2506   : > { %v3435_v25 = vmul.f32 0.0625, %v3431_v37  ;;  %v9956_v29 = vpop.f32.mrb[43].mxu1 }
0x2508   : > { %v3436_v14 = vadd.f32 %v3435_v25, %v14364_v49 }
0x250a   : > { %9966 = vmatmul.mubr.msk.f32.vlgmr.msra.gmra.mrb[44].mxu0 %vm342_vm5, %v3436_v14 }
0x250b   : > { %12221 = vmatpush3.bf16.msra.mxu0 %v13664_v48  ;;  %10035 = vmatprep.mubr.msk.f32.mxu0 %vm13273_vm3, %v15413_v10 }
0x250c   : > { %12222 = vmatprep.subr.bf16.mxu0 %v15414_v24 }
0x250f   : > { %12224 = vmatpush3.bf16.msra.mxu0 %v13669_v50 }
0x2510   : > { %12225 = vmatprep.subr.bf16.mxu0 %v15414_v24 }
0x2513   : > { %12227 = vmatpush3.bf16.msra.mxu0 %v13675_v51 }
0x2514   : > { %12228 = vmatprep.subr.bf16.mxu0 %v15414_v24 }
0x2517   : > { %12230 = vmatpush3.bf16.msra.mxu0 %v13681_v52 }
0x2518   : > { %12231 = vmatprep.subr.bf16.mxu0 %v15414_v24 }
0x251b   : > { %12233 = vmatpush3.bf16.msra.mxu0 %v13786_v31 }
0x251c   : > { %12234 = vmatprep.subr.bf16.mxu0 %v15414_v24 }
0x251f   : > { %12236 = vmatpush3.bf16.msra.mxu0 %v13792_v3 }
0x2520   : > { %12237 = vmatprep.subr.bf16.mxu0 %v15414_v24 }
0x2523   : > { %12239 = vmatpush3.bf16.msra.mxu0 %v13797_v34 }
0x2524   : > { %12240 = vmatprep.subr.bf16.mxu0 %v15414_v24 }
0x2527   : > { %12242 = vmatpush3.bf16.msra.mxu0 %v13803_v35 }
0x2528   : > { %12249 = vmatprep.subr.bf16.mxu0 %v15414_v24 }
0x25dd   : > { %v3506_v55 = vpop.f32.mrb[44].mxu0 }
0x25de   : > { %v3507_v57 = vadd.f32 %v13471_v27, %v3506_v55  ;;  %v9967_v4 = vpop.f32.mrb[45].mxu0 }
0x25e0   : > { %v3510_v54 = vmax.f32 %v3507_v57, 0.0 }
0x25e2   : > { %10001 = vmatmul.mubr.f32.vlgmr.msra.gmra.mrb[44].mxu1 %v3510_v54 }
0x25e3   : > { %12245 = vmatpush3.bf16.msra.mxu1 %v13594_v56  ;;  %10046 = vmatprep.mubr.msk.f32.mxu1 %vm13273_vm3, %v15413_v10 }
0x25e4   : > { %12246 = vmatprep.subr.bf16.mxu1 %v15414_v24 }
0x25e7   : > { %12248 = vmatpush3.bf16.msra.mxu1 %v13605_v59 }
0x25e8   : > { %12273 = vmatprep.subr.bf16.mxu1 %v15414_v24 }
0x26b5   : > { %v3577_v13 = vpop.f32.mrb[44].mxu1 }
0x26b6   : > { %v3578_v5 = vadd.f32 %v13556_v44, %v3577_v13  ;;  %v10002_v9 = vpop.f32.mrb[45].mxu1 }
0x26b8   : > { %13217 = vtanh.f32 %v3578_v5 }
0x26c2   : > { %v13218_v30 = vpop.eup %13217 }
0x26c3   : > { %v3582_v23 = vmul.f32 %v13218_v30, %v13739_v32 }
0x26c5   : > { %10036 = vmatmul.mubr.f32.vlgmr.msra.gmra.mrb[46].mxu0 %v3582_v23 }
0x26c6   : > { %12251 = vmatpush3.bf16.msra.mxu0 %v13600_v58  ;;  %10081 = vmatprep.mubr.msk.f32.mxu0 %vm13273_vm3, %v15413_v10 }
0x26c7   : > { %12252 = vmatprep.subr.bf16.mxu0 %v15414_v24 }
0x26ca   : > { %12254 = vmatpush3.bf16.msra.mxu0 %v13613_v60 }
0x26cb   : > { %12255 = vmatprep.subr.bf16.mxu0 %v15414_v24 }
0x26ce   : > { %12257 = vmatpush3.bf16.msra.mxu0 %v13622_v61 }
0x26cf   : > { %12258 = vmatprep.subr.bf16.mxu0 %v15414_v24 }
0x26d2   : > { %12260 = vmatpush3.bf16.msra.mxu0 %v13633_v62 }
0x26d3   : > { %12261 = vmatprep.subr.bf16.mxu0 %v15414_v24 }
0x26d6   : > { %12263 = vmatpush3.bf16.msra.mxu0 %v13639_v63 }
0x26d7   : > { %12264 = vmatprep.subr.bf16.mxu0 %v15414_v24 }
0x26da   : > { %12266 = vmatpush3.bf16.msra.mxu0 %v13646_v45 }
0x26db   : > { %12267 = vmatprep.subr.bf16.mxu0 %v15414_v24 }
0x26de   : > { %12269 = vmatpush3.bf16.msra.mxu0 %v13651_v46 }
0x26df   : > { %12270 = vmatprep.subr.bf16.mxu0 %v15414_v24 }
0x26e2   : > { %12272 = vmatpush3.bf16.msra.mxu0 %v13658_v47 }
0x26e3   : > { %12297 = vmatprep.subr.bf16.mxu0 %v15414_v24 }
0x2798   : > { %v3649_v32 = vpop.f32.mrb[46].mxu0 }
0x2799   : > { %v3653_v11 = vmul.f32 0.125, %v3649_v32  ;;  %v3871_v6 = vadd.f32 %v3649_v32, %v3431_v37  ;;  %v10037_v28 = vpop.f32.mrb[47].mxu0 }
0x279b   : > { %v3654_v25 = vadd.f32 %v3653_v11, %v14364_v49  ;;  %v3872_v29 = vmul.f32 2.0, %v3871_v6 }
0x279d   : > { %10047 = vmatmul.mubr.msk.f32.vlgmr.msra.gmra.mrb[46].mxu1 %vm342_vm5, %v3654_v25  ;;  %v3873_v14 = vadd.f32 %v3872_v29, %v14413_v12 }
0x279e   : > { %12275 = vmatpush3.bf16.msra.mxu1 %v13664_v48  ;;  %10116 = vmatprep.mubr.msk.f32.mxu1 %vm13273_vm3, %v15413_v10 }
0x279f   : > { %12276 = vmatprep.subr.bf16.mxu1 %v15414_v24 }
0x27a2   : > { %12278 = vmatpush3.bf16.msra.mxu1 %v13669_v50 }
0x27a3   : > { %12279 = vmatprep.subr.bf16.mxu1 %v15414_v24 }
0x27a6   : > { %12281 = vmatpush3.bf16.msra.mxu1 %v13675_v51 }
0x27a7   : > { %12282 = vmatprep.subr.bf16.mxu1 %v15414_v24 }
0x27aa   : > { %12284 = vmatpush3.bf16.msra.mxu1 %v13681_v52 }
0x27ab   : > { %12285 = vmatprep.subr.bf16.mxu1 %v15414_v24 }
0x27ae   : > { %12287 = vmatpush3.bf16.msra.mxu1 %v13786_v31 }
0x27af   : > { %12288 = vmatprep.subr.bf16.mxu1 %v15414_v24 }
0x27b2   : > { %12290 = vmatpush3.bf16.msra.mxu1 %v13792_v3 }
0x27b3   : > { %12291 = vmatprep.subr.bf16.mxu1 %v15414_v24 }
0x27b6   : > { %12293 = vmatpush3.bf16.msra.mxu1 %v13797_v34 }
0x27b7   : > { %12294 = vmatprep.subr.bf16.mxu1 %v15414_v24 }
0x27ba   : > { %12296 = vmatpush3.bf16.msra.mxu1 %v13803_v35 }
0x27bb   : > { %12303 = vmatprep.subr.bf16.mxu1 %v15414_v24 }
0x2870   : > { %v3724_v12 = vpop.f32.mrb[46].mxu1 }
0x2871   : > { %v3725_v37 = vadd.f32 %v13471_v27, %v3724_v12  ;;  %v10048_v55 = vpop.f32.mrb[47].mxu1 }
0x2873   : > { %v3728_v57 = vmax.f32 %v3725_v37, 0.0 }
0x2875   : > { %10082 = vmatmul.mubr.f32.vlgmr.msra.gmra.mrb[48].mxu0 %v3728_v57 }
0x2876   : > { %12299 = vmatpush3.bf16.msra.mxu0 %v13594_v56  ;;  %10127 = vmatprep.mubr.msk.f32.mxu0 %vm13273_vm3, %v15413_v10 }
0x2877   : > { %12300 = vmatprep.subr.bf16.mxu0 %v15414_v24 }
0x287a   : > { %12302 = vmatpush3.bf16.msra.mxu0 %v13605_v59 }
0x287b   : > { %12327 = vmatprep.subr.bf16.mxu0 %v15414_v24 }
0x2948   : > { %v3795_v4 = vpop.f32.mrb[48].mxu0 }
0x2949   : > { %v3796_v54 = vadd.f32 %v13556_v44, %v3795_v4  ;;  %v10083_v13 = vpop.f32.mrb[49].mxu0 }
0x294b   : > { %13219 = vtanh.f32 %v3796_v54 }
0x2955   : > { %v13220_v5 = vpop.eup %13219 }
0x2956   : > { %v3800_v9 = vmul.f32 %v13220_v5, %v13743_v7 }
0x2958   : > { %10117 = vmatmul.mubr.f32.vlgmr.msra.gmra.mrb[48].mxu1 %v3800_v9 }
0x2959   : > { %12305 = vmatpush3.bf16.msra.mxu1 %v13600_v58  ;;  %10162 = vmatprep.mubr.msk.f32.mxu1 %vm13273_vm3, %v15413_v10 }
0x295a   : > { %12306 = vmatprep.subr.bf16.mxu1 %v15414_v24 }
0x295d   : > { %12308 = vmatpush3.bf16.msra.mxu1 %v13613_v60 }
0x295e   : > { %12309 = vmatprep.subr.bf16.mxu1 %v15414_v24 }
0x2961   : > { %12311 = vmatpush3.bf16.msra.mxu1 %v13622_v61 }
0x2962   : > { %12312 = vmatprep.subr.bf16.mxu1 %v15414_v24 }
0x2965   : > { %12314 = vmatpush3.bf16.msra.mxu1 %v13633_v62 }
0x2966   : > { %12315 = vmatprep.subr.bf16.mxu1 %v15414_v24 }
0x2969   : > { %12317 = vmatpush3.bf16.msra.mxu1 %v13639_v63 }
0x296a   : > { %12318 = vmatprep.subr.bf16.mxu1 %v15414_v24 }
0x296d   : > { %12320 = vmatpush3.bf16.msra.mxu1 %v13646_v45 }
0x296e   : > { %12321 = vmatprep.subr.bf16.mxu1 %v15414_v24 }
0x2971   : > { %12323 = vmatpush3.bf16.msra.mxu1 %v13651_v46 }
0x2972   : > { %12324 = vmatprep.subr.bf16.mxu1 %v15414_v24 }
0x2975   : > { %12326 = vmatpush3.bf16.msra.mxu1 %v13658_v47 }
0x2976   : > { %12351 = vmatprep.subr.bf16.mxu1 %v15414_v24 }
0x2a2b   : > { %v3867_v30 = vpop.f32.mrb[48].mxu1 }
0x2a2c   : > { %v3874_v23 = vadd.f32 %v3873_v14, %v3867_v30  ;;  %v10118_v32 = vpop.f32.mrb[49].mxu1 }
0x2a2e   : > { %v3875_v11 = vmul.f32 0.020833334, %v3874_v23 }
0x2a30   : > { %v14559_v6 = vadd.f32 %v3875_v11, %v14364_v49 }
0x2a32   : > { %10128 = vmatmul.mubr.msk.f32.vlgmr.msra.gmra.mrb[50].mxu0 %vm342_vm5, %v14559_v6 }
0x2a33   : > { %12329 = vmatpush3.bf16.msra.mxu0 %v13664_v48  ;;  %10197 = vmatprep.mubr.msk.f32.mxu0 %vm13273_vm3, %v15413_v10 }
0x2a34   : > { %12330 = vmatprep.subr.bf16.mxu0 %v15414_v24 }
0x2a37   : > { %12332 = vmatpush3.bf16.msra.mxu0 %v13669_v50 }
0x2a38   : > { %12333 = vmatprep.subr.bf16.mxu0 %v15414_v24 }
0x2a3b   : > { %12335 = vmatpush3.bf16.msra.mxu0 %v13675_v51 }
0x2a3c   : > { %12336 = vmatprep.subr.bf16.mxu0 %v15414_v24 }
0x2a3f   : > { %12338 = vmatpush3.bf16.msra.mxu0 %v13681_v52 }
0x2a40   : > { %12339 = vmatprep.subr.bf16.mxu0 %v15414_v24 }
0x2a43   : > { %12341 = vmatpush3.bf16.msra.mxu0 %v13786_v31 }
0x2a44   : > { %12342 = vmatprep.subr.bf16.mxu0 %v15414_v24 }
0x2a47   : > { %12344 = vmatpush3.bf16.msra.mxu0 %v13792_v3 }
0x2a48   : > { %12345 = vmatprep.subr.bf16.mxu0 %v15414_v24 }
0x2a4b   : > { %12347 = vmatpush3.bf16.msra.mxu0 %v13797_v34 }
0x2a4c   : > { %12348 = vmatprep.subr.bf16.mxu0 %v15414_v24 }
0x2a4f   : > { %12350 = vmatpush3.bf16.msra.mxu0 %v13803_v35 }
0x2a50   : > { %12357 = vmatprep.subr.bf16.mxu0 %v15414_v24 }
0x2b05   : > { %v3954_v49 = vpop.f32.mrb[50].mxu0 }
0x2b06   : > { %v3955_v28 = vadd.f32 %v13471_v27, %v3954_v49  ;;  %v10129_v25 = vpop.f32.mrb[51].mxu0 }
0x2b08   : > { %v3958_v29 = vmax.f32 %v3955_v28, 0.0 }
0x2b0a   : > { %10163 = vmatmul.mubr.f32.vlgmr.msra.gmra.mrb[50].mxu1 %v3958_v29 }
0x2b0b   : > { %12353 = vmatpush3.bf16.msra.mxu1 %v13594_v56  ;;  %10208 = vmatprep.mubr.msk.f32.mxu1 %vm13273_vm3, %v15413_v10 }
0x2b0c   : > { %12354 = vmatprep.subr.bf16.mxu1 %v15414_v24 }
0x2b0f   : > { %12356 = vmatpush3.bf16.msra.mxu1 %v13605_v59 }
0x2b10   : > { %12381 = vmatprep.subr.bf16.mxu1 %v15414_v24 }
0x2bdd   : > { %v4025_v14 = vpop.f32.mrb[50].mxu1 }
0x2bde   : > { %v4026_v12 = vadd.f32 %v13556_v44, %v4025_v14  ;;  %v10164_v37 = vpop.f32.mrb[51].mxu1 }
0x2be0   : > { %13221 = vtanh.f32 %v4026_v12 }
0x2bea   : > { %v13222_v55 = vpop.eup %13221 }
0x2beb   : > { %v4030_v57 = vmul.f32 %v13222_v55, %v13743_v7 }
0x2bed   : > { %10198 = vmatmul.mubr.f32.vlgmr.msra.gmra.mrb[52].mxu0 %v4030_v57 }
0x2bee   : > { %12359 = vmatpush3.bf16.msra.mxu0 %v13600_v58  ;;  %10243 = vmatprep.mubr.msk.f32.mxu0 %vm13273_vm3, %v15413_v10 }
0x2bef   : > { %12360 = vmatprep.subr.bf16.mxu0 %v15414_v24 }
0x2bf2   : > { %12362 = vmatpush3.bf16.msra.mxu0 %v13613_v60 }
0x2bf3   : > { %12363 = vmatprep.subr.bf16.mxu0 %v15414_v24 }
0x2bf6   : > { %12365 = vmatpush3.bf16.msra.mxu0 %v13622_v61 }
0x2bf7   : > { %12366 = vmatprep.subr.bf16.mxu0 %v15414_v24 }
0x2bfa   : > { %12368 = vmatpush3.bf16.msra.mxu0 %v13633_v62 }
0x2bfb   : > { %12369 = vmatprep.subr.bf16.mxu0 %v15414_v24 }
0x2bfe   : > { %12371 = vmatpush3.bf16.msra.mxu0 %v13639_v63 }
0x2bff   : > { %12372 = vmatprep.subr.bf16.mxu0 %v15414_v24 }
0x2c02   : > { %12374 = vmatpush3.bf16.msra.mxu0 %v13646_v45 }
0x2c03   : > { %12375 = vmatprep.subr.bf16.mxu0 %v15414_v24 }
0x2c06   : > { %12377 = vmatpush3.bf16.msra.mxu0 %v13651_v46 }
0x2c07   : > { %12378 = vmatprep.subr.bf16.mxu0 %v15414_v24 }
0x2c0a   : > { %12380 = vmatpush3.bf16.msra.mxu0 %v13658_v47 }
0x2c0b   : > { %12405 = vmatprep.subr.bf16.mxu0 %v15414_v24 }
0x2cc0   : > { %v14608_v7 = vpop.f32.mrb[52].mxu0 }
0x2cc1   : > { %v4101_v4 = vmul.f32 0.0625, %v14608_v7  ;;  %v10199_v54 = vpop.f32.mrb[53].mxu0 }
0x2cc3   : > { %v4102_v13 = vadd.f32 %v4101_v4, %v14559_v6 }
0x2cc5   : > { %10209 = vmatmul.mubr.msk.f32.vlgmr.msra.gmra.mrb[52].mxu1 %vm342_vm5, %v4102_v13 }
0x2cc6   : > { %12383 = vmatpush3.bf16.msra.mxu1 %v13664_v48  ;;  %10278 = vmatprep.mubr.msk.f32.mxu1 %vm13273_vm3, %v15413_v10 }
0x2cc7   : > { %12384 = vmatprep.subr.bf16.mxu1 %v15414_v24 }
0x2cca   : > { %12386 = vmatpush3.bf16.msra.mxu1 %v13669_v50 }
0x2ccb   : > { %12387 = vmatprep.subr.bf16.mxu1 %v15414_v24 }
0x2cce   : > { %12389 = vmatpush3.bf16.msra.mxu1 %v13675_v51 }
0x2ccf   : > { %12390 = vmatprep.subr.bf16.mxu1 %v15414_v24 }
0x2cd2   : > { %12392 = vmatpush3.bf16.msra.mxu1 %v13681_v52 }
0x2cd3   : > { %12393 = vmatprep.subr.bf16.mxu1 %v15414_v24 }
0x2cd6   : > { %12395 = vmatpush3.bf16.msra.mxu1 %v13786_v31 }
0x2cd7   : > { %12396 = vmatprep.subr.bf16.mxu1 %v15414_v24 }
0x2cda   : > { %12398 = vmatpush3.bf16.msra.mxu1 %v13792_v3 }
0x2cdb   : > { %12399 = vmatprep.subr.bf16.mxu1 %v15414_v24 }
0x2cde   : > { %12401 = vmatpush3.bf16.msra.mxu1 %v13797_v34 }
0x2cdf   : > { %12402 = vmatprep.subr.bf16.mxu1 %v15414_v24 }
0x2ce2   : > { %12404 = vmatpush3.bf16.msra.mxu1 %v13803_v35 }
0x2ce3   : > { %12411 = vmatprep.subr.bf16.mxu1 %v15414_v24 }
0x2d98   : > { %v4172_v5 = vpop.f32.mrb[52].mxu1 }
0x2d99   : > { %v4173_v9 = vadd.f32 %v13471_v27, %v4172_v5  ;;  %v10210_v30 = vpop.f32.mrb[53].mxu1 }
0x2d9b   : > { %v4176_v23 = vmax.f32 %v4173_v9, 0.0 }
0x2d9d   : > { %10244 = vmatmul.mubr.f32.vlgmr.msra.gmra.mrb[54].mxu0 %v4176_v23 }
0x2d9e   : > { %12407 = vmatpush3.bf16.msra.mxu0 %v13594_v56  ;;  %10289 = vmatprep.mubr.msk.f32.mxu0 %vm13273_vm3, %v15413_v10 }
0x2d9f   : > { %12408 = vmatprep.subr.bf16.mxu0 %v15414_v24 }
0x2da2   : > { %12410 = vmatpush3.bf16.msra.mxu0 %v13605_v59 }
0x2da3   : > { %12435 = vmatprep.subr.bf16.mxu0 %v15414_v24 }
0x2e70   : > { %v4243_v32 = vpop.f32.mrb[54].mxu0 }
0x2e71   : > { %v4244_v11 = vadd.f32 %v13556_v44, %v4243_v32  ;;  %v10245_v49 = vpop.f32.mrb[55].mxu0 }
0x2e73   : > { %13223 = vtanh.f32 %v4244_v11 }
0x2e7d   : > { %v13224_v28 = vpop.eup %13223 }
0x2e7e   : > { %v4248_v25 = vmul.f32 %v13224_v28, %v13745_v8 }
0x2e80   : > { %10279 = vmatmul.mubr.f32.vlgmr.msra.gmra.mrb[54].mxu1 %v4248_v25 }
0x2e81   : > { %12413 = vmatpush3.bf16.msra.mxu1 %v13600_v58  ;;  %10324 = vmatprep.mubr.msk.f32.mxu1 %vm13273_vm3, %v15413_v10 }
0x2e82   : > { %12414 = vmatprep.subr.bf16.mxu1 %v15414_v24 }
0x2e85   : > { %12416 = vmatpush3.bf16.msra.mxu1 %v13613_v60 }
0x2e86   : > { %12417 = vmatprep.subr.bf16.mxu1 %v15414_v24 }
0x2e89   : > { %12419 = vmatpush3.bf16.msra.mxu1 %v13622_v61 }
0x2e8a   : > { %12420 = vmatprep.subr.bf16.mxu1 %v15414_v24 }
0x2e8d   : > { %12422 = vmatpush3.bf16.msra.mxu1 %v13633_v62 }
0x2e8e   : > { %12423 = vmatprep.subr.bf16.mxu1 %v15414_v24 }
0x2e91   : > { %12425 = vmatpush3.bf16.msra.mxu1 %v13639_v63 }
0x2e92   : > { %12426 = vmatprep.subr.bf16.mxu1 %v15414_v24 }
0x2e95   : > { %12428 = vmatpush3.bf16.msra.mxu1 %v13646_v45 }
0x2e96   : > { %12429 = vmatprep.subr.bf16.mxu1 %v15414_v24 }
0x2e99   : > { %12431 = vmatpush3.bf16.msra.mxu1 %v13651_v46 }
0x2e9a   : > { %12432 = vmatprep.subr.bf16.mxu1 %v15414_v24 }
0x2e9d   : > { %12434 = vmatpush3.bf16.msra.mxu1 %v13658_v47 }
0x2e9e   : > { %12459 = vmatprep.subr.bf16.mxu1 %v15414_v24 }
0x2f53   : > { %v4315_v29 = vpop.f32.mrb[54].mxu1 }
0x2f54   : > { %v4319_v14 = vmul.f32 0.0625, %v4315_v29  ;;  %v10280_v12 = vpop.f32.mrb[55].mxu1 }
0x2f56   : > { %v4320_v37 = vadd.f32 %v4319_v14, %v14559_v6 }
0x2f58   : > { %10290 = vmatmul.mubr.msk.f32.vlgmr.msra.gmra.mrb[56].mxu0 %vm342_vm5, %v4320_v37 }
0x2f59   : > { %12437 = vmatpush3.bf16.msra.mxu0 %v13664_v48  ;;  %10359 = vmatprep.mubr.msk.f32.mxu0 %vm13273_vm3, %v15413_v10 }
0x2f5a   : > { %12438 = vmatprep.subr.bf16.mxu0 %v15414_v24 }
0x2f5d   : > { %12440 = vmatpush3.bf16.msra.mxu0 %v13669_v50 }
0x2f5e   : > { %12441 = vmatprep.subr.bf16.mxu0 %v15414_v24 }
0x2f61   : > { %12443 = vmatpush3.bf16.msra.mxu0 %v13675_v51 }
0x2f62   : > { %12444 = vmatprep.subr.bf16.mxu0 %v15414_v24 }
0x2f65   : > { %12446 = vmatpush3.bf16.msra.mxu0 %v13681_v52 }
0x2f66   : > { %12447 = vmatprep.subr.bf16.mxu0 %v15414_v24 }
0x2f69   : > { %12449 = vmatpush3.bf16.msra.mxu0 %v13786_v31 }
0x2f6a   : > { %12450 = vmatprep.subr.bf16.mxu0 %v15414_v24 }
0x2f6d   : > { %12452 = vmatpush3.bf16.msra.mxu0 %v13792_v3 }
0x2f6e   : > { %12453 = vmatprep.subr.bf16.mxu0 %v15414_v24 }
0x2f71   : > { %12455 = vmatpush3.bf16.msra.mxu0 %v13797_v34 }
0x2f72   : > { %12456 = vmatprep.subr.bf16.mxu0 %v15414_v24 }
0x2f75   : > { %12458 = vmatpush3.bf16.msra.mxu0 %v13803_v35 }
0x2f76   : > { %12465 = vmatprep.subr.bf16.mxu0 %v15414_v24 }
0x302b   : > { %v4390_v55 = vpop.f32.mrb[56].mxu0 }
0x302c   : > { %v4391_v57 = vadd.f32 %v13471_v27, %v4390_v55  ;;  %v10291_v4 = vpop.f32.mrb[57].mxu0 }
0x302e   : > { %v4394_v54 = vmax.f32 %v4391_v57, 0.0 }
0x3030   : > { %10325 = vmatmul.mubr.f32.vlgmr.msra.gmra.mrb[56].mxu1 %v4394_v54 }
0x3031   : > { %12461 = vmatpush3.bf16.msra.mxu1 %v13594_v56  ;;  %10370 = vmatprep.mubr.msk.f32.mxu1 %vm13273_vm3, %v15413_v10 }
0x3032   : > { %12462 = vmatprep.subr.bf16.mxu1 %v15414_v24 }
0x3035   : > { %12464 = vmatpush3.bf16.msra.mxu1 %v13605_v59 }
0x3036   : > { %12489 = vmatprep.subr.bf16.mxu1 %v15414_v24 }
0x3103   : > { %v4461_v13 = vpop.f32.mrb[56].mxu1 }
0x3104   : > { %v4462_v5 = vadd.f32 %v13556_v44, %v4461_v13  ;;  %v10326_v9 = vpop.f32.mrb[57].mxu1 }
0x3106   : > { %13225 = vtanh.f32 %v4462_v5 }
0x3110   : > { %v13226_v30 = vpop.eup %13225 }
0x3111   : > { %v4466_v23 = vmul.f32 %v13226_v30, %v13745_v8 }
0x3113   : > { %10360 = vmatmul.mubr.f32.vlgmr.msra.gmra.mrb[58].mxu0 %v4466_v23 }
0x3114   : > { %12467 = vmatpush3.bf16.msra.mxu0 %v13600_v58  ;;  %10405 = vmatprep.mubr.msk.f32.mxu0 %vm13273_vm3, %v15413_v10 }
0x3115   : > { %12468 = vmatprep.subr.bf16.mxu0 %v15414_v24 }
0x3118   : > { %12470 = vmatpush3.bf16.msra.mxu0 %v13613_v60 }
0x3119   : > { %12471 = vmatprep.subr.bf16.mxu0 %v15414_v24 }
0x311c   : > { %12473 = vmatpush3.bf16.msra.mxu0 %v13622_v61 }
0x311d   : > { %12474 = vmatprep.subr.bf16.mxu0 %v15414_v24 }
0x3120   : > { %12476 = vmatpush3.bf16.msra.mxu0 %v13633_v62 }
0x3121   : > { %12477 = vmatprep.subr.bf16.mxu0 %v15414_v24 }
0x3124   : > { %12479 = vmatpush3.bf16.msra.mxu0 %v13639_v63 }
0x3125   : > { %12480 = vmatprep.subr.bf16.mxu0 %v15414_v24 }
0x3128   : > { %12482 = vmatpush3.bf16.msra.mxu0 %v13646_v45 }
0x3129   : > { %12483 = vmatprep.subr.bf16.mxu0 %v15414_v24 }
0x312c   : > { %12485 = vmatpush3.bf16.msra.mxu0 %v13651_v46 }
0x312d   : > { %12486 = vmatprep.subr.bf16.mxu0 %v15414_v24 }
0x3130   : > { %12488 = vmatpush3.bf16.msra.mxu0 %v13658_v47 }
0x3131   : > { %12513 = vmatprep.subr.bf16.mxu0 %v15414_v24 }
0x31e6   : > { %v4533_v8 = vpop.f32.mrb[58].mxu0 }
0x31e7   : > { %v4537_v32 = vmul.f32 0.125, %v4533_v8  ;;  %v4755_v11 = vadd.f32 %v4533_v8, %v4315_v29  ;;  %v10361_v49 = vpop.f32.mrb[59].mxu0 }
0x31e9   : > { %v4538_v28 = vadd.f32 %v4537_v32, %v14559_v6  ;;  %v4756_v25 = vmul.f32 2.0, %v4755_v11 }
0x31eb   : > { %10371 = vmatmul.mubr.msk.f32.vlgmr.msra.gmra.mrb[58].mxu1 %vm342_vm5, %v4538_v28  ;;  %v4757_v14 = vadd.f32 %v4756_v25, %v14608_v7 }
0x31ec   : > { %12491 = vmatpush3.bf16.msra.mxu1 %v13664_v48  ;;  %10440 = vmatprep.mubr.msk.f32.mxu1 %vm13273_vm3, %v15413_v10 }
0x31ed   : > { %12492 = vmatprep.subr.bf16.mxu1 %v15414_v24 }
0x31f0   : > { %12494 = vmatpush3.bf16.msra.mxu1 %v13669_v50 }
0x31f1   : > { %12495 = vmatprep.subr.bf16.mxu1 %v15414_v24 }
0x31f4   : > { %12497 = vmatpush3.bf16.msra.mxu1 %v13675_v51 }
0x31f5   : > { %12498 = vmatprep.subr.bf16.mxu1 %v15414_v24 }
0x31f8   : > { %12500 = vmatpush3.bf16.msra.mxu1 %v13681_v52 }
0x31f9   : > { %12501 = vmatprep.subr.bf16.mxu1 %v15414_v24 }
0x31fc   : > { %12503 = vmatpush3.bf16.msra.mxu1 %v13786_v31 }
0x31fd   : > { %12504 = vmatprep.subr.bf16.mxu1 %v15414_v24 }
0x3200   : > { %12506 = vmatpush3.bf16.msra.mxu1 %v13792_v3 }
0x3201   : > { %12507 = vmatprep.subr.bf16.mxu1 %v15414_v24 }
0x3204   : > { %12509 = vmatpush3.bf16.msra.mxu1 %v13797_v34 }
0x3205   : > { %12510 = vmatprep.subr.bf16.mxu1 %v15414_v24 }
0x3208   : > { %12512 = vmatpush3.bf16.msra.mxu1 %v13803_v35 }
0x3209   : > { %12519 = vmatprep.subr.bf16.mxu1 %v15414_v24 }
0x32be   : > { %v4608_v7 = vpop.f32.mrb[58].mxu1 }
0x32bf   : > { %v4609_v29 = vadd.f32 %v13471_v27, %v4608_v7  ;;  %v10372_v12 = vpop.f32.mrb[59].mxu1 }
0x32c1   : > { %v4612_v37 = vmax.f32 %v4609_v29, 0.0 }
0x32c3   : > { %10406 = vmatmul.mubr.f32.vlgmr.msra.gmra.mrb[60].mxu0 %v4612_v37 }
0x32c4   : > { %12515 = vmatpush3.bf16.msra.mxu0 %v13594_v56  ;;  %10451 = vmatprep.mubr.msk.f32.mxu0 %vm13273_vm3, %v15413_v10 }
0x32c5   : > { %12516 = vmatprep.subr.bf16.mxu0 %v15414_v24 }
0x32c8   : > { %12518 = vmatpush3.bf16.msra.mxu0 %v13605_v59 }
0x32c9   : > { %12543 = vmatprep.subr.bf16.mxu0 %v15414_v24 }
0x3396   : > { %v4679_v55 = vpop.f32.mrb[60].mxu0 }
0x3397   : > { %v4680_v57 = vadd.f32 %v13556_v44, %v4679_v55  ;;  %v10407_v4 = vpop.f32.mrb[61].mxu0 }
0x3399   : > { %13227 = vtanh.f32 %v4680_v57 }
0x33a3   : > { %v13228_v54 = vpop.eup %13227 }
0x33a4   : > { %v4684_v13 = vmul.f32 %v13228_v54, %v13756_v1 }
0x33a6   : > { %10441 = vmatmul.mubr.f32.vlgmr.msra.gmra.mrb[60].mxu1 %v4684_v13 }
0x33a7   : > { %12521 = vmatpush3.bf16.msra.mxu1 %v13600_v58  ;;  %10486 = vmatprep.mubr.msk.f32.mxu1 %vm13273_vm3, %v15413_v10 }
0x33a8   : > { %12522 = vmatprep.subr.bf16.mxu1 %v15414_v24 }
0x33ab   : > { %12524 = vmatpush3.bf16.msra.mxu1 %v13613_v60 }
0x33ac   : > { %12525 = vmatprep.subr.bf16.mxu1 %v15414_v24 }
0x33af   : > { %12527 = vmatpush3.bf16.msra.mxu1 %v13622_v61 }
0x33b0   : > { %12528 = vmatprep.subr.bf16.mxu1 %v15414_v24 }
0x33b3   : > { %12530 = vmatpush3.bf16.msra.mxu1 %v13633_v62 }
0x33b4   : > { %12531 = vmatprep.subr.bf16.mxu1 %v15414_v24 }
0x33b7   : > { %12533 = vmatpush3.bf16.msra.mxu1 %v13639_v63 }
0x33b8   : > { %12534 = vmatprep.subr.bf16.mxu1 %v15414_v24 }
0x33bb   : > { %12536 = vmatpush3.bf16.msra.mxu1 %v13646_v45 }
0x33bc   : > { %12537 = vmatprep.subr.bf16.mxu1 %v15414_v24 }
0x33bf   : > { %12539 = vmatpush3.bf16.msra.mxu1 %v13651_v46 }
0x33c0   : > { %12540 = vmatprep.subr.bf16.mxu1 %v15414_v24 }
0x33c3   : > { %12542 = vmatpush3.bf16.msra.mxu1 %v13658_v47 }
0x33c4   : > { %12567 = vmatprep.subr.bf16.mxu1 %v15414_v24 }
0x3479   : > { %v4751_v5 = vpop.f32.mrb[60].mxu1 }
0x347a   : > { %v4758_v9 = vadd.f32 %v4757_v14, %v4751_v5  ;;  %v10442_v30 = vpop.f32.mrb[61].mxu1 }
0x347c   : > { %v4759_v23 = vmul.f32 0.020833334, %v4758_v9 }
0x347e   : > { %v14754_v8 = vadd.f32 %v4759_v23, %v14559_v6 }
0x3480   : > { %10452 = vmatmul.mubr.msk.f32.vlgmr.msra.gmra.mrb[62].mxu0 %vm342_vm5, %v14754_v8 }
0x3481   : > { %12545 = vmatpush3.bf16.msra.mxu0 %v13664_v48  ;;  %10521 = vmatprep.mubr.msk.f32.mxu0 %vm13273_vm3, %v15413_v10 }
0x3482   : > { %12546 = vmatprep.subr.bf16.mxu0 %v15414_v24 }
0x3485   : > { %12548 = vmatpush3.bf16.msra.mxu0 %v13669_v50 }
0x3486   : > { %12549 = vmatprep.subr.bf16.mxu0 %v15414_v24 }
0x3489   : > { %12551 = vmatpush3.bf16.msra.mxu0 %v13675_v51 }
0x348a   : > { %12552 = vmatprep.subr.bf16.mxu0 %v15414_v24 }
0x348d   : > { %12554 = vmatpush3.bf16.msra.mxu0 %v13681_v52 }
0x348e   : > { %12555 = vmatprep.subr.bf16.mxu0 %v15414_v24 }
0x3491   : > { %12557 = vmatpush3.bf16.msra.mxu0 %v13786_v31 }
0x3492   : > { %12558 = vmatprep.subr.bf16.mxu0 %v15414_v24 }
0x3495   : > { %12560 = vmatpush3.bf16.msra.mxu0 %v13792_v3 }
0x3496   : > { %12561 = vmatprep.subr.bf16.mxu0 %v15414_v24 }
0x3499   : > { %12563 = vmatpush3.bf16.msra.mxu0 %v13797_v34 }
0x349a   : > { %12564 = vmatprep.subr.bf16.mxu0 %v15414_v24 }
0x349d   : > { %12566 = vmatpush3.bf16.msra.mxu0 %v13803_v35 }
0x349e   : > { %12573 = vmatprep.subr.bf16.mxu0 %v15414_v24 }
0x3553   : > { %v4838_v6 = vpop.f32.mrb[62].mxu0 }
0x3554   : > { %v4839_v32 = vadd.f32 %v13471_v27, %v4838_v6  ;;  %v10453_v11 = vpop.f32.mrb[63].mxu0 }
0x3556   : > { %v4842_v49 = vmax.f32 %v4839_v32, 0.0 }
0x3558   : > { %10487 = vmatmul.mubr.f32.vlgmr.msra.gmra.mrb[62].mxu1 %v4842_v49 }
0x3559   : > { %12569 = vmatpush3.bf16.msra.mxu1 %v13594_v56  ;;  %10532 = vmatprep.mubr.msk.f32.mxu1 %vm13273_vm3, %v15413_v10 }
0x355a   : > { %12570 = vmatprep.subr.bf16.mxu1 %v15414_v24 }
0x355d   : > { %12572 = vmatpush3.bf16.msra.mxu1 %v13605_v59 }
0x355e   : > { %12597 = vmatprep.subr.bf16.mxu1 %v15414_v24 }
0x362b   : > { %v4909_v28 = vpop.f32.mrb[62].mxu1 }
0x362c   : > { %v4910_v25 = vadd.f32 %v13556_v44, %v4909_v28  ;;  %v10488_v14 = vpop.f32.mrb[63].mxu1 }
0x362e   : > { %13229 = vtanh.f32 %v4910_v25 }
0x3638   : > { %v13230_v7 = vpop.eup %13229 }
0x3639   : > { %v4914_v29 = vmul.f32 %v13230_v7, %v13756_v1 }
0x363b   : > { %10522 = vmatmul.mubr.f32.vlgmr.msra.gmra.mrb[64].mxu0 %v4914_v29 }
0x363c   : > { %12575 = vmatpush3.bf16.msra.mxu0 %v13600_v58  ;;  %10567 = vmatprep.mubr.msk.f32.mxu0 %vm13273_vm3, %v15413_v10 }
0x363d   : > { %12576 = vmatprep.subr.bf16.mxu0 %v15414_v24 }
0x3640   : > { %12578 = vmatpush3.bf16.msra.mxu0 %v13613_v60 }
0x3641   : > { %12579 = vmatprep.subr.bf16.mxu0 %v15414_v24 }
0x3644   : > { %12581 = vmatpush3.bf16.msra.mxu0 %v13622_v61 }
0x3645   : > { %12582 = vmatprep.subr.bf16.mxu0 %v15414_v24 }
0x3648   : > { %12584 = vmatpush3.bf16.msra.mxu0 %v13633_v62 }
0x3649   : > { %12585 = vmatprep.subr.bf16.mxu0 %v15414_v24 }
0x364c   : > { %12587 = vmatpush3.bf16.msra.mxu0 %v13639_v63 }
0x364d   : > { %12588 = vmatprep.subr.bf16.mxu0 %v15414_v24 }
0x3650   : > { %12590 = vmatpush3.bf16.msra.mxu0 %v13646_v45 }
0x3651   : > { %12591 = vmatprep.subr.bf16.mxu0 %v15414_v24 }
0x3654   : > { %12593 = vmatpush3.bf16.msra.mxu0 %v13651_v46 }
0x3655   : > { %12594 = vmatprep.subr.bf16.mxu0 %v15414_v24 }
0x3658   : > { %12596 = vmatpush3.bf16.msra.mxu0 %v13658_v47 }
0x3659   : > { %12621 = vmatprep.subr.bf16.mxu0 %v15414_v24 }
0x370e   : > { %v14803_v1 = vpop.f32.mrb[64].mxu0 }
0x370f   : > { %v4985_v12 = vmul.f32 0.0625, %v14803_v1  ;;  %v10523_v37 = vpop.f32.mrb[65].mxu0 }
0x3711   : > { %v4986_v55 = vadd.f32 %v4985_v12, %v14754_v8 }
0x3713   : > { %10533 = vmatmul.mubr.msk.f32.vlgmr.msra.gmra.mrb[64].mxu1 %vm342_vm5, %v4986_v55 }
0x3714   : > { %12599 = vmatpush3.bf16.msra.mxu1 %v13664_v48  ;;  %10602 = vmatprep.mubr.msk.f32.mxu1 %vm13273_vm3, %v15413_v10 }
0x3715   : > { %12600 = vmatprep.subr.bf16.mxu1 %v15414_v24 }
0x3718   : > { %12602 = vmatpush3.bf16.msra.mxu1 %v13669_v50 }
0x3719   : > { %12603 = vmatprep.subr.bf16.mxu1 %v15414_v24 }
0x371c   : > { %12605 = vmatpush3.bf16.msra.mxu1 %v13675_v51 }
0x371d   : > { %12606 = vmatprep.subr.bf16.mxu1 %v15414_v24 }
0x3720   : > { %12608 = vmatpush3.bf16.msra.mxu1 %v13681_v52 }
0x3721   : > { %12609 = vmatprep.subr.bf16.mxu1 %v15414_v24 }
0x3724   : > { %12611 = vmatpush3.bf16.msra.mxu1 %v13786_v31 }
0x3725   : > { %12612 = vmatprep.subr.bf16.mxu1 %v15414_v24 }
0x3728   : > { %12614 = vmatpush3.bf16.msra.mxu1 %v13792_v3 }
0x3729   : > { %12615 = vmatprep.subr.bf16.mxu1 %v15414_v24 }
0x372c   : > { %12617 = vmatpush3.bf16.msra.mxu1 %v13797_v34 }
0x372d   : > { %12618 = vmatprep.subr.bf16.mxu1 %v15414_v24 }
0x3730   : > { %12620 = vmatpush3.bf16.msra.mxu1 %v13803_v35 }
0x3731   : > { %12627 = vmatprep.subr.bf16.mxu1 %v15414_v24 }
0x37e6   : > { %v5056_v57 = vpop.f32.mrb[64].mxu1 }
0x37e7   : > { %v5057_v4 = vadd.f32 %v13471_v27, %v5056_v57  ;;  %v10534_v54 = vpop.f32.mrb[65].mxu1 }
0x37e9   : > { %v5060_v13 = vmax.f32 %v5057_v4, 0.0 }
0x37eb   : > { %10568 = vmatmul.mubr.f32.vlgmr.msra.gmra.mrb[66].mxu0 %v5060_v13 }
0x37ec   : > { %12623 = vmatpush3.bf16.msra.mxu0 %v13594_v56  ;;  %10613 = vmatprep.mubr.msk.f32.mxu0 %vm13273_vm3, %v15413_v10 }
0x37ed   : > { %12624 = vmatprep.subr.bf16.mxu0 %v15414_v24 }
0x37f0   : > { %12626 = vmatpush3.bf16.msra.mxu0 %v13605_v59 }
0x37f1   : > { %12651 = vmatprep.subr.bf16.mxu0 %v15414_v24 }
0x38be   : > { %v5127_v5 = vpop.f32.mrb[66].mxu0 }
0x38bf   : > { %v5128_v9 = vadd.f32 %v13556_v44, %v5127_v5  ;;  %v10569_v30 = vpop.f32.mrb[67].mxu0 }
0x38c1   : > { %13231 = vtanh.f32 %v5128_v9 }
0x38cb   : > { %v13232_v23 = vpop.eup %13231 }
0x38cc   : > { %v5132_v6 = vmul.f32 %v13232_v23, %v13762_v53 }
0x38ce   : > { %10603 = vmatmul.mubr.f32.vlgmr.msra.gmra.mrb[66].mxu1 %v5132_v6 }
0x38cf   : > { %12629 = vmatpush3.bf16.msra.mxu1 %v13600_v58  ;;  %10648 = vmatprep.mubr.msk.f32.mxu1 %vm13273_vm3, %v15413_v10 }
0x38d0   : > { %12630 = vmatprep.subr.bf16.mxu1 %v15414_v24 }
0x38d3   : > { %12632 = vmatpush3.bf16.msra.mxu1 %v13613_v60 }
0x38d4   : > { %12633 = vmatprep.subr.bf16.mxu1 %v15414_v24 }
0x38d7   : > { %12635 = vmatpush3.bf16.msra.mxu1 %v13622_v61 }
0x38d8   : > { %12636 = vmatprep.subr.bf16.mxu1 %v15414_v24 }
0x38db   : > { %12638 = vmatpush3.bf16.msra.mxu1 %v13633_v62 }
0x38dc   : > { %12639 = vmatprep.subr.bf16.mxu1 %v15414_v24 }
0x38df   : > { %12641 = vmatpush3.bf16.msra.mxu1 %v13639_v63 }
0x38e0   : > { %12642 = vmatprep.subr.bf16.mxu1 %v15414_v24 }
0x38e3   : > { %12644 = vmatpush3.bf16.msra.mxu1 %v13646_v45 }
0x38e4   : > { %12645 = vmatprep.subr.bf16.mxu1 %v15414_v24 }
0x38e7   : > { %12647 = vmatpush3.bf16.msra.mxu1 %v13651_v46 }
0x38e8   : > { %12648 = vmatprep.subr.bf16.mxu1 %v15414_v24 }
0x38eb   : > { %12650 = vmatpush3.bf16.msra.mxu1 %v13658_v47 }
0x38ec   : > { %12675 = vmatprep.subr.bf16.mxu1 %v15414_v24 }
0x39a1   : > { %v5199_v32 = vpop.f32.mrb[66].mxu1 }
0x39a2   : > { %v5203_v11 = vmul.f32 0.0625, %v5199_v32  ;;  %v10604_v49 = vpop.f32.mrb[67].mxu1 }
0x39a4   : > { %v5204_v28 = vadd.f32 %v5203_v11, %v14754_v8 }
0x39a6   : > { %10614 = vmatmul.mubr.msk.f32.vlgmr.msra.gmra.mrb[68].mxu0 %vm342_vm5, %v5204_v28 }
0x39a7   : > { %12653 = vmatpush3.bf16.msra.mxu0 %v13664_v48  ;;  %10683 = vmatprep.mubr.msk.f32.mxu0 %vm13273_vm3, %v15413_v10 }
0x39a8   : > { %12654 = vmatprep.subr.bf16.mxu0 %v15414_v24 }
0x39ab   : > { %12656 = vmatpush3.bf16.msra.mxu0 %v13669_v50 }
0x39ac   : > { %12657 = vmatprep.subr.bf16.mxu0 %v15414_v24 }
0x39af   : > { %12659 = vmatpush3.bf16.msra.mxu0 %v13675_v51 }
0x39b0   : > { %12660 = vmatprep.subr.bf16.mxu0 %v15414_v24 }
0x39b3   : > { %12662 = vmatpush3.bf16.msra.mxu0 %v13681_v52 }
0x39b4   : > { %12663 = vmatprep.subr.bf16.mxu0 %v15414_v24 }
0x39b7   : > { %12665 = vmatpush3.bf16.msra.mxu0 %v13786_v31 }
0x39b8   : > { %12666 = vmatprep.subr.bf16.mxu0 %v15414_v24 }
0x39bb   : > { %12668 = vmatpush3.bf16.msra.mxu0 %v13792_v3 }
0x39bc   : > { %12669 = vmatprep.subr.bf16.mxu0 %v15414_v24 }
0x39bf   : > { %12671 = vmatpush3.bf16.msra.mxu0 %v13797_v34 }
0x39c0   : > { %12672 = vmatprep.subr.bf16.mxu0 %v15414_v24 }
0x39c3   : > { %12674 = vmatpush3.bf16.msra.mxu0 %v13803_v35 }
0x39c4   : > { %12681 = vmatprep.subr.bf16.mxu0 %v15414_v24 }
0x3a79   : > { %v5274_v25 = vpop.f32.mrb[68].mxu0 }
0x3a7a   : > { %v5275_v14 = vadd.f32 %v13471_v27, %v5274_v25  ;;  %v10615_v7 = vpop.f32.mrb[69].mxu0 }
0x3a7c   : > { %v5278_v29 = vmax.f32 %v5275_v14, 0.0 }
0x3a7e   : > { %10649 = vmatmul.mubr.f32.vlgmr.msra.gmra.mrb[68].mxu1 %v5278_v29 }
0x3a7f   : > { %12677 = vmatpush3.bf16.msra.mxu1 %v13594_v56  ;;  %10694 = vmatprep.mubr.msk.f32.mxu1 %vm13273_vm3, %v15413_v10 }
0x3a80   : > { %12678 = vmatprep.subr.bf16.mxu1 %v15414_v24 }
0x3a83   : > { %12680 = vmatpush3.bf16.msra.mxu1 %v13605_v59 }
0x3a84   : > { %12705 = vmatprep.subr.bf16.mxu1 %v15414_v24 }
0x3b51   : > { %v5345_v12 = vpop.f32.mrb[68].mxu1 }
0x3b52   : > { %v5346_v37 = vadd.f32 %v13556_v44, %v5345_v12  ;;  %v10650_v55 = vpop.f32.mrb[69].mxu1 }
0x3b54   : > { %13233 = vtanh.f32 %v5346_v37 }
0x3b5e   : > { %v13234_v57 = vpop.eup %13233 }
0x3b5f   : > { %v5350_v4 = vmul.f32 %v13234_v57, %v13762_v53 }
0x3b61   : > { %10684 = vmatmul.mubr.f32.vlgmr.msra.gmra.mrb[70].mxu0 %v5350_v4 }
0x3b62   : > { %12683 = vmatpush3.bf16.msra.mxu0 %v13600_v58  ;;  %10729 = vmatprep.mubr.msk.f32.mxu0 %vm13273_vm3, %v15413_v10 }
0x3b63   : > { %12684 = vmatprep.subr.bf16.mxu0 %v15414_v24 }
0x3b66   : > { %12686 = vmatpush3.bf16.msra.mxu0 %v13613_v60 }
0x3b67   : > { %12687 = vmatprep.subr.bf16.mxu0 %v15414_v24 }
0x3b6a   : > { %12689 = vmatpush3.bf16.msra.mxu0 %v13622_v61 }
0x3b6b   : > { %12690 = vmatprep.subr.bf16.mxu0 %v15414_v24 }
0x3b6e   : > { %12692 = vmatpush3.bf16.msra.mxu0 %v13633_v62 }
0x3b6f   : > { %12693 = vmatprep.subr.bf16.mxu0 %v15414_v24 }
0x3b72   : > { %12695 = vmatpush3.bf16.msra.mxu0 %v13639_v63 }
0x3b73   : > { %12696 = vmatprep.subr.bf16.mxu0 %v15414_v24 }
0x3b76   : > { %12698 = vmatpush3.bf16.msra.mxu0 %v13646_v45 }
0x3b77   : > { %12699 = vmatprep.subr.bf16.mxu0 %v15414_v24 }
0x3b7a   : > { %12701 = vmatpush3.bf16.msra.mxu0 %v13651_v46 }
0x3b7b   : > { %12702 = vmatprep.subr.bf16.mxu0 %v15414_v24 }
0x3b7e   : > { %12704 = vmatpush3.bf16.msra.mxu0 %v13658_v47 }
0x3b7f   : > { %12729 = vmatprep.subr.bf16.mxu0 %v15414_v24 }
0x3c34   : > { %v5417_v53 = vpop.f32.mrb[70].mxu0 }
0x3c35   : > { %v5421_v54 = vmul.f32 0.125, %v5417_v53  ;;  %v5639_v13 = vadd.f32 %v5417_v53, %v5199_v32  ;;  %v10685_v5 = vpop.f32.mrb[71].mxu0 }
0x3c37   : > { %v5422_v9 = vadd.f32 %v5421_v54, %v14754_v8  ;;  %v5640_v30 = vmul.f32 2.0, %v5639_v13 }
0x3c39   : > { %10695 = vmatmul.mubr.msk.f32.vlgmr.msra.gmra.mrb[70].mxu1 %vm342_vm5, %v5422_v9  ;;  %v5641_v23 = vadd.f32 %v5640_v30, %v14803_v1 }
0x3c3a   : > { %12707 = vmatpush3.bf16.msra.mxu1 %v13664_v48  ;;  %10764 = vmatprep.mubr.msk.f32.mxu1 %vm13273_vm3, %v15413_v10 }
0x3c3b   : > { %12708 = vmatprep.subr.bf16.mxu1 %v15414_v24 }
0x3c3e   : > { %12710 = vmatpush3.bf16.msra.mxu1 %v13669_v50 }
0x3c3f   : > { %12711 = vmatprep.subr.bf16.mxu1 %v15414_v24 }
0x3c42   : > { %12713 = vmatpush3.bf16.msra.mxu1 %v13675_v51 }
0x3c43   : > { %12714 = vmatprep.subr.bf16.mxu1 %v15414_v24 }
0x3c46   : > { %12716 = vmatpush3.bf16.msra.mxu1 %v13681_v52 }
0x3c47   : > { %12717 = vmatprep.subr.bf16.mxu1 %v15414_v24 }
0x3c4a   : > { %12719 = vmatpush3.bf16.msra.mxu1 %v13786_v31 }
0x3c4b   : > { %12720 = vmatprep.subr.bf16.mxu1 %v15414_v24 }
0x3c4e   : > { %12722 = vmatpush3.bf16.msra.mxu1 %v13792_v3 }
0x3c4f   : > { %12723 = vmatprep.subr.bf16.mxu1 %v15414_v24 }
0x3c52   : > { %12725 = vmatpush3.bf16.msra.mxu1 %v13797_v34 }
0x3c53   : > { %12726 = vmatprep.subr.bf16.mxu1 %v15414_v24 }
0x3c56   : > { %12728 = vmatpush3.bf16.msra.mxu1 %v13803_v35 }
0x3c57   : > { %12735 = vmatprep.subr.bf16.mxu1 %v15414_v24 }
0x3d0c   : > { %v5492_v1 = vpop.f32.mrb[70].mxu1 }
0x3d0d   : > { %v5493_v6 = vadd.f32 %v13471_v27, %v5492_v1  ;;  %v10696_v32 = vpop.f32.mrb[71].mxu1 }
0x3d0f   : > { %v5496_v11 = vmax.f32 %v5493_v6, 0.0 }
0x3d11   : > { %10730 = vmatmul.mubr.f32.vlgmr.msra.gmra.mrb[72].mxu0 %v5496_v11 }
0x3d12   : > { %12731 = vmatpush3.bf16.msra.mxu0 %v13594_v56  ;;  %10775 = vmatprep.mubr.msk.f32.mxu0 %vm13273_vm3, %v15413_v10 }
0x3d13   : > { %12732 = vmatprep.subr.bf16.mxu0 %v15414_v24 }
0x3d16   : > { %12734 = vmatpush3.bf16.msra.mxu0 %v13605_v59 }
0x3d17   : > { %12759 = vmatprep.subr.bf16.mxu0 %v15414_v24 }
0x3de4   : > { %v5563_v49 = vpop.f32.mrb[72].mxu0 }
0x3de5   : > { %v5564_v28 = vadd.f32 %v13556_v44, %v5563_v49  ;;  %v10731_v25 = vpop.f32.mrb[73].mxu0 }
0x3de7   : > { %13235 = vtanh.f32 %v5564_v28 }
0x3df1   : > { %v13236_v14 = vpop.eup %13235 }
0x3df2   : > { %v5568_v7 = vmul.f32 %v13236_v14, %v13767_v36 }
0x3df4   : > { %10765 = vmatmul.mubr.f32.vlgmr.msra.gmra.mrb[72].mxu1 %v5568_v7 }
0x3df5   : > { %12737 = vmatpush3.bf16.msra.mxu1 %v13600_v58  ;;  %10810 = vmatprep.mubr.msk.f32.mxu1 %vm13273_vm3, %v15413_v10 }
0x3df6   : > { %12738 = vmatprep.subr.bf16.mxu1 %v15414_v24 }
0x3df9   : > { %12740 = vmatpush3.bf16.msra.mxu1 %v13613_v60 }
0x3dfa   : > { %12741 = vmatprep.subr.bf16.mxu1 %v15414_v24 }
0x3dfd   : > { %12743 = vmatpush3.bf16.msra.mxu1 %v13622_v61 }
0x3dfe   : > { %12744 = vmatprep.subr.bf16.mxu1 %v15414_v24 }
0x3e01   : > { %12746 = vmatpush3.bf16.msra.mxu1 %v13633_v62 }
0x3e02   : > { %12747 = vmatprep.subr.bf16.mxu1 %v15414_v24 }
0x3e05   : > { %12749 = vmatpush3.bf16.msra.mxu1 %v13639_v63 }
0x3e06   : > { %12750 = vmatprep.subr.bf16.mxu1 %v15414_v24 }
0x3e09   : > { %12752 = vmatpush3.bf16.msra.mxu1 %v13646_v45 }
0x3e0a   : > { %12753 = vmatprep.subr.bf16.mxu1 %v15414_v24 }
0x3e0d   : > { %12755 = vmatpush3.bf16.msra.mxu1 %v13651_v46 }
0x3e0e   : > { %12756 = vmatprep.subr.bf16.mxu1 %v15414_v24 }
0x3e11   : > { %12758 = vmatpush3.bf16.msra.mxu1 %v13658_v47 }
0x3e12   : > { %12783 = vmatprep.subr.bf16.mxu1 %v15414_v24 }
0x3ec7   : > { %v5635_v29 = vpop.f32.mrb[72].mxu1 }
0x3ec8   : > { %v5642_v12 = vadd.f32 %v5641_v23, %v5635_v29  ;;  %v10766_v37 = vpop.f32.mrb[73].mxu1 }
0x3eca   : > { %v5643_v55 = vmul.f32 0.020833334, %v5642_v12 }
0x3ecc   : > { %v14949_v57 = vadd.f32 %v5643_v55, %v14754_v8 }
0x3ece   : > { %10776 = vmatmul.mubr.msk.f32.vlgmr.msra.gmra.mrb[74].mxu0 %vm342_vm5, %v14949_v57 }
0x3ecf   : > { %12761 = vmatpush3.bf16.msra.mxu0 %v13664_v48  ;;  %10845 = vmatprep.mubr.msk.f32.mxu0 %vm13273_vm3, %v15413_v10 }
0x3ed0   : > { %12762 = vmatprep.subr.bf16.mxu0 %v15414_v24 }
0x3ed3   : > { %12764 = vmatpush3.bf16.msra.mxu0 %v13669_v50 }
0x3ed4   : > { %12765 = vmatprep.subr.bf16.mxu0 %v15414_v24 }
0x3ed7   : > { %12767 = vmatpush3.bf16.msra.mxu0 %v13675_v51 }
0x3ed8   : > { %12768 = vmatprep.subr.bf16.mxu0 %v15414_v24 }
0x3edb   : > { %12770 = vmatpush3.bf16.msra.mxu0 %v13681_v52 }
0x3edc   : > { %12771 = vmatprep.subr.bf16.mxu0 %v15414_v24 }
0x3edf   : > { %12773 = vmatpush3.bf16.msra.mxu0 %v13786_v31 }
0x3ee0   : > { %12774 = vmatprep.subr.bf16.mxu0 %v15414_v24 }
0x3ee3   : > { %12776 = vmatpush3.bf16.msra.mxu0 %v13792_v3 }
0x3ee4   : > { %12777 = vmatprep.subr.bf16.mxu0 %v15414_v24 }
0x3ee7   : > { %12779 = vmatpush3.bf16.msra.mxu0 %v13797_v34 }
0x3ee8   : > { %12780 = vmatprep.subr.bf16.mxu0 %v15414_v24 }
0x3eeb   : > { %12782 = vmatpush3.bf16.msra.mxu0 %v13803_v35 }
0x3eec   : > { %12789 = vmatprep.subr.bf16.mxu0 %v15414_v24 }
0x3fa1   : > { %v5722_v8 = vpop.f32.mrb[74].mxu0 }
0x3fa2   : > { %v5723_v4 = vadd.f32 %v13471_v27, %v5722_v8  ;;  %v10777_v53 = vpop.f32.mrb[75].mxu0 }
0x3fa4   : > { %v5726_v54 = vmax.f32 %v5723_v4, 0.0 }
0x3fa6   : > { %10811 = vmatmul.mubr.f32.vlgmr.msra.gmra.mrb[74].mxu1 %v5726_v54 }
0x3fa7   : > { %12785 = vmatpush3.bf16.msra.mxu1 %v13594_v56  ;;  %10856 = vmatprep.mubr.msk.f32.mxu1 %vm13273_vm3, %v15413_v10 }
0x3fa8   : > { %12786 = vmatprep.subr.bf16.mxu1 %v15414_v24 }
0x3fab   : > { %12788 = vmatpush3.bf16.msra.mxu1 %v13605_v59 }
0x3fac   : > { %12813 = vmatprep.subr.bf16.mxu1 %v15414_v24 }
0x4079   : > { %v5793_v13 = vpop.f32.mrb[74].mxu1 }
0x407a   : > { %v5794_v5 = vadd.f32 %v13556_v44, %v5793_v13  ;;  %v10812_v9 = vpop.f32.mrb[75].mxu1 }
0x407c   : > { %13237 = vtanh.f32 %v5794_v5 }
0x4086   : > { %v13238_v30 = vpop.eup %13237 }
0x4087   : > { %v5798_v23 = vmul.f32 %v13238_v30, %v13767_v36 }
0x4089   : > { %10846 = vmatmul.mubr.f32.vlgmr.msra.gmra.mrb[76].mxu0 %v5798_v23 }
0x408a   : > { %12791 = vmatpush3.bf16.msra.mxu0 %v13600_v58  ;;  %10891 = vmatprep.mubr.msk.f32.mxu0 %vm13273_vm3, %v15413_v10 }
0x408b   : > { %12792 = vmatprep.subr.bf16.mxu0 %v15414_v24 }
0x408e   : > { %12794 = vmatpush3.bf16.msra.mxu0 %v13613_v60 }
0x408f   : > { %12795 = vmatprep.subr.bf16.mxu0 %v15414_v24 }
0x4092   : > { %12797 = vmatpush3.bf16.msra.mxu0 %v13622_v61 }
0x4093   : > { %12798 = vmatprep.subr.bf16.mxu0 %v15414_v24 }
0x4096   : > { %12800 = vmatpush3.bf16.msra.mxu0 %v13633_v62 }
0x4097   : > { %12801 = vmatprep.subr.bf16.mxu0 %v15414_v24 }
0x409a   : > { %12803 = vmatpush3.bf16.msra.mxu0 %v13639_v63 }
0x409b   : > { %12804 = vmatprep.subr.bf16.mxu0 %v15414_v24 }
0x409e   : > { %12806 = vmatpush3.bf16.msra.mxu0 %v13646_v45 }
0x409f   : > { %12807 = vmatprep.subr.bf16.mxu0 %v15414_v24 }
0x40a2   : > { %12809 = vmatpush3.bf16.msra.mxu0 %v13651_v46 }
0x40a3   : > { %12810 = vmatprep.subr.bf16.mxu0 %v15414_v24 }
0x40a6   : > { %12812 = vmatpush3.bf16.msra.mxu0 %v13658_v47 }
0x40a7   : > { %12837 = vmatprep.subr.bf16.mxu0 %v15414_v24 }
0x415c   : > { %v14998_v36 = vpop.f32.mrb[76].mxu0 }
0x415d   : > { %v5869_v1 = vmul.f32 0.0625, %v14998_v36  ;;  %v10847_v6 = vpop.f32.mrb[77].mxu0 }
0x415f   : > { %v5870_v32 = vadd.f32 %v5869_v1, %v14949_v57 }
0x4161   : > { %10857 = vmatmul.mubr.msk.f32.vlgmr.msra.gmra.mrb[76].mxu1 %vm342_vm5, %v5870_v32 }
0x4162   : > { %12815 = vmatpush3.bf16.msra.mxu1 %v13664_v48  ;;  %10926 = vmatprep.mubr.msk.f32.mxu1 %vm13273_vm3, %v15413_v10 }
0x4163   : > { %12816 = vmatprep.subr.bf16.mxu1 %v15414_v24 }
0x4166   : > { %12818 = vmatpush3.bf16.msra.mxu1 %v13669_v50 }
0x4167   : > { %12819 = vmatprep.subr.bf16.mxu1 %v15414_v24 }
0x416a   : > { %12821 = vmatpush3.bf16.msra.mxu1 %v13675_v51 }
0x416b   : > { %12822 = vmatprep.subr.bf16.mxu1 %v15414_v24 }
0x416e   : > { %12824 = vmatpush3.bf16.msra.mxu1 %v13681_v52 }
0x416f   : > { %12825 = vmatprep.subr.bf16.mxu1 %v15414_v24 }
0x4172   : > { %12827 = vmatpush3.bf16.msra.mxu1 %v13786_v31 }
0x4173   : > { %12828 = vmatprep.subr.bf16.mxu1 %v15414_v24 }
0x4176   : > { %12830 = vmatpush3.bf16.msra.mxu1 %v13792_v3 }
0x4177   : > { %12831 = vmatprep.subr.bf16.mxu1 %v15414_v24 }
0x417a   : > { %12833 = vmatpush3.bf16.msra.mxu1 %v13797_v34 }
0x417b   : > { %12834 = vmatprep.subr.bf16.mxu1 %v15414_v24 }
0x417e   : > { %12836 = vmatpush3.bf16.msra.mxu1 %v13803_v35 }
0x417f   : > { %12843 = vmatprep.subr.bf16.mxu1 %v15414_v24 }
0x4234   : > { %v5940_v11 = vpop.f32.mrb[76].mxu1 }
0x4235   : > { %v5941_v49 = vadd.f32 %v13471_v27, %v5940_v11  ;;  %v10858_v28 = vpop.f32.mrb[77].mxu1 }
0x4237   : > { %v5944_v25 = vmax.f32 %v5941_v49, 0.0 }
0x4239   : > { %10892 = vmatmul.mubr.f32.vlgmr.msra.gmra.mrb[78].mxu0 %v5944_v25 }
0x423a   : > { %12839 = vmatpush3.bf16.msra.mxu0 %v13594_v56  ;;  %10937 = vmatprep.mubr.msk.f32.mxu0 %vm13273_vm3, %v15413_v10 }
0x423b   : > { %12840 = vmatprep.subr.bf16.mxu0 %v15414_v24 }
0x423e   : > { %12842 = vmatpush3.bf16.msra.mxu0 %v13605_v59 }
0x423f   : > { %12867 = vmatprep.subr.bf16.mxu0 %v15414_v24 }
0x430c   : > { %v6011_v14 = vpop.f32.mrb[78].mxu0 }
0x430d   : > { %v6012_v7 = vadd.f32 %v13556_v44, %v6011_v14  ;;  %v10893_v29 = vpop.f32.mrb[79].mxu0 }
0x430f   : > { %13239 = vtanh.f32 %v6012_v7 }
0x4319   : > { %v13240_v12 = vpop.eup %13239 }
0x431a   : > { %v6016_v37 = vmul.f32 %v13240_v12, %v13772_v0 }
0x431c   : > { %10927 = vmatmul.mubr.f32.vlgmr.msra.gmra.mrb[78].mxu1 %v6016_v37 }
0x431d   : > { %12845 = vmatpush3.bf16.msra.mxu1 %v13600_v58  ;;  %10972 = vmatprep.mubr.msk.f32.mxu1 %vm13273_vm3, %v15413_v10 }
0x431e   : > { %12846 = vmatprep.subr.bf16.mxu1 %v15414_v24 }
0x4321   : > { %12848 = vmatpush3.bf16.msra.mxu1 %v13613_v60 }
0x4322   : > { %12849 = vmatprep.subr.bf16.mxu1 %v15414_v24 }
0x4325   : > { %12851 = vmatpush3.bf16.msra.mxu1 %v13622_v61 }
0x4326   : > { %12852 = vmatprep.subr.bf16.mxu1 %v15414_v24 }
0x4329   : > { %12854 = vmatpush3.bf16.msra.mxu1 %v13633_v62 }
0x432a   : > { %12855 = vmatprep.subr.bf16.mxu1 %v15414_v24 }
0x432d   : > { %12857 = vmatpush3.bf16.msra.mxu1 %v13639_v63 }
0x432e   : > { %12858 = vmatprep.subr.bf16.mxu1 %v15414_v24 }
0x4331   : > { %12860 = vmatpush3.bf16.msra.mxu1 %v13646_v45 }
0x4332   : > { %12861 = vmatprep.subr.bf16.mxu1 %v15414_v24 }
0x4335   : > { %12863 = vmatpush3.bf16.msra.mxu1 %v13651_v46 }
0x4336   : > { %12864 = vmatprep.subr.bf16.mxu1 %v15414_v24 }
0x4339   : > { %12866 = vmatpush3.bf16.msra.mxu1 %v13658_v47 }
0x433a   : > { %12891 = vmatprep.subr.bf16.mxu1 %v15414_v24 }
0x43ef   : > { %v6083_v55 = vpop.f32.mrb[78].mxu1 }
0x43f0   : > { %v6087_v8 = vmul.f32 0.0625, %v6083_v55  ;;  %v10928_v4 = vpop.f32.mrb[79].mxu1 }
0x43f2   : > { %v6088_v53 = vadd.f32 %v6087_v8, %v14949_v57 }
0x43f4   : > { %10938 = vmatmul.mubr.msk.f32.vlgmr.msra.gmra.mrb[80].mxu0 %vm342_vm5, %v6088_v53 }
0x43f5   : > { %12869 = vmatpush3.bf16.msra.mxu0 %v13664_v48  ;;  %11007 = vmatprep.mubr.msk.f32.mxu0 %vm13273_vm3, %v15413_v10 }
0x43f6   : > { %12870 = vmatprep.subr.bf16.mxu0 %v15414_v24 }
0x43f9   : > { %12872 = vmatpush3.bf16.msra.mxu0 %v13669_v50 }
0x43fa   : > { %12873 = vmatprep.subr.bf16.mxu0 %v15414_v24 }
0x43fd   : > { %12875 = vmatpush3.bf16.msra.mxu0 %v13675_v51 }
0x43fe   : > { %12876 = vmatprep.subr.bf16.mxu0 %v15414_v24 }
0x4401   : > { %12878 = vmatpush3.bf16.msra.mxu0 %v13681_v52 }
0x4402   : > { %12879 = vmatprep.subr.bf16.mxu0 %v15414_v24 }
0x4405   : > { %12881 = vmatpush3.bf16.msra.mxu0 %v13786_v31 }
0x4406   : > { %12882 = vmatprep.subr.bf16.mxu0 %v15414_v24 }
0x4409   : > { %12884 = vmatpush3.bf16.msra.mxu0 %v13792_v3 }
0x440a   : > { %12885 = vmatprep.subr.bf16.mxu0 %v15414_v24 }
0x440d   : > { %12887 = vmatpush3.bf16.msra.mxu0 %v13797_v34 }
0x440e   : > { %12888 = vmatprep.subr.bf16.mxu0 %v15414_v24 }
0x4411   : > { %12890 = vmatpush3.bf16.msra.mxu0 %v13803_v35 }
0x4412   : > { %12897 = vmatprep.subr.bf16.mxu0 %v15414_v24 }
0x44c7   : > { %v6158_v54 = vpop.f32.mrb[80].mxu0 }
0x44c8   : > { %v6159_v13 = vadd.f32 %v13471_v27, %v6158_v54  ;;  %v10939_v5 = vpop.f32.mrb[81].mxu0 }
0x44ca   : > { %v6162_v9 = vmax.f32 %v6159_v13, 0.0 }
0x44cc   : > { %10973 = vmatmul.mubr.f32.vlgmr.msra.gmra.mrb[80].mxu1 %v6162_v9 }
0x44cd   : > { %12893 = vmatpush3.bf16.msra.mxu1 %v13594_v56  ;;  %11018 = vmatprep.mubr.msk.f32.mxu1 %vm13273_vm3, %v15413_v10 }
0x44ce   : > { %12894 = vmatprep.subr.bf16.mxu1 %v15414_v24 }
0x44d1   : > { %12896 = vmatpush3.bf16.msra.mxu1 %v13605_v59 }
0x44d2   : > { %12921 = vmatprep.subr.bf16.mxu1 %v15414_v24 }
0x459f   : > { %v6229_v30 = vpop.f32.mrb[80].mxu1 }
0x45a0   : > { %v6230_v23 = vadd.f32 %v13556_v44, %v6229_v30  ;;  %v10974_v1 = vpop.f32.mrb[81].mxu1 }
0x45a2   : > { %13241 = vtanh.f32 %v6230_v23 }
0x45ac   : > { %v13242_v6 = vpop.eup %13241 }
0x45ad   : > { %v6234_v32 = vmul.f32 %v13242_v6, %v13772_v0 }
0x45af   : > { %11008 = vmatmul.mubr.f32.vlgmr.msra.gmra.mrb[82].mxu0 %v6234_v32 }
0x45b0   : > { %12899 = vmatpush3.bf16.msra.mxu0 %v13600_v58  ;;  %11053 = vmatprep.mubr.msk.f32.mxu0 %vm13273_vm3, %v15413_v10 }
0x45b1   : > { %12900 = vmatprep.subr.bf16.mxu0 %v15414_v24 }
0x45b4   : > { %12902 = vmatpush3.bf16.msra.mxu0 %v13613_v60 }
0x45b5   : > { %12903 = vmatprep.subr.bf16.mxu0 %v15414_v24 }
0x45b8   : > { %12905 = vmatpush3.bf16.msra.mxu0 %v13622_v61 }
0x45b9   : > { %12906 = vmatprep.subr.bf16.mxu0 %v15414_v24 }
0x45bc   : > { %12908 = vmatpush3.bf16.msra.mxu0 %v13633_v62 }
0x45bd   : > { %12909 = vmatprep.subr.bf16.mxu0 %v15414_v24 }
0x45c0   : > { %12911 = vmatpush3.bf16.msra.mxu0 %v13639_v63 }
0x45c1   : > { %12912 = vmatprep.subr.bf16.mxu0 %v15414_v24 }
0x45c4   : > { %12914 = vmatpush3.bf16.msra.mxu0 %v13646_v45 }
0x45c5   : > { %12915 = vmatprep.subr.bf16.mxu0 %v15414_v24 }
0x45c8   : > { %12917 = vmatpush3.bf16.msra.mxu0 %v13651_v46 }
0x45c9   : > { %12918 = vmatprep.subr.bf16.mxu0 %v15414_v24 }
0x45cc   : > { %12920 = vmatpush3.bf16.msra.mxu0 %v13658_v47 }
0x45cd   : > { %12945 = vmatprep.subr.bf16.mxu0 %v15414_v24 }
0x4682   : > { %v6301_v0 = vpop.f32.mrb[82].mxu0 }
0x4683   : > { %v6305_v11 = vmul.f32 0.125, %v6301_v0  ;;  %v6523_v49 = vadd.f32 %v6301_v0, %v6083_v55  ;;  %v11009_v28 = vpop.f32.mrb[83].mxu0 }
0x4685   : > { %v6306_v25 = vadd.f32 %v6305_v11, %v14949_v57  ;;  %v6524_v14 = vmul.f32 2.0, %v6523_v49 }
0x4687   : > { %11019 = vmatmul.mubr.msk.f32.vlgmr.msra.gmra.mrb[82].mxu1 %vm342_vm5, %v6306_v25  ;;  %v6525_v7 = vadd.f32 %v6524_v14, %v14998_v36 }
0x4688   : > { %12923 = vmatpush3.bf16.msra.mxu1 %v13664_v48  ;;  %11088 = vmatprep.mubr.msk.f32.mxu1 %vm13273_vm3, %v15413_v10 }
0x4689   : > { %12924 = vmatprep.subr.bf16.mxu1 %v15414_v24 }
0x468c   : > { %12926 = vmatpush3.bf16.msra.mxu1 %v13669_v50 }
0x468d   : > { %12927 = vmatprep.subr.bf16.mxu1 %v15414_v24 }
0x4690   : > { %12929 = vmatpush3.bf16.msra.mxu1 %v13675_v51 }
0x4691   : > { %12930 = vmatprep.subr.bf16.mxu1 %v15414_v24 }
0x4694   : > { %12932 = vmatpush3.bf16.msra.mxu1 %v13681_v52 }
0x4695   : > { %12933 = vmatprep.subr.bf16.mxu1 %v15414_v24 }
0x4698   : > { %12935 = vmatpush3.bf16.msra.mxu1 %v13786_v31 }
0x4699   : > { %12936 = vmatprep.subr.bf16.mxu1 %v15414_v24 }
0x469c   : > { %12938 = vmatpush3.bf16.msra.mxu1 %v13792_v3 }
0x469d   : > { %12939 = vmatprep.subr.bf16.mxu1 %v15414_v24 }
0x46a0   : > { %12941 = vmatpush3.bf16.msra.mxu1 %v13797_v34 }
0x46a1   : > { %12942 = vmatprep.subr.bf16.mxu1 %v15414_v24 }
0x46a4   : > { %12944 = vmatpush3.bf16.msra.mxu1 %v13803_v35 }
0x46a5   : > { %12951 = vmatprep.subr.bf16.mxu1 %v15414_v24 }
0x475a   : > { %v6376_v36 = vpop.f32.mrb[82].mxu1 }
0x475b   : > { %v6377_v29 = vadd.f32 %v13471_v27, %v6376_v36  ;;  %v11020_v12 = vpop.f32.mrb[83].mxu1 }
0x475d   : > { %v6380_v37 = vmax.f32 %v6377_v29, 0.0 }
0x475f   : > { %11054 = vmatmul.mubr.f32.vlgmr.msra.gmra.mrb[84].mxu0 %v6380_v37 }
0x4760   : > { %12947 = vmatpush3.bf16.msra.mxu0 %v13594_v56  ;;  %11099 = vmatprep.mubr.msk.f32.mxu0 %vm13273_vm3, %v15413_v10 }
0x4761   : > { %12948 = vmatprep.subr.bf16.mxu0 %v15414_v24 }
0x4764   : > { %12950 = vmatpush3.bf16.msra.mxu0 %v13605_v59 }
0x4765   : > { %12975 = vmatprep.subr.bf16.mxu0 %v15414_v24 }
0x4832   : > { %v6447_v55 = vpop.f32.mrb[84].mxu0 }
0x4833   : > { %v6448_v8 = vadd.f32 %v13556_v44, %v6447_v55  ;;  %v11055_v4 = vpop.f32.mrb[85].mxu0 }
0x4835   : > { %13243 = vtanh.f32 %v6448_v8 }
0x483f   : > { %v13244_v53 = vpop.eup %13243 }
0x4840   : > { %v6452_v54 = vmul.f32 %v13244_v53, %v13776_v26 }
0x4842   : > { %11089 = vmatmul.mubr.f32.vlgmr.msra.gmra.mrb[84].mxu1 %v6452_v54 }
0x4843   : > { %12953 = vmatpush3.bf16.msra.mxu1 %v13600_v58  ;;  %11134 = vmatprep.mubr.msk.f32.mxu1 %vm13273_vm3, %v15413_v10 }
0x4844   : > { %12954 = vmatprep.subr.bf16.mxu1 %v15414_v24 }
0x4847   : > { %12956 = vmatpush3.bf16.msra.mxu1 %v13613_v60 }
0x4848   : > { %12957 = vmatprep.subr.bf16.mxu1 %v15414_v24 }
0x484b   : > { %12959 = vmatpush3.bf16.msra.mxu1 %v13622_v61 }
0x484c   : > { %12960 = vmatprep.subr.bf16.mxu1 %v15414_v24 }
0x484f   : > { %12962 = vmatpush3.bf16.msra.mxu1 %v13633_v62 }
0x4850   : > { %12963 = vmatprep.subr.bf16.mxu1 %v15414_v24 }
0x4853   : > { %12965 = vmatpush3.bf16.msra.mxu1 %v13639_v63 }
0x4854   : > { %12966 = vmatprep.subr.bf16.mxu1 %v15414_v24 }
0x4857   : > { %12968 = vmatpush3.bf16.msra.mxu1 %v13646_v45 }
0x4858   : > { %12969 = vmatprep.subr.bf16.mxu1 %v15414_v24 }
0x485b   : > { %12971 = vmatpush3.bf16.msra.mxu1 %v13651_v46 }
0x485c   : > { %12972 = vmatprep.subr.bf16.mxu1 %v15414_v24 }
0x485f   : > { %12974 = vmatpush3.bf16.msra.mxu1 %v13658_v47 }
0x4860   : > { %12999 = vmatprep.subr.bf16.mxu1 %v15414_v24 }
0x4915   : > { %v6519_v13 = vpop.f32.mrb[84].mxu1 }
0x4916   : > { %v6526_v5 = vadd.f32 %v6525_v7, %v6519_v13  ;;  %v11090_v9 = vpop.f32.mrb[85].mxu1 }
0x4918   : > { %v6527_v30 = vmul.f32 0.020833334, %v6526_v5 }
0x491a   : > { %v15144_v23 = vadd.f32 %v6527_v30, %v14949_v57 }
0x491c   : > { %11100 = vmatmul.mubr.msk.f32.vlgmr.msra.gmra.mrb[86].mxu0 %vm342_vm5, %v15144_v23 }
0x491d   : > { %12977 = vmatpush3.bf16.msra.mxu0 %v13664_v48  ;;  %11169 = vmatprep.mubr.msk.f32.mxu0 %vm13273_vm3, %v15413_v10 }
0x491e   : > { %12978 = vmatprep.subr.bf16.mxu0 %v15414_v24 }
0x4921   : > { %12980 = vmatpush3.bf16.msra.mxu0 %v13669_v50 }
0x4922   : > { %12981 = vmatprep.subr.bf16.mxu0 %v15414_v24 }
0x4925   : > { %12983 = vmatpush3.bf16.msra.mxu0 %v13675_v51 }
0x4926   : > { %12984 = vmatprep.subr.bf16.mxu0 %v15414_v24 }
0x4929   : > { %12986 = vmatpush3.bf16.msra.mxu0 %v13681_v52 }
0x492a   : > { %12987 = vmatprep.subr.bf16.mxu0 %v15414_v24 }
0x492d   : > { %12989 = vmatpush3.bf16.msra.mxu0 %v13786_v31 }
0x492e   : > { %12990 = vmatprep.subr.bf16.mxu0 %v15414_v24 }
0x4931   : > { %12992 = vmatpush3.bf16.msra.mxu0 %v13792_v3 }
0x4932   : > { %12993 = vmatprep.subr.bf16.mxu0 %v15414_v24 }
0x4935   : > { %12995 = vmatpush3.bf16.msra.mxu0 %v13797_v34 }
0x4936   : > { %12996 = vmatprep.subr.bf16.mxu0 %v15414_v24 }
0x4939   : > { %12998 = vmatpush3.bf16.msra.mxu0 %v13803_v35 }
0x493a   : > { %13005 = vmatprep.subr.bf16.mxu0 %v15414_v24 }
0x49ef   : > { %v6604_v57 = vpop.f32.mrb[86].mxu0 }
0x49f0   : > { %v6605_v1 = vadd.f32 %v13471_v27, %v6604_v57  ;;  %v11101_v6 = vpop.f32.mrb[87].mxu0 }
0x49f2   : > { %v6608_v32 = vmax.f32 %v6605_v1, 0.0 }
0x49f4   : > { %11135 = vmatmul.mubr.f32.vlgmr.msra.gmra.mrb[86].mxu1 %v6608_v32 }
0x49f5   : > { %13001 = vmatpush3.bf16.msra.mxu1 %v13594_v56  ;;  %11180 = vmatprep.mubr.msk.f32.mxu1 %vm13273_vm3, %v15413_v10 }
0x49f6   : > { %13002 = vmatprep.subr.bf16.mxu1 %v15414_v24 }
0x49f9   : > { %13004 = vmatpush3.bf16.msra.mxu1 %v13605_v59 }
0x49fa   : > { %13029 = vmatprep.subr.bf16.mxu1 %v15414_v24 }
0x4ac7   : > { %v6675_v0 = vpop.f32.mrb[86].mxu1 }
0x4ac8   : > { %v6676_v11 = vadd.f32 %v13556_v44, %v6675_v0  ;;  %v11136_v49 = vpop.f32.mrb[87].mxu1 }
0x4aca   : > { %13245 = vtanh.f32 %v6676_v11 }
0x4ad4   : > { %v13246_v28 = vpop.eup %13245 }
0x4ad5   : > { %v6680_v25 = vmul.f32 %v13246_v28, %v13776_v26 }
0x4ad7   : > { %11170 = vmatmul.mubr.f32.vlgmr.msra.gmra.mrb[88].mxu0 %v6680_v25 }
0x4ad8   : > { %13007 = vmatpush3.bf16.msra.mxu0 %v13600_v58  ;;  %11215 = vmatprep.mubr.msk.f32.mxu0 %vm13273_vm3, %v15413_v10 }
0x4ad9   : > { %13008 = vmatprep.subr.bf16.mxu0 %v15414_v24 }
0x4adc   : > { %13010 = vmatpush3.bf16.msra.mxu0 %v13613_v60 }
0x4add   : > { %13011 = vmatprep.subr.bf16.mxu0 %v15414_v24 }
0x4ae0   : > { %13013 = vmatpush3.bf16.msra.mxu0 %v13622_v61 }
0x4ae1   : > { %13014 = vmatprep.subr.bf16.mxu0 %v15414_v24 }
0x4ae4   : > { %13016 = vmatpush3.bf16.msra.mxu0 %v13633_v62 }
0x4ae5   : > { %13017 = vmatprep.subr.bf16.mxu0 %v15414_v24 }
0x4ae8   : > { %13019 = vmatpush3.bf16.msra.mxu0 %v13639_v63 }
0x4ae9   : > { %13020 = vmatprep.subr.bf16.mxu0 %v15414_v24 }
0x4aec   : > { %13022 = vmatpush3.bf16.msra.mxu0 %v13646_v45 }
0x4aed   : > { %13023 = vmatprep.subr.bf16.mxu0 %v15414_v24 }
0x4af0   : > { %13025 = vmatpush3.bf16.msra.mxu0 %v13651_v46 }
0x4af1   : > { %13026 = vmatprep.subr.bf16.mxu0 %v15414_v24 }
0x4af4   : > { %13028 = vmatpush3.bf16.msra.mxu0 %v13658_v47 }
0x4af5   : > { %13053 = vmatprep.subr.bf16.mxu0 %v15414_v24 }
0x4baa   : > { %v15193_v26 = vpop.f32.mrb[88].mxu0 }
0x4bab   : > { %v6751_v14 = vmul.f32 0.0625, %v15193_v26  ;;  %v11171_v7 = vpop.f32.mrb[89].mxu0 }
0x4bac   :  { %v15416_v7 = vmov (%p171_p0), 0.0  }
0x4bad   : > { %v6752_v36 = vadd.f32 %v6751_v14, %v15144_v23 }
0x4baf   : > { %11181 = vmatmul.mubr.msk.f32.vlgmr.msra.gmra.mrb[88].mxu1 %vm342_vm5, %v6752_v36  ;;  %v13274_v36 = vmov (%p171_p0), 0.0|0.0  }
0x4bb0   : > { %13031 = vmatpush3.bf16.msra.mxu1 %v13664_v48  ;;  %11250 = vmatprep.mubr.msk.f32.mxu1 %vm13273_vm3, %v15413_v10 }
0x4bb1   : > { %13032 = vmatprep.subr.bf16.mxu1 %v15414_v24 }
0x4bb4   : > { %13034 = vmatpush3.bf16.msra.mxu1 %v13669_v50 }
0x4bb5   : > { %13035 = vmatprep.subr.bf16.mxu1 %v15414_v24 }
0x4bb8   : > { %13037 = vmatpush3.bf16.msra.mxu1 %v13675_v51 }
0x4bb9   : > { %13038 = vmatprep.subr.bf16.mxu1 %v15414_v24 }
0x4bbc   : > { %13040 = vmatpush3.bf16.msra.mxu1 %v13681_v52 }
0x4bbd   : > { %13041 = vmatprep.subr.bf16.mxu1 %v15414_v24 }
0x4bc0   : > { %13043 = vmatpush3.bf16.msra.mxu1 %v13786_v31 }
0x4bc1   : > { %13044 = vmatprep.subr.bf16.mxu1 %v15414_v24 }
0x4bc4   : > { %13046 = vmatpush3.bf16.msra.mxu1 %v13792_v3 }
0x4bc5   : > { %13047 = vmatprep.subr.bf16.mxu1 %v15414_v24 }
0x4bc8   : > { %13049 = vmatpush3.bf16.msra.mxu1 %v13797_v34 }
0x4bc9   : > { %13050 = vmatprep.subr.bf16.mxu1 %v15414_v24 }
0x4bcc   : > { %13052 = vmatpush3.bf16.msra.mxu1 %v13803_v35 }
0x4bcd   : > { %13059 = vmatprep.subr.bf16.mxu1 %v15414_v24 }
0x4c82   : > { %v6822_v29 = vpop.f32.mrb[88].mxu1 }
0x4c83   : > { %v6823_v12 = vadd.f32 %v13471_v27, %v6822_v29  ;;  %v11182_v37 = vpop.f32.mrb[89].mxu1 }
0x4c85   : > { %v6826_v55 = vmax.f32 %v6823_v12, 0.0 }
0x4c87   : > { %11216 = vmatmul.mubr.f32.vlgmr.msra.gmra.mrb[90].mxu0 %v6826_v55 }
0x4c88   : > { %13055 = vmatpush3.bf16.msra.mxu0 %v13594_v56  ;;  %11261 = vmatprep.mubr.msk.f32.mxu0 %vm13273_vm3, %v15413_v10 }
0x4c89   : > { %13056 = vmatprep.subr.bf16.mxu0 %v15414_v24 }
0x4c8c   : > { %13058 = vmatpush3.bf16.msra.mxu0 %v13605_v59 }
0x4c8d   : > { %13083 = vmatprep.subr.bf16.mxu0 %v15414_v24 }
0x4d5a   : > { %v6893_v8 = vpop.f32.mrb[90].mxu0 }
0x4d5b   : > { %v6894_v4 = vadd.f32 %v13556_v44, %v6893_v8  ;;  %v11217_v53 = vpop.f32.mrb[91].mxu0 }
0x4d5d   : > { %13247 = vtanh.f32 %v6894_v4 }
0x4d67   : > { %v13248_v54 = vpop.eup %13247 }
0x4d68   : > { %v6898_v13 = vmul.f32 %v13248_v54, %v13782_v33 }
0x4d6a   : > { %11251 = vmatmul.mubr.f32.vlgmr.msra.gmra.mrb[90].mxu1 %v6898_v13 }
0x4d6b   : > { %13061 = vmatpush3.bf16.msra.mxu1 %v13600_v58  ;;  %11296 = vmatprep.mubr.msk.f32.mxu1 %vm13273_vm3, %v15413_v10 }
0x4d6c   : > { %13062 = vmatprep.subr.bf16.mxu1 %v15414_v24 }
0x4d6f   : > { %13064 = vmatpush3.bf16.msra.mxu1 %v13613_v60 }
0x4d70   : > { %13065 = vmatprep.subr.bf16.mxu1 %v15414_v24 }
0x4d73   : > { %13067 = vmatpush3.bf16.msra.mxu1 %v13622_v61 }
0x4d74   : > { %13068 = vmatprep.subr.bf16.mxu1 %v15414_v24 }
0x4d77   : > { %13070 = vmatpush3.bf16.msra.mxu1 %v13633_v62 }
0x4d78   : > { %13071 = vmatprep.subr.bf16.mxu1 %v15414_v24 }
0x4d7b   : > { %13073 = vmatpush3.bf16.msra.mxu1 %v13639_v63 }
0x4d7c   : > { %13074 = vmatprep.subr.bf16.mxu1 %v15414_v24 }
0x4d7f   : > { %13076 = vmatpush3.bf16.msra.mxu1 %v13646_v45 }
0x4d80   : > { %13077 = vmatprep.subr.bf16.mxu1 %v15414_v24 }
0x4d83   : > { %13079 = vmatpush3.bf16.msra.mxu1 %v13651_v46 }
0x4d84   : > { %13080 = vmatprep.subr.bf16.mxu1 %v15414_v24 }
0x4d87   : > { %13082 = vmatpush3.bf16.msra.mxu1 %v13658_v47 }
0x4d88   : > { %13107 = vmatprep.subr.bf16.mxu1 %v15414_v24 }
0x4e3d   : > { %v6965_v5 = vpop.f32.mrb[90].mxu1 }
0x4e3e   : > { %v6969_v9 = vmul.f32 0.0625, %v6965_v5  ;;  %v11252_v30 = vpop.f32.mrb[91].mxu1 }
0x4e40   : > { %v6970_v57 = vadd.f32 %v6969_v9, %v15144_v23 }
0x4e42   : > { %11262 = vmatmul.mubr.msk.f32.vlgmr.msra.gmra.mrb[92].mxu0 %vm342_vm5, %v6970_v57 }
0x4e43   : > { %13085 = vmatpush3.bf16.msra.mxu0 %v13664_v48  ;;  %11331 = vmatprep.mubr.msk.f32.mxu0 %vm13273_vm3, %v15413_v10 }
0x4e44   : > { %13086 = vmatprep.subr.bf16.mxu0 %v15414_v24 }
0x4e47   : > { %13088 = vmatpush3.bf16.msra.mxu0 %v13669_v50 }
0x4e48   : > { %13089 = vmatprep.subr.bf16.mxu0 %v15414_v24 }
0x4e4b   : > { %13091 = vmatpush3.bf16.msra.mxu0 %v13675_v51 }
0x4e4c   : > { %13092 = vmatprep.subr.bf16.mxu0 %v15414_v24 }
0x4e4f   : > { %13094 = vmatpush3.bf16.msra.mxu0 %v13681_v52 }
0x4e50   : > { %13095 = vmatprep.subr.bf16.mxu0 %v15414_v24 }
0x4e53   : > { %13097 = vmatpush3.bf16.msra.mxu0 %v13786_v31 }
0x4e54   : > { %13098 = vmatprep.subr.bf16.mxu0 %v15414_v24 }
0x4e57   : > { %13100 = vmatpush3.bf16.msra.mxu0 %v13792_v3 }
0x4e58   : > { %13101 = vmatprep.subr.bf16.mxu0 %v15414_v24 }
0x4e5b   : > { %13103 = vmatpush3.bf16.msra.mxu0 %v13797_v34 }
0x4e5c   : > { %13104 = vmatprep.subr.bf16.mxu0 %v15414_v24 }
0x4e5f   : > { %13106 = vmatpush3.bf16.msra.mxu0 %v13803_v35 }
0x4e60   : > { %13113 = vmatprep.subr.bf16.mxu0 %v15414_v24 }
0x4f15   : > { %v7040_v1 = vpop.f32.mrb[92].mxu0 }
0x4f16   : > { %v7041_v6 = vadd.f32 %v13471_v27, %v7040_v1  ;;  %v11263_v32 = vpop.f32.mrb[93].mxu0 }
0x4f18   : > { %v7044_v0 = vmax.f32 %v7041_v6, 0.0 }
0x4f1a   : > { %11297 = vmatmul.mubr.f32.vlgmr.msra.gmra.mrb[92].mxu1 %v7044_v0 }
0x4f1b   : > { %13109 = vmatpush3.bf16.msra.mxu1 %v13594_v56  ;;  %11342 = vmatprep.mubr.msk.f32.mxu1 %vm13273_vm3, %v15413_v10 }
0x4f1c   : > { %13110 = vmatprep.subr.bf16.mxu1 %v15414_v24 }
0x4f1f   : > { %13112 = vmatpush3.bf16.msra.mxu1 %v13605_v59 }
0x4f20   : > { %13137 = vmatprep.subr.bf16.mxu1 %v15414_v24 }
0x4fed   : > { %v7111_v11 = vpop.f32.mrb[92].mxu1 }
0x4fee   : > { %v7112_v49 = vadd.f32 %v13556_v44, %v7111_v11  ;;  %v11298_v28 = vpop.f32.mrb[93].mxu1 }
0x4ff0   : > { %13249 = vtanh.f32 %v7112_v49 }
0x4ffa   : > { %v13250_v25 = vpop.eup %13249 }
0x4ffb   : > { %v7116_v14 = vmul.f32 %v13250_v25, %v13782_v33 }
0x4ffd   : > { %11332 = vmatmul.mubr.f32.vlgmr.msra.gmra.mrb[94].mxu0 %v7116_v14 }
0x4ffe   : > { %13115 = vmatpush3.bf16.msra.mxu0 %v13600_v58  ;;  %11377 = vmatprep.mubr.msk.f32.mxu0 %vm13273_vm3, %v15413_v10 }
0x4fff   : > { %13116 = vmatprep.subr.bf16.mxu0 %v15414_v24 }
0x5002   : > { %13118 = vmatpush3.bf16.msra.mxu0 %v13613_v60 }
0x5003   : > { %13119 = vmatprep.subr.bf16.mxu0 %v15414_v24 }
0x5006   : > { %13121 = vmatpush3.bf16.msra.mxu0 %v13622_v61 }
0x5007   : > { %13122 = vmatprep.subr.bf16.mxu0 %v15414_v24 }
0x500a   : > { %13124 = vmatpush3.bf16.msra.mxu0 %v13633_v62 }
0x500b   : > { %13125 = vmatprep.subr.bf16.mxu0 %v15414_v24 }
0x500e   : > { %13127 = vmatpush3.bf16.msra.mxu0 %v13639_v63 }
0x500f   : > { %13128 = vmatprep.subr.bf16.mxu0 %v15414_v24 }
0x5012   : > { %13130 = vmatpush3.bf16.msra.mxu0 %v13646_v45 }
0x5013   : > { %13131 = vmatprep.subr.bf16.mxu0 %v15414_v24 }
0x5016   : > { %13133 = vmatpush3.bf16.msra.mxu0 %v13651_v46 }
0x5017   : > { %13134 = vmatprep.subr.bf16.mxu0 %v15414_v24 }
0x501a   : > { %13136 = vmatpush3.bf16.msra.mxu0 %v13658_v47 }
0x501b   :  { %13161 = vmatprep.subr.bf16.mxu0 (%p171_p0), %v13274_v36 }
0x50d0   : > { %v7183_v56 = vpop.f32.mrb[94].mxu0 }
0x50d1   : > { %v7187_v58 = vmul.f32 0.125, %v7183_v56  ;;  %v7405_v59 = vadd.f32 %v7183_v56, %v6965_v5  ;;  %v11333_v60 = vpop.f32.mrb[95].mxu0 }
0x50d3   : > { %v7188_v61 = vadd.f32 %v7187_v58, %v15144_v23  ;;  %v7406_v62 = vmul.f32 2.0, %v7405_v59 }
0x50d5   : > { %11343 = vmatmul.mubr.msk.f32.vlgmr.msra.gmra.mrb[94].mxu1 %vm342_vm5, %v7188_v61  ;;  %v7407_v63 = vadd.f32 %v7406_v62, %v15193_v26  ;;  %v7411_v26 = vld [vmem:[%s15342_s9] sm:$0xff] (%p171_p0) }
0x50d6   : > { %13139 = vmatpush3.bf16.msra.mxu1 %v13664_v48  ;;  %11412 = vmatprep.mubr.msk.f32.mxu1 %vm13273_vm3, %v15413_v10 }
0x50d7   : > { %13140 = vmatprep.subr.bf16.mxu1 %v15414_v24 }
0x50da   : > { %13142 = vmatpush3.bf16.msra.mxu1 %v13669_v50 }
0x50db   : > { %13143 = vmatprep.subr.bf16.mxu1 %v15414_v24 }
0x50de   : > { %13145 = vmatpush3.bf16.msra.mxu1 %v13675_v51 }
0x50df   : > { %13146 = vmatprep.subr.bf16.mxu1 %v15414_v24 }
0x50e2   : > { %13148 = vmatpush3.bf16.msra.mxu1 %v13681_v52 }
0x50e3   : > { %13149 = vmatprep.subr.bf16.mxu1 %v15414_v24 }
0x50e6   : > { %13151 = vmatpush3.bf16.msra.mxu1 %v13786_v31 }
0x50e7   : > { %13152 = vmatprep.subr.bf16.mxu1 %v15414_v24 }
0x50ea   : > { %13154 = vmatpush3.bf16.msra.mxu1 %v13792_v3 }
0x50eb   : > { %13155 = vmatprep.subr.bf16.mxu1 %v15414_v24 }
0x50ee   : > { %13157 = vmatpush3.bf16.msra.mxu1 %v13797_v34 }
0x50ef   : > { %13158 = vmatprep.subr.bf16.mxu1 %v15414_v24 }
0x50f2   : > { %13160 = vmatpush3.bf16.msra.mxu1 %v13803_v35 }
0x51a8   : > { %v7258_v45 = vpop.f32.mrb[94].mxu1 }
0x51a9   : > { %v7259_v46 = vadd.f32 %v13471_v27, %v7258_v45  ;;  %v11344_v47 = vpop.f32.mrb[95].mxu1 }
0x51ab   : > { %v7262_v48 = vmax.f32 %v7259_v46, 0.0 }
0x51ad   : > { %11378 = vmatmul.mubr.f32.vlgmr.msra.gmra.mrb[96].mxu0 %v7262_v48 }
0x51ae   :  { %11423 = vmatprep.mubr.msk.f32.mxu0 (%p171_p0), %vm13270_vm0, %v15416_v7 }
0x5280   : > { %v7329_v50 = vpop.f32.mrb[96].mxu0 }
0x5281   : > { %v7330_v51 = vadd.f32 %v13556_v44, %v7329_v50  ;;  %v11379_v52 = vpop.f32.mrb[97].mxu0 }
0x5283   : > { %13251 = vtanh.f32 %v7330_v51 }
0x528d   : > { %v13252_v10 = vpop.eup %13251 }
0x528e   : > { %v7334_v33 = vmul.f32 %v13252_v10, %v13779_v2  ;;  %v7412_v2 = vld [vmem:[%s15342_s9 + $0x8] sm:$0xff] (%p171_p0) }
0x528f   :  { %v13162_v29 = vpack.c.bf16 (%p171_p0), %v7412_v2, %v7411_v26 }
0x5290   : > { %11413 = vmatmul.mubr.f32.vlgmr.msra.gmra.mrb[96].mxu1 %v7334_v33 }
0x5291   :  { %13163 = vmatpush3.bf16.msra.mxu0 (%p171_p0), %v13162_v29 }
0x5292   :  { %13164 = vmatprep.subr.bf16.mxu0 (%p171_p0), %v13274_v36 }
0x5363   : > { %v7401_v31 = vpop.f32.mrb[96].mxu1 }
0x5364   : > { %v7408_v3 = vadd.f32 %v7407_v63, %v7401_v31  ;;  %v11414_v24 = vpop.f32.mrb[97].mxu1  ;;  %173 = sbr.rel (!%p171_p0) target bundleno = 235 (0xeb), region = 72 }
0x5366   : > { %v7409_v34 = vmul.f32 0.020833334, %v7408_v3 }
0x5368   : > { %v7410_v35 = vadd.f32 %v7409_v34, %v15144_v23   ;;  %v7413_v23 = vld [vmem:[%s15342_s9 + $0x10] sm:$0xff] (%p171_p0) }
0x5369   :  { %v13165_v16 = vpack.c.bf16 (%p171_p0), %v7414_v15, %v7413_v23 }
0x536a   : > { %v15415_v49 = vmov %v7410_v35 }
0x536b   :  { %13166 = vmatpush3.bf16.msra.mxu0 %v13165_v16 }
0x536e   :  { %11424 = vmatmul.mubr.msk.f32.vlgmr.msra.gmra.mrb[0].mxu0 %vm342_vm5, %v7410_v35 }
0x5441   :  { %v7492_v18 = vpop.f32.mrb[0].mxu0 }
0x5442   :  { %v7493_v19 = vadd.f32 %v7551_v17, %v7492_v18  ;;  %v11425_v20 = vpop.f32.mrb[1].mxu0 }
0x5444   :  { %7496 = vst.msk [vmem:[%s15344_s11] sm:$0xff] %vm91_vm2, %v7493_v19 }

</bundles_post_ra>
